<compile_context>
chip_gen: v6e
topology: v6e:2x2x1
jax: 0.10.0
libtpu: 0.0.40
codegen_flags: <defaults>
</compile_context>

<pallas_src>
import functools

import jax
import jax.numpy as jnp
from jax import lax
from jax.experimental import pallas as pl
from jax.experimental.pallas import tpu as pltpu

EXPANSION = 4
BN_EPS = 1e-5
LANE = 128
VMEM_LIMIT = 48 * 1024 * 1024   # scoped-VMEM budget; < 64 MiB physical on v7x


def _round_up(x, m):
    return (x + m - 1) // m * m


# ----------------------------------------------------------------------------
# Fully fused bottleneck kernel.
# Grid step (n, d) produces one output depth plane of H*W rows.
#   y1_ref  : (H+2, W+2, 3*Cmid) f32 rolling scratch, channel groups are the
#             y1 planes [d-1 | d | d+1] (zero borders = conv2 padding).
#   xres_ref: (H*W, Cin_p) bf16, holds x plane d for the residual add.
# ----------------------------------------------------------------------------
def _bottleneck_kernel(H, W, D, Cmid,
                       x0_ref, xn_ref, w1_ref, b1_ref, w2_ref, b2_ref,
                       w3_ref, b3_ref, o_ref, y1_ref, xres_ref):
    d = pl.program_id(1)
    HW = H * W
    C3 = 3 * Cmid

    def conv1_plane(x_bf16):
        # conv1 (1x1x1) + folded bn1 + relu for one depth plane -> (H, W, Cmid) f32
        y = jnp.dot(x_bf16, w1_ref[...], preferred_element_type=jnp.float32)
        return jnp.maximum(y + b1_ref[...], 0.0).reshape(H, W, Cmid)

    # ---- per-image init: zero the padded scratch, seed plane 0 -------------
    @pl.when(d == 0)
    def _():
        y1_ref[...] = jnp.zeros_like(y1_ref)
        y1_ref[1:H + 1, 1:W + 1, Cmid:2 * Cmid] = conv1_plane(x0_ref[...])
        xres_ref[...] = x0_ref[...]            # residual for d == 0

    # ---- roll the depth window: (cur, next) -> (prev, cur) -----------------
    @pl.when(d > 0)
    def _():
        y1_ref[:, :, :2 * Cmid] = y1_ref[:, :, Cmid:]

    # residual = x plane d (read BEFORE xres is overwritten below)
    res = xres_ref[...].astype(jnp.float32)

    # ---- compute the new y1 plane d+1 (or zero pad past the last plane) ----
    @pl.when(d + 1 < D)
    def _():
        y1_ref[1:H + 1, 1:W + 1, 2 * Cmid:] = conv1_plane(xn_ref[...])
        xres_ref[...] = xn_ref[...]            # residual for step d+1

    @pl.when(d + 1 >= D)
    def _():
        y1_ref[:, :, 2 * Cmid:] = jnp.zeros((H + 2, W + 2, Cmid), jnp.float32)

    # ---- conv2 (3x3x3, pad=1): 9 K-stacked taps, K = 3*Cmid ----------------
    acc = jnp.zeros((HW, Cmid), jnp.float32)
    for t in range(9):
        kh, kw = t // 3, t % 3
        slab = y1_ref[kh:kh + H, kw:kw + W, :].astype(jnp.bfloat16)
        acc = acc + jnp.dot(slab.reshape(HW, C3), w2_ref[t],
                            preferred_element_type=jnp.float32)

    # bn2 + relu, conv3 (1x1x1) + bn3, residual add, relu
    y2 = jnp.maximum(acc + b2_ref[...], 0.0).astype(jnp.bfloat16)
    y3 = jnp.dot(y2, w3_ref[...], preferred_element_type=jnp.float32)
    o_ref[...] = jnp.maximum(y3 + b3_ref[...] + res, 0.0).astype(o_ref.dtype)


# ----------------------------------------------------------------------------
# Parameter prep (plain JAX, one-time under jit)
# ----------------------------------------------------------------------------
def bn_fold(gamma, beta, running_mean, running_var, eps=BN_EPS):
    scale = gamma / jnp.sqrt(running_var + eps)
    shift = beta - running_mean * scale
    return scale, shift


def init_params(key, in_planes, planes):
    k1, k2, k3 = jax.random.split(key, 3)
    out3 = planes * EXPANSION
    w1 = 0.10 * jax.random.normal(k1, (planes, in_planes, 1, 1, 1), jnp.float32)
    w2 = 0.05 * jax.random.normal(k2, (planes, planes, 3, 3, 3), jnp.float32)
    w3 = 0.10 * jax.random.normal(k3, (out3, planes, 1, 1, 1), jnp.float32)

    def bn_params(c):
        i = jnp.arange(c, dtype=jnp.float32)
        return (1.0 + 0.01 * i, 0.01 * i, 0.001 * i, 1.0 + 0.01 * i)

    return {
        "w1": w1, "bn1": bn_params(planes),
        "w2": w2, "bn2": bn_params(planes),
        "w3": w3, "bn3": bn_params(out3),
    }


# ----------------------------------------------------------------------------
# Forward pass
# ----------------------------------------------------------------------------
def resnet_bottleneck_forward(x_ncdhw, params, stride=1):
    """x_ncdhw: (N, Cin, D, H, W), Cin == planes*4, stride==1, downsample=None."""
    assert stride == 1, "downsample=None branch requires stride=1 / matching channels"
    N, Cin, D, H, W = x_ncdhw.shape
    planes = params["w1"].shape[0]
    Cout = planes * EXPANSION
    assert Cin == Cout

    Cin_p = _round_up(Cin, LANE)       # == Cout_p (Cin == Cout)
    Cmid_p = _round_up(planes, LANE)
    Cout_p = Cin_p
    HW = H * W

    # NCDHW -> (N, D, H*W, C) channels-last, channel-padded, bf16 (one pass).
    x = jnp.transpose(x_ncdhw, (0, 2, 3, 4, 1))
    x = jnp.pad(x, ((0, 0),) * 4 + ((0, Cin_p - Cin),))
    x4d = x.reshape(N, D, HW, Cin_p).astype(jnp.bfloat16)

    # Fold eval-mode BN into conv weights (scale) + bias shift.
    s1, b1 = bn_fold(*params["bn1"])
    s2, b2 = bn_fold(*params["bn2"])
    s3, b3 = bn_fold(*params["bn3"])

    w1m = params["w1"].reshape(planes, Cin).T * s1[None, :]          # (Cin, planes)
    w1m = jnp.pad(w1m, ((0, Cin_p - Cin), (0, Cmid_p - planes))).astype(jnp.bfloat16)
    b1p = jnp.pad(b1, (0, Cmid_p - planes)).reshape(1, Cmid_p).astype(jnp.float32)

    # conv2: OIDHW -> (kh, kw, kd, in, out), fold bn2 scale on out channel,
    # pad, then reshape to (9, 3*Cmid_p, Cmid_p): each (kh,kw) tap is one
    # matmul whose K axis is the [kd=0 | kd=1 | kd=2] channel groups, matching
    # the rolling scratch layout.
    w2t = jnp.transpose(params["w2"], (3, 4, 2, 1, 0)) * s2[None, None, None, None, :]
    w2t = jnp.pad(w2t, ((0, 0), (0, 0), (0, 0),
                        (0, Cmid_p - planes), (0, Cmid_p - planes)))
    w2t = w2t.reshape(9, 3 * Cmid_p, Cmid_p).astype(jnp.bfloat16)
    b2p = jnp.pad(b2, (0, Cmid_p - planes)).reshape(1, Cmid_p).astype(jnp.float32)

    w3m = params["w3"].reshape(Cout, planes).T * s3[None, :]         # (planes, Cout)
    w3m = jnp.pad(w3m, ((0, Cmid_p - planes), (0, Cout_p - Cout))).astype(jnp.bfloat16)
    b3p = jnp.pad(b3, (0, Cout_p - Cout)).reshape(1, Cout_p).astype(jnp.float32)

    kernel = functools.partial(_bottleneck_kernel, H, W, D, Cmid_p)

    out4d = pl.pallas_call(
        kernel,
        out_shape=jax.ShapeDtypeStruct((N, D, HW, Cout_p), jnp.bfloat16),
        grid_spec=pltpu.PrefetchScalarGridSpec(
            num_scalar_prefetch=0,
            grid=(N, D),
            in_specs=[
                # x plane 0 (fetched once per image: constant block index per n)
                pl.BlockSpec((None, None, HW, Cin_p), lambda n, d: (n, 0, 0, 0)),
                # x plane d+1 (clamped; the clamped fetch on the last step is unused)
                pl.BlockSpec((None, None, HW, Cin_p),
                             lambda n, d: (n, jnp.minimum(d + 1, D - 1), 0, 0)),
                pl.BlockSpec((Cin_p, Cmid_p), lambda n, d: (0, 0)),        # w1
                pl.BlockSpec((1, Cmid_p), lambda n, d: (0, 0)),            # b1
                pl.BlockSpec((9, 3 * Cmid_p, Cmid_p), lambda n, d: (0, 0, 0)),  # w2
                pl.BlockSpec((1, Cmid_p), lambda n, d: (0, 0)),            # b2
                pl.BlockSpec((Cmid_p, Cout_p), lambda n, d: (0, 0)),       # w3
                pl.BlockSpec((1, Cout_p), lambda n, d: (0, 0)),            # b3
            ],
            out_specs=pl.BlockSpec((None, None, HW, Cout_p),
                                   lambda n, d: (n, d, 0, 0)),
            scratch_shapes=[
                pltpu.VMEM((H + 2, W + 2, 3 * Cmid_p), jnp.float32),  # y1 planes
                pltpu.VMEM((HW, Cin_p), jnp.bfloat16),                # residual plane
            ],
        ),
        compiler_params=pltpu.CompilerParams(
            dimension_semantics=("parallel", "arbitrary"),
            vmem_limit_bytes=VMEM_LIMIT),
    )(x4d, x4d, w1m, b1p, w2t, b2p, w3m, b3p)

    out = out4d.reshape(N, D, H, W, Cout_p)[..., :Cout]
    # TODO(synk): in a stacked ResNet keep NDHWC channels-last between blocks;
    # this final re-layout only exists to match the PyTorch NCDHW contract.
    return jnp.transpose(out, (0, 4, 1, 2, 3)).astype(jnp.float32)


# ----------------------------------------------------------------------------
# Pure-JAX reference (eval-mode BN), correctness check only
# ----------------------------------------------------------------------------
def reference_forward(x, params, stride=1, eps=BN_EPS):
    def conv(x, w, s, p):
        return lax.conv_general_dilated(
            x, w, (s, s, s), [(p, p)] * 3,
            dimension_numbers=("NCDHW", "OIDHW", "NCDHW"))

    def bn(x, bnp):
        gamma, beta, rm, rv = bnp
        sh = (1, -1, 1, 1, 1)
        return (x - rm.reshape(sh)) / jnp.sqrt(rv.reshape(sh) + eps) \
            * gamma.reshape(sh) + beta.reshape(sh)

    out = jax.nn.relu(bn(conv(x, params["w1"], 1, 0), params["bn1"]))
    out = jax.nn.relu(bn(conv(out, params["w2"], stride, 1), params["bn2"]))
    out = bn(conv(out, params["w3"], 1, 0), params["bn3"])
    out = out + x                                       # downsample is None
    return jax.nn.relu(out)


if __name__ == "__main__":
    # Small shapes: batch=2, planes=4 -> in/out channels = 16, spatial = 8^3.
    N, planes, S = 2, 4, 8
    in_planes = planes * EXPANSION

    key = jax.random.PRNGKey(0)
    kx, kp = jax.random.split(key)
    x = jax.random.normal(kx, (N, in_planes, S, S, S), jnp.float32)
    params = init_params(kp, in_planes, planes)

    fwd = jax.jit(functools.partial(resnet_bottleneck_forward, stride=1))
    out = jax.block_until_ready(fwd(x, params))

    ref = jax.block_until_ready(reference_forward(x, params, stride=1))
    assert out.shape == (N, in_planes, S, S, S), out.shape
    # bf16 matmul inputs / bf16 residual+output (f32 accumulation) -> loose tol.
    assert jnp.allclose(out, ref, rtol=2e-2, atol=2e-2), \
        float(jnp.max(jnp.abs(out - ref)))

    print("KERNEL_OK")
</pallas_src>

<mosaic_0001>
module attributes {stable_mosaic.version = 11 : i64} {
  func.func @_bottleneck_kernel(%arg0: i32, %arg1: i32, %arg2: memref<1x1x64x128xbf16, #tpu.memory_space<vmem>>, %arg3: memref<1x1x64x128xbf16, #tpu.memory_space<vmem>>, %arg4: memref<128x128xbf16, #tpu.memory_space<vmem>>, %arg5: memref<1x128xf32, #tpu.memory_space<vmem>>, %arg6: memref<9x384x128xbf16, #tpu.memory_space<vmem>>, %arg7: memref<1x128xf32, #tpu.memory_space<vmem>>, %arg8: memref<128x128xbf16, #tpu.memory_space<vmem>>, %arg9: memref<1x128xf32, #tpu.memory_space<vmem>>, %arg10: memref<1x1x64x128xbf16, #tpu.memory_space<vmem>>, %arg11: memref<10x10x384xf32, #tpu.memory_space<vmem>>, %arg12: memref<64x128xbf16, #tpu.memory_space<vmem>>) attributes {dimension_semantics = [#tpu.dimension_semantics<parallel>, #tpu.dimension_semantics<arbitrary>], iteration_bounds = array<i64: 2, 8>, scalar_prefetch = 0 : i64, scratch_operands = 2 : i64, tpu.core_type = #tpu.core_type<tc>, window_params = [{transform_indices = @transform_0, window_bounds = array<i64: 1, 1, 64, 128>}, {transform_indices = @transform_1, window_bounds = array<i64: 1, 1, 64, 128>}, {pipeline_mode = #tpu.pipeline_mode<synchronous>, transform_indices = @transform_2, window_bounds = array<i64: 128, 128>}, {pipeline_mode = #tpu.pipeline_mode<synchronous>, transform_indices = @transform_3, window_bounds = array<i64: 1, 128>}, {pipeline_mode = #tpu.pipeline_mode<synchronous>, transform_indices = @transform_4, window_bounds = array<i64: 9, 384, 128>}, {pipeline_mode = #tpu.pipeline_mode<synchronous>, transform_indices = @transform_5, window_bounds = array<i64: 1, 128>}, {pipeline_mode = #tpu.pipeline_mode<synchronous>, transform_indices = @transform_6, window_bounds = array<i64: 128, 128>}, {pipeline_mode = #tpu.pipeline_mode<synchronous>, transform_indices = @transform_7, window_bounds = array<i64: 1, 128>}, {transform_indices = @transform_8, window_bounds = array<i64: 1, 1, 64, 128>}]} {
    %c0_i32 = arith.constant 0 : i32
    %0 = arith.cmpi eq, %arg1, %c0_i32 : i32
    %1 = arith.extui %0 : i1 to i32
    %c0_i32_0 = arith.constant 0 : i32
    %2 = arith.cmpi ne, %1, %c0_i32_0 : i32
    scf.if %2 {
      %cst_76 = arith.constant 0.000000e+00 : f32
      %98 = vector.broadcast %cst_76 : f32 to vector<10x10x384xf32>
      %c0_77 = arith.constant 0 : index
      %c0_78 = arith.constant 0 : index
      %c0_79 = arith.constant 0 : index
      %99 = vector.load %arg11[%c0_77, %c0_78, %c0_79] : memref<10x10x384xf32, #tpu.memory_space<vmem>>, vector<10x10x384xf32>
      tpu.vector_store %arg11[%c0_77, %c0_78, %c0_79], %98 {strides = array<i32>} : memref<10x10x384xf32, #tpu.memory_space<vmem>>, vector<10x10x384xf32>,
      %c0_80 = arith.constant 0 : index
      %c0_81 = arith.constant 0 : index
      %c0_82 = arith.constant 0 : index
      %c0_83 = arith.constant 0 : index
      %100 = vector.load %arg2[%c0_80, %c0_81, %c0_82, %c0_83] : memref<1x1x64x128xbf16, #tpu.memory_space<vmem>>, vector<1x1x64x128xbf16>
      %101 = vector.shape_cast %100 : vector<1x1x64x128xbf16> to vector<64x128xbf16>
      %c0_84 = arith.constant 0 : index
      %c0_85 = arith.constant 0 : index
      %102 = vector.load %arg4[%c0_84, %c0_85] : memref<128x128xbf16, #tpu.memory_space<vmem>>, vector<128x128xbf16>
      %cst_86 = arith.constant dense<0.000000e+00> : vector<64x128xf32>
      %103 = tpu.matmul %101, %102, %cst_86 {dimension_numbers = #tpu.dot_dimension_numbers<[1], [0], [0], [1], [0, 0, 1, 1], [], []>} : vector<64x128xbf16>, vector<128x128xbf16>, vector<64x128xf32> -> vector<64x128xf32>
      %c0_87 = arith.constant 0 : index
      %c0_88 = arith.constant 0 : index
      %104 = vector.load %arg5[%c0_87, %c0_88] : memref<1x128xf32, #tpu.memory_space<vmem>>, vector<1x128xf32>
      %105 = vector.broadcast %104 : vector<1x128xf32> to vector<64x128xf32>
      %106 = arith.addf %103, %105 : vector<64x128xf32>
      %cst_89 = arith.constant 0.000000e+00 : f32
      %107 = vector.broadcast %cst_89 : f32 to vector<64x128xf32>
      %108 = arith.maximumf %106, %107 : vector<64x128xf32>
      %109 = vector.shape_cast %108 : vector<64x128xf32> to vector<8x8x128xf32>
      %c1_90 = arith.constant 1 : index
      %c1_91 = arith.constant 1 : index
      %c128 = arith.constant 128 : index
      %110 = vector.load %arg11[%c1_90, %c1_91, %c128] : memref<10x10x384xf32, #tpu.memory_space<vmem>>, vector<8x8x128xf32>
      tpu.vector_store %arg11[%c1_90, %c1_91, %c128], %109 {strides = array<i32>} : memref<10x10x384xf32, #tpu.memory_space<vmem>>, vector<8x8x128xf32>,
      %c0_92 = arith.constant 0 : index
      %c0_93 = arith.constant 0 : index
      %c0_94 = arith.constant 0 : index
      %c0_95 = arith.constant 0 : index
      %111 = vector.load %arg2[%c0_92, %c0_93, %c0_94, %c0_95] : memref<1x1x64x128xbf16, #tpu.memory_space<vmem>>, vector<1x1x64x128xbf16>
      %112 = vector.shape_cast %111 : vector<1x1x64x128xbf16> to vector<64x128xbf16>
      %c0_96 = arith.constant 0 : index
      %c0_97 = arith.constant 0 : index
      %113 = vector.load %arg12[%c0_96, %c0_97] : memref<64x128xbf16, #tpu.memory_space<vmem>>, vector<64x128xbf16>
      tpu.vector_store %arg12[%c0_96, %c0_97], %112 {strides = array<i32>} : memref<64x128xbf16, #tpu.memory_space<vmem>>, vector<64x128xbf16>,
    } else {
    }
    %c0_i32_1 = arith.constant 0 : i32
    %3 = arith.cmpi sgt, %arg1, %c0_i32_1 : i32
    %4 = arith.extui %3 : i1 to i32
    %c0_i32_2 = arith.constant 0 : i32
    %5 = arith.cmpi ne, %4, %c0_i32_2 : i32
    scf.if %5 {
      %c0_76 = arith.constant 0 : index
      %c0_77 = arith.constant 0 : index
      %c128 = arith.constant 128 : index
      %98 = vector.load %arg11[%c0_76, %c0_77, %c128] : memref<10x10x384xf32, #tpu.memory_space<vmem>>, vector<10x10x256xf32>
      %c0_78 = arith.constant 0 : index
      %c0_79 = arith.constant 0 : index
      %c0_80 = arith.constant 0 : index
      %99 = vector.load %arg11[%c0_78, %c0_79, %c0_80] : memref<10x10x384xf32, #tpu.memory_space<vmem>>, vector<10x10x256xf32>
      tpu.vector_store %arg11[%c0_78, %c0_79, %c0_80], %98 {strides = array<i32>} : memref<10x10x384xf32, #tpu.memory_space<vmem>>, vector<10x10x256xf32>,
    } else {
    }
    %c0 = arith.constant 0 : index
    %c0_3 = arith.constant 0 : index
    %6 = vector.load %arg12[%c0, %c0_3] : memref<64x128xbf16, #tpu.memory_space<vmem>>, vector<64x128xbf16>
    %7 = arith.extf %6 : vector<64x128xbf16> to vector<64x128xf32>
    %c1_i32 = arith.constant 1 : i32
    %8 = arith.addi %arg1, %c1_i32 : i32
    %c8_i32 = arith.constant 8 : i32
    %9 = arith.cmpi slt, %8, %c8_i32 : i32
    %10 = arith.extui %9 : i1 to i32
    %c0_i32_4 = arith.constant 0 : i32
    %11 = arith.cmpi ne, %10, %c0_i32_4 : i32
    scf.if %11 {
      %c0_76 = arith.constant 0 : index
      %c0_77 = arith.constant 0 : index
      %c0_78 = arith.constant 0 : index
      %c0_79 = arith.constant 0 : index
      %98 = vector.load %arg3[%c0_76, %c0_77, %c0_78, %c0_79] : memref<1x1x64x128xbf16, #tpu.memory_space<vmem>>, vector<1x1x64x128xbf16>
      %99 = vector.shape_cast %98 : vector<1x1x64x128xbf16> to vector<64x128xbf16>
      %c0_80 = arith.constant 0 : index
      %c0_81 = arith.constant 0 : index
      %100 = vector.load %arg4[%c0_80, %c0_81] : memref<128x128xbf16, #tpu.memory_space<vmem>>, vector<128x128xbf16>
      %cst_82 = arith.constant dense<0.000000e+00> : vector<64x128xf32>
      %101 = tpu.matmul %99, %100, %cst_82 {dimension_numbers = #tpu.dot_dimension_numbers<[1], [0], [0], [1], [0, 0, 1, 1], [], []>} : vector<64x128xbf16>, vector<128x128xbf16>, vector<64x128xf32> -> vector<64x128xf32>
      %c0_83 = arith.constant 0 : index
      %c0_84 = arith.constant 0 : index
      %102 = vector.load %arg5[%c0_83, %c0_84] : memref<1x128xf32, #tpu.memory_space<vmem>>, vector<1x128xf32>
      %103 = vector.broadcast %102 : vector<1x128xf32> to vector<64x128xf32>
      %104 = arith.addf %101, %103 : vector<64x128xf32>
      %cst_85 = arith.constant 0.000000e+00 : f32
      %105 = vector.broadcast %cst_85 : f32 to vector<64x128xf32>
      %106 = arith.maximumf %104, %105 : vector<64x128xf32>
      %107 = vector.shape_cast %106 : vector<64x128xf32> to vector<8x8x128xf32>
      %c1_86 = arith.constant 1 : index
      %c1_87 = arith.constant 1 : index
      %c256 = arith.constant 256 : index
      %108 = vector.load %arg11[%c1_86, %c1_87, %c256] : memref<10x10x384xf32, #tpu.memory_space<vmem>>, vector<8x8x128xf32>
      tpu.vector_store %arg11[%c1_86, %c1_87, %c256], %107 {strides = array<i32>} : memref<10x10x384xf32, #tpu.memory_space<vmem>>, vector<8x8x128xf32>,
      %c0_88 = arith.constant 0 : index
      %c0_89 = arith.constant 0 : index
      %c0_90 = arith.constant 0 : index
      %c0_91 = arith.constant 0 : index
      %109 = vector.load %arg3[%c0_88, %c0_89, %c0_90, %c0_91] : memref<1x1x64x128xbf16, #tpu.memory_space<vmem>>, vector<1x1x64x128xbf16>
      %110 = vector.shape_cast %109 : vector<1x1x64x128xbf16> to vector<64x128xbf16>
      %c0_92 = arith.constant 0 : index
      %c0_93 = arith.constant 0 : index
      %111 = vector.load %arg12[%c0_92, %c0_93] : memref<64x128xbf16, #tpu.memory_space<vmem>>, vector<64x128xbf16>
      tpu.vector_store %arg12[%c0_92, %c0_93], %110 {strides = array<i32>} : memref<64x128xbf16, #tpu.memory_space<vmem>>, vector<64x128xbf16>,
    } else {
    }
    %c1_i32_5 = arith.constant 1 : i32
    %12 = arith.addi %arg1, %c1_i32_5 : i32
    %c8_i32_6 = arith.constant 8 : i32
    %13 = arith.cmpi sge, %12, %c8_i32_6 : i32
    %14 = arith.extui %13 : i1 to i32
    %c0_i32_7 = arith.constant 0 : i32
    %15 = arith.cmpi ne, %14, %c0_i32_7 : i32
    scf.if %15 {
      %cst_76 = arith.constant 0.000000e+00 : f32
      %98 = vector.broadcast %cst_76 : f32 to vector<10x10x128xf32>
      %c0_77 = arith.constant 0 : index
      %c0_78 = arith.constant 0 : index
      %c256 = arith.constant 256 : index
      %99 = vector.load %arg11[%c0_77, %c0_78, %c256] : memref<10x10x384xf32, #tpu.memory_space<vmem>>, vector<10x10x128xf32>
      tpu.vector_store %arg11[%c0_77, %c0_78, %c256], %98 {strides = array<i32>} : memref<10x10x384xf32, #tpu.memory_space<vmem>>, vector<10x10x128xf32>,
    } else {
    }
    %cst = arith.constant 0.000000e+00 : f32
    %16 = vector.broadcast %cst : f32 to vector<64x128xf32>
    %c0_8 = arith.constant 0 : index
    %c0_9 = arith.constant 0 : index
    %c0_10 = arith.constant 0 : index
    %17 = vector.load %arg11[%c0_8, %c0_9, %c0_10] : memref<10x10x384xf32, #tpu.memory_space<vmem>>, vector<8x8x384xf32>
    %18 = arith.truncf %17 : vector<8x8x384xf32> to vector<8x8x384xbf16>
    %19 = vector.shape_cast %18 : vector<8x8x384xbf16> to vector<64x384xbf16>
    %c0_11 = arith.constant 0 : index
    %c0_12 = arith.constant 0 : index
    %c0_13 = arith.constant 0 : index
    %20 = vector.load %arg6[%c0_11, %c0_12, %c0_13] : memref<9x384x128xbf16, #tpu.memory_space<vmem>>, vector<1x384x128xbf16>
    %21 = vector.shape_cast %20 : vector<1x384x128xbf16> to vector<384x128xbf16>
    %cst_14 = arith.constant dense<0.000000e+00> : vector<64x128xf32>
    %22 = tpu.matmul %19, %21, %cst_14 {dimension_numbers = #tpu.dot_dimension_numbers<[1], [0], [0], [1], [0, 0, 1, 1], [], []>} : vector<64x384xbf16>, vector<384x128xbf16>, vector<64x128xf32> -> vector<64x128xf32>
    %23 = arith.addf %16, %22 : vector<64x128xf32>
    %c0_15 = arith.constant 0 : index
    %c1 = arith.constant 1 : index
    %c0_16 = arith.constant 0 : index
    %24 = vector.load %arg11[%c0_15, %c1, %c0_16] : memref<10x10x384xf32, #tpu.memory_space<vmem>>, vector<8x8x384xf32>
    %25 = arith.truncf %24 : vector<8x8x384xf32> to vector<8x8x384xbf16>
    %26 = vector.shape_cast %25 : vector<8x8x384xbf16> to vector<64x384xbf16>
    %c1_17 = arith.constant 1 : index
    %c0_18 = arith.constant 0 : index
    %c0_19 = arith.constant 0 : index
    %27 = vector.load %arg6[%c1_17, %c0_18, %c0_19] : memref<9x384x128xbf16, #tpu.memory_space<vmem>>, vector<1x384x128xbf16>
    %28 = vector.shape_cast %27 : vector<1x384x128xbf16> to vector<384x128xbf16>
    %cst_20 = arith.constant dense<0.000000e+00> : vector<64x128xf32>
    %29 = tpu.matmul %26, %28, %cst_20 {dimension_numbers = #tpu.dot_dimension_numbers<[1], [0], [0], [1], [0, 0, 1, 1], [], []>} : vector<64x384xbf16>, vector<384x128xbf16>, vector<64x128xf32> -> vector<64x128xf32>
    %30 = arith.addf %23, %29 : vector<64x128xf32>
    %c0_21 = arith.constant 0 : index
    %c2 = arith.constant 2 : index
    %c0_22 = arith.constant 0 : index
    %31 = vector.load %arg11[%c0_21, %c2, %c0_22] : memref<10x10x384xf32, #tpu.memory_space<vmem>>, vector<8x8x384xf32>
    %32 = arith.truncf %31 : vector<8x8x384xf32> to vector<8x8x384xbf16>
    %33 = vector.shape_cast %32 : vector<8x8x384xbf16> to vector<64x384xbf16>
    %c2_23 = arith.constant 2 : index
    %c0_24 = arith.constant 0 : index
    %c0_25 = arith.constant 0 : index
    %34 = vector.load %arg6[%c2_23, %c0_24, %c0_25] : memref<9x384x128xbf16, #tpu.memory_space<vmem>>, vector<1x384x128xbf16>
    %35 = vector.shape_cast %34 : vector<1x384x128xbf16> to vector<384x128xbf16>
    %cst_26 = arith.constant dense<0.000000e+00> : vector<64x128xf32>
    %36 = tpu.matmul %33, %35, %cst_26 {dimension_numbers = #tpu.dot_dimension_numbers<[1], [0], [0], [1], [0, 0, 1, 1], [], []>} : vector<64x384xbf16>, vector<384x128xbf16>, vector<64x128xf32> -> vector<64x128xf32>
    %37 = arith.addf %30, %36 : vector<64x128xf32>
    %c1_27 = arith.constant 1 : index
    %c0_28 = arith.constant 0 : index
    %c0_29 = arith.constant 0 : index
    %38 = vector.load %arg11[%c1_27, %c0_28, %c0_29] : memref<10x10x384xf32, #tpu.memory_space<vmem>>, vector<8x8x384xf32>
    %39 = arith.truncf %38 : vector<8x8x384xf32> to vector<8x8x384xbf16>
    %40 = vector.shape_cast %39 : vector<8x8x384xbf16> to vector<64x384xbf16>
    %c3 = arith.constant 3 : index
    %c0_30 = arith.constant 0 : index
    %c0_31 = arith.constant 0 : index
    %41 = vector.load %arg6[%c3, %c0_30, %c0_31] : memref<9x384x128xbf16, #tpu.memory_space<vmem>>, vector<1x384x128xbf16>
    %42 = vector.shape_cast %41 : vector<1x384x128xbf16> to vector<384x128xbf16>
    %cst_32 = arith.constant dense<0.000000e+00> : vector<64x128xf32>
    %43 = tpu.matmul %40, %42, %cst_32 {dimension_numbers = #tpu.dot_dimension_numbers<[1], [0], [0], [1], [0, 0, 1, 1], [], []>} : vector<64x384xbf16>, vector<384x128xbf16>, vector<64x128xf32> -> vector<64x128xf32>
    %44 = arith.addf %37, %43 : vector<64x128xf32>
    %c1_33 = arith.constant 1 : index
    %c1_34 = arith.constant 1 : index
    %c0_35 = arith.constant 0 : index
    %45 = vector.load %arg11[%c1_33, %c1_34, %c0_35] : memref<10x10x384xf32, #tpu.memory_space<vmem>>, vector<8x8x384xf32>
    %46 = arith.truncf %45 : vector<8x8x384xf32> to vector<8x8x384xbf16>
    %47 = vector.shape_cast %46 : vector<8x8x384xbf16> to vector<64x384xbf16>
    %c4 = arith.constant 4 : index
    %c0_36 = arith.constant 0 : index
    %c0_37 = arith.constant 0 : index
    %48 = vector.load %arg6[%c4, %c0_36, %c0_37] : memref<9x384x128xbf16, #tpu.memory_space<vmem>>, vector<1x384x128xbf16>
    %49 = vector.shape_cast %48 : vector<1x384x128xbf16> to vector<384x128xbf16>
    %cst_38 = arith.constant dense<0.000000e+00> : vector<64x128xf32>
    %50 = tpu.matmul %47, %49, %cst_38 {dimension_numbers = #tpu.dot_dimension_numbers<[1], [0], [0], [1], [0, 0, 1, 1], [], []>} : vector<64x384xbf16>, vector<384x128xbf16>, vector<64x128xf32> -> vector<64x128xf32>
    %51 = arith.addf %44, %50 : vector<64x128xf32>
    %c1_39 = arith.constant 1 : index
    %c2_40 = arith.constant 2 : index
    %c0_41 = arith.constant 0 : index
    %52 = vector.load %arg11[%c1_39, %c2_40, %c0_41] : memref<10x10x384xf32, #tpu.memory_space<vmem>>, vector<8x8x384xf32>
    %53 = arith.truncf %52 : vector<8x8x384xf32> to vector<8x8x384xbf16>
    %54 = vector.shape_cast %53 : vector<8x8x384xbf16> to vector<64x384xbf16>
    %c5 = arith.constant 5 : index
    %c0_42 = arith.constant 0 : index
    %c0_43 = arith.constant 0 : index
    %55 = vector.load %arg6[%c5, %c0_42, %c0_43] : memref<9x384x128xbf16, #tpu.memory_space<vmem>>, vector<1x384x128xbf16>
    %56 = vector.shape_cast %55 : vector<1x384x128xbf16> to vector<384x128xbf16>
    %cst_44 = arith.constant dense<0.000000e+00> : vector<64x128xf32>
    %57 = tpu.matmul %54, %56, %cst_44 {dimension_numbers = #tpu.dot_dimension_numbers<[1], [0], [0], [1], [0, 0, 1, 1], [], []>} : vector<64x384xbf16>, vector<384x128xbf16>, vector<64x128xf32> -> vector<64x128xf32>
    %58 = arith.addf %51, %57 : vector<64x128xf32>
    %c2_45 = arith.constant 2 : index
    %c0_46 = arith.constant 0 : index
    %c0_47 = arith.constant 0 : index
    %59 = vector.load %arg11[%c2_45, %c0_46, %c0_47] : memref<10x10x384xf32, #tpu.memory_space<vmem>>, vector<8x8x384xf32>
    %60 = arith.truncf %59 : vector<8x8x384xf32> to vector<8x8x384xbf16>
    %61 = vector.shape_cast %60 : vector<8x8x384xbf16> to vector<64x384xbf16>
    %c6 = arith.constant 6 : index
    %c0_48 = arith.constant 0 : index
    %c0_49 = arith.constant 0 : index
    %62 = vector.load %arg6[%c6, %c0_48, %c0_49] : memref<9x384x128xbf16, #tpu.memory_space<vmem>>, vector<1x384x128xbf16>
    %63 = vector.shape_cast %62 : vector<1x384x128xbf16> to vector<384x128xbf16>
    %cst_50 = arith.constant dense<0.000000e+00> : vector<64x128xf32>
    %64 = tpu.matmul %61, %63, %cst_50 {dimension_numbers = #tpu.dot_dimension_numbers<[1], [0], [0], [1], [0, 0, 1, 1], [], []>} : vector<64x384xbf16>, vector<384x128xbf16>, vector<64x128xf32> -> vector<64x128xf32>
    %65 = arith.addf %58, %64 : vector<64x128xf32>
    %c2_51 = arith.constant 2 : index
    %c1_52 = arith.constant 1 : index
    %c0_53 = arith.constant 0 : index
    %66 = vector.load %arg11[%c2_51, %c1_52, %c0_53] : memref<10x10x384xf32, #tpu.memory_space<vmem>>, vector<8x8x384xf32>
    %67 = arith.truncf %66 : vector<8x8x384xf32> to vector<8x8x384xbf16>
    %68 = vector.shape_cast %67 : vector<8x8x384xbf16> to vector<64x384xbf16>
    %c7 = arith.constant 7 : index
    %c0_54 = arith.constant 0 : index
    %c0_55 = arith.constant 0 : index
    %69 = vector.load %arg6[%c7, %c0_54, %c0_55] : memref<9x384x128xbf16, #tpu.memory_space<vmem>>, vector<1x384x128xbf16>
    %70 = vector.shape_cast %69 : vector<1x384x128xbf16> to vector<384x128xbf16>
    %cst_56 = arith.constant dense<0.000000e+00> : vector<64x128xf32>
    %71 = tpu.matmul %68, %70, %cst_56 {dimension_numbers = #tpu.dot_dimension_numbers<[1], [0], [0], [1], [0, 0, 1, 1], [], []>} : vector<64x384xbf16>, vector<384x128xbf16>, vector<64x128xf32> -> vector<64x128xf32>
    %72 = arith.addf %65, %71 : vector<64x128xf32>
    %c2_57 = arith.constant 2 : index
    %c2_58 = arith.constant 2 : index
    %c0_59 = arith.constant 0 : index
    %73 = vector.load %arg11[%c2_57, %c2_58, %c0_59] : memref<10x10x384xf32, #tpu.memory_space<vmem>>, vector<8x8x384xf32>
    %74 = arith.truncf %73 : vector<8x8x384xf32> to vector<8x8x384xbf16>
    %75 = vector.shape_cast %74 : vector<8x8x384xbf16> to vector<64x384xbf16>
    %c8 = arith.constant 8 : index
    %c0_60 = arith.constant 0 : index
    %c0_61 = arith.constant 0 : index
    %76 = vector.load %arg6[%c8, %c0_60, %c0_61] : memref<9x384x128xbf16, #tpu.memory_space<vmem>>, vector<1x384x128xbf16>
    %77 = vector.shape_cast %76 : vector<1x384x128xbf16> to vector<384x128xbf16>
    %cst_62 = arith.constant dense<0.000000e+00> : vector<64x128xf32>
    %78 = tpu.matmul %75, %77, %cst_62 {dimension_numbers = #tpu.dot_dimension_numbers<[1], [0], [0], [1], [0, 0, 1, 1], [], []>} : vector<64x384xbf16>, vector<384x128xbf16>, vector<64x128xf32> -> vector<64x128xf32>
    %79 = arith.addf %72, %78 : vector<64x128xf32>
    %c0_63 = arith.constant 0 : index
    %c0_64 = arith.constant 0 : index
    %80 = vector.load %arg7[%c0_63, %c0_64] : memref<1x128xf32, #tpu.memory_space<vmem>>, vector<1x128xf32>
    %81 = vector.broadcast %80 : vector<1x128xf32> to vector<64x128xf32>
    %82 = arith.addf %79, %81 : vector<64x128xf32>
    %cst_65 = arith.constant 0.000000e+00 : f32
    %83 = vector.broadcast %cst_65 : f32 to vector<64x128xf32>
    %84 = arith.maximumf %82, %83 : vector<64x128xf32>
    %85 = arith.truncf %84 : vector<64x128xf32> to vector<64x128xbf16>
    %c0_66 = arith.constant 0 : index
    %c0_67 = arith.constant 0 : index
    %86 = vector.load %arg8[%c0_66, %c0_67] : memref<128x128xbf16, #tpu.memory_space<vmem>>, vector<128x128xbf16>
    %cst_68 = arith.constant dense<0.000000e+00> : vector<64x128xf32>
    %87 = tpu.matmul %85, %86, %cst_68 {dimension_numbers = #tpu.dot_dimension_numbers<[1], [0], [0], [1], [0, 0, 1, 1], [], []>} : vector<64x128xbf16>, vector<128x128xbf16>, vector<64x128xf32> -> vector<64x128xf32>
    %c0_69 = arith.constant 0 : index
    %c0_70 = arith.constant 0 : index
    %88 = vector.load %arg9[%c0_69, %c0_70] : memref<1x128xf32, #tpu.memory_space<vmem>>, vector<1x128xf32>
    %89 = vector.broadcast %88 : vector<1x128xf32> to vector<64x128xf32>
    %90 = arith.addf %87, %89 : vector<64x128xf32>
    %91 = arith.addf %90, %7 : vector<64x128xf32>
    %cst_71 = arith.constant 0.000000e+00 : f32
    %92 = vector.broadcast %cst_71 : f32 to vector<64x128xf32>
    %93 = arith.maximumf %91, %92 : vector<64x128xf32>
    %94 = arith.truncf %93 : vector<64x128xf32> to vector<64x128xbf16>
    %c0_72 = arith.constant 0 : index
    %c0_73 = arith.constant 0 : index
    %c0_74 = arith.constant 0 : index
    %c0_75 = arith.constant 0 : index
    %95 = vector.load %arg10[%c0_72, %c0_73, %c0_74, %c0_75] : memref<1x1x64x128xbf16, #tpu.memory_space<vmem>>, vector<1x1x64x128xbf16>
    %96 = vector.shape_cast %95 : vector<1x1x64x128xbf16> to vector<64x128xbf16>
    %97 = vector.shape_cast %94 : vector<64x128xbf16> to vector<1x1x64x128xbf16>
    tpu.vector_store %arg10[%c0_72, %c0_73, %c0_74, %c0_75], %97 {strides = array<i32>} : memref<1x1x64x128xbf16, #tpu.memory_space<vmem>>, vector<1x1x64x128xbf16>,
    return
  }
  func.func @transform_0(%arg0: i32, %arg1: i32) -> (i32, i32, i32, i32) {
    %c0_i32 = arith.constant 0 : i32
    %c0_i32_0 = arith.constant 0 : i32
    %c0_i32_1 = arith.constant 0 : i32
    %c0_i32_2 = arith.constant 0 : i32
    return %arg0, %c0_i32, %c0_i32_0, %c0_i32_1 : i32, i32, i32, i32
  }
  func.func @transform_1(%arg0: i32, %arg1: i32) -> (i32, i32, i32, i32) {
    %c1_i32 = arith.constant 1 : i32
    %0 = arith.addi %arg1, %c1_i32 : i32
    %c7_i32 = arith.constant 7 : i32
    %1 = arith.minsi %0, %c7_i32 : i32
    %c0_i32 = arith.constant 0 : i32
    %c0_i32_0 = arith.constant 0 : i32
    %c0_i32_1 = arith.constant 0 : i32
    return %arg0, %1, %c0_i32, %c0_i32_0 : i32, i32, i32, i32
  }
  func.func @transform_2(%arg0: i32, %arg1: i32) -> (i32, i32) {
    %c0_i32 = arith.constant 0 : i32
    %c0_i32_0 = arith.constant 0 : i32
    %c0_i32_1 = arith.constant 0 : i32
    return %c0_i32, %c0_i32_0 : i32, i32
  }
  func.func @transform_3(%arg0: i32, %arg1: i32) -> (i32, i32) {
    %c0_i32 = arith.constant 0 : i32
    %c0_i32_0 = arith.constant 0 : i32
    %c0_i32_1 = arith.constant 0 : i32
    return %c0_i32, %c0_i32_0 : i32, i32
  }
  func.func @transform_4(%arg0: i32, %arg1: i32) -> (i32, i32, i32) {
    %c0_i32 = arith.constant 0 : i32
    %c0_i32_0 = arith.constant 0 : i32
    %c0_i32_1 = arith.constant 0 : i32
    %c0_i32_2 = arith.constant 0 : i32
    return %c0_i32, %c0_i32_0, %c0_i32_1 : i32, i32, i32
  }
  func.func @transform_5(%arg0: i32, %arg1: i32) -> (i32, i32) {
    %c0_i32 = arith.constant 0 : i32
    %c0_i32_0 = arith.constant 0 : i32
    %c0_i32_1 = arith.constant 0 : i32
    return %c0_i32, %c0_i32_0 : i32, i32
  }
  func.func @transform_6(%arg0: i32, %arg1: i32) -> (i32, i32) {
    %c0_i32 = arith.constant 0 : i32
    %c0_i32_0 = arith.constant 0 : i32
    %c0_i32_1 = arith.constant 0 : i32
    return %c0_i32, %c0_i32_0 : i32, i32
  }
  func.func @transform_7(%arg0: i32, %arg1: i32) -> (i32, i32) {
    %c0_i32 = arith.constant 0 : i32
    %c0_i32_0 = arith.constant 0 : i32
    %c0_i32_1 = arith.constant 0 : i32
    return %c0_i32, %c0_i32_0 : i32, i32
  }
  func.func @transform_8(%arg0: i32, %arg1: i32) -> (i32, i32, i32, i32) {
    %c0_i32 = arith.constant 0 : i32
    %c0_i32_0 = arith.constant 0 : i32
    %c0_i32_1 = arith.constant 0 : i32
    return %arg0, %arg1, %c0_i32, %c0_i32_0 : i32, i32, i32, i32
  }
}

</mosaic_0001>

<bundles_post_ra>
// kernel: resnet_bottleneck_forward.1
= control target key start
LH: loop header
LB: loop body
LE: loop exit
PB: predicated region body
PF: predicated region fallthrough
CT: control target
= control target key end

     0   :  { %s9417_s27 = smov 0   ;;  %s9419_s28 = smov 0   ;;  %s10916_s0 = inlined_call_operand.vmem [shape: bf16[2,8,64,128], index: 0, kind: input, shape index: {}, may-alias: {0,1}]   ;;  %s10917_s1 = inlined_call_operand.vmem [shape: bf16[2,8,64,128], index: 1, kind: input, shape index: {}, may-alias: {0,1}]   ;;  %s10918_s2 = inlined_call_operand.vmem [shape: bf16[128,128], index: 2, kind: input, shape index: {}]   ;;  %s10919_s3 = inlined_call_operand.vmem [shape: f32[1,128], index: 3, kind: input, shape index: {}]   ;;  %s10920_s4 = inlined_call_operand.vmem [shape: bf16[9,384,128], index: 4, kind: input, shape index: {}]   ;;  %s10921_s5 = inlined_call_operand.vmem [shape: f32[1,128], index: 5, kind: input, shape index: {}]   ;;  %s10922_s6 = inlined_call_operand.vmem [shape: bf16[128,128], index: 6, kind: input, shape index: {}]   ;;  %s10923_s7 = inlined_call_operand.vmem [shape: f32[1,128], index: 7, kind: input, shape index: {}]   ;;  %s10924_s8 = inlined_call_operand.vmem [shape: bf16[2,8,64,128], index: 8, kind: output, shape index: {}]  }
   0x1   :  { %s9421_s29 = smov 0   ;;  %s9423_s30 = smov 0  }
   0x2   :  { %s9425_s9 = smov 0  }
   0x3 LB: > { %10931 = sst [smem:[#allocation4_spill]] %s9360_s29  ;;  %s27_s10 = sadd.s32 1, %s9360_s29  ;;  %s9368_s9 = sphi %s9425_s9, %s18_s9   ;;  %s9364_s30 = sphi %s9423_s30, %s10955_s30   ;;  %s9360_s29 = sphi %s9421_s29, %s10954_s29   ;;  %s9356_s28 = sphi %s9419_s28, %s10953_s28   ;;  %s9352_s27 = sphi %s9417_s27, %s10952_s27  }
   0x4   : > { %10932 = sst [smem:[#allocation5_spill]] %s9364_s30  ;;  %s30_s11 = sadd.s32 1, %s9364_s30 }
   0x5   : > { %p28_p0 = scmp.ge.s32.totalorder %s27_s10, 8  ;;  %p6911_p1 = scmp.ge.s32.totalorder %s9368_s9, 1 }
   0x6   : > { %p304_p2 = scmp.lt.s32.totalorder %s9368_s9, 17 }
   0x7   : > { %s10957_s10 = smov (%p28_p0, %s27_s10), 0  ;;  %s10959_s11 = smov (!%p28_p0, %s30_s11), %s9364_s30 }
   0x8   : > { %10933 = sst [smem:[#allocation6_spill]] %s10957_s10  ;;  %p305_p3 = pnand %p6911_p1, %p304_p2 }
   0x9   : > { %p32_p4 = scmp.ge.s32.totalorder %s10959_s11, 2 }
   0xa   : > { %308 = sbr.rel (%p305_p3) target bundleno = 1362 (0x552), region = 52 }
   0xb   : > { %s10961_s11 = smov (%p32_p4, %s10959_s11), 0 }
   0xc   : > { %10934 = sst [smem:[#allocation7_spill]] %s10961_s11 }
   0xf   : > { %p354_p5 = scmp.lt.s32.totalorder %s9356_s28, 1  ;;  %s9450_s12 = sadd.s32 1, %s9352_s27 }
  0x10   : > { %p360_p6 = scmp.lt.s32.totalorder %s9450_s12, 7  ;;  %p376_p7 = scmp.lt.s32.totalorder %s9352_s27, 7 }
  0x11   : > { %s10963_s28 = smov (!%p354_p5, %s9356_s28), 1  ;;  %p6923_p8 = scmp.ne.s32.totalorder %s9352_s27, 0 }
  0x12   : > { %s361_s13 = scalar_select %p360_p6, %s9450_s12, 7 }
  0x13   : > { %s7921_s14 = sshll.u32 %s10963_s28, 8  ;;  %s6918_s18 = sshll.u32 %s10963_s28, 6 }
  0x14   : > { %s9458_s17 = scalar_lea.vmem %s10916_s0, %s7921_s14  ;;  %s10965_s13 = smov (!%p360_p6, %s361_s13), 7 }
  0x15   : > { %s377_s19 = scalar_select %p376_p7, %s9352_s27, 7 }
  0x16   : > { %s6917_s20 = sshll.u32 %s10965_s13, 3  ;;  %387 = sbr.rel (%p6923_p8) target bundleno = 268 (0x10c), region = 56 }
  0x17   : > { %s368_s21 = sadd.s32 %s6918_s18, %s6917_s20  ;;  %s6920_s22 = sshll.u32 %s377_s19, 3 }
  0x18   : > { %s6919_s23 = sshll.u32 %s368_s21, 2  ;;  %s380_s24 = sadd.s32 %s6920_s22, %s6918_s18 }
  0x19   : > { %s9464_s11 = scalar_lea.vmem %s10917_s1, %s6919_s23  ;;  %s6922_s10 = sshll.u32 %s380_s24, 2 }
  0x1a   : > { %s9469_s15 = scalar_lea.vmem %s10924_s8, %s6922_s10 }
  0x1b   : > { %v9475_v0 = vld [vmem:[%s10918_s2 + $0x38] sm:$0xff]   ;;  %v9480_v1 = vld [vmem:[%s10918_s2 + $0x30] sm:$0xff]   ;;  %v9370_v2 = vmov 0.0   ;;  %v9084_v3 = vld [vmem:[%s10918_s2 + $0x28] sm:$0xff]  }
  0x1c   : > { %388 = vst [vmem:[#allocation2 + $0xb0] sm:$0xff] %v9370_v2  ;;  %389 = vst [vmem:[#allocation2 + $0x1b0] sm:$0xff] %v9370_v2  ;;  %8704 = vmatprep.subr.bf16.mxu0 %v9475_v0  ;;  %8992 = vmatprep.subr.bf16.mxu1 %v9475_v0  ;;  %v9085_v4 = vld [vmem:[%s10918_s2 + $0x20] sm:$0xff]   ;;  %v9091_v6 = vld [vmem:[%s9458_s17 + $0x10] sm:$0xff]  }
  0x1d   : > { %390 = vst [vmem:[#allocation2 + $0xd8] sm:$0xff] %v9370_v2  ;;  %391 = vst [vmem:[#allocation2 + $0x18] sm:$0x3] %v9370_v2  ;;  %8705 = vmatpush3.bf16.msra.mxu0 %v9475_v0  ;;  %9000 = vmatpush3.bf16.msra.mxu1 %v9475_v0  ;;  %v9090_v5 = vld [vmem:[%s9458_s17] sm:$0xff]   ;;  %v9086_v7 = vld [vmem:[%s10918_s2 + $0x18] sm:$0xff]  }
  0x1e   : > { %392 = vst [vmem:[#allocation2 + $0x50] sm:$0x3] %v9370_v2  ;;  %393 = vst [vmem:[#allocation2 + $0x168] sm:$0x3] %v9370_v2  ;;  %8706 = vmatprep.subr.bf16.mxu0 %v9480_v1  ;;  %8993 = vmatprep.subr.bf16.mxu1 %v9480_v1  ;;  %v9087_v8 = vld [vmem:[%s10918_s2 + $0x10] sm:$0xff]   ;;  %v9088_v9 = vld [vmem:[%s10918_s2 + $0x8] sm:$0xff]  }
  0x1f   : > { %394 = vst [vmem:[#allocation2 + $0x130] sm:$0xff] %v9370_v2  ;;  %396 = vst [vmem:[#allocation2 + $0x180] sm:$0xff] %v9370_v2  ;;  %8720 = vmatprep.mubr.bf16.mxu0 %v9090_v5  ;;  %8724 = vmatprep.mubr.bf16.mxu1 %v9091_v6  ;;  %v9089_v10 = vld [vmem:[%s10918_s2] sm:$0xff]   ;;  %v9092_v11 = vld [vmem:[%s9458_s17 + $0x8] sm:$0xff]  }
  0x20   : > { %397 = vst [vmem:[#allocation2 + $0x110] sm:$0x3] %v9370_v2  ;;  %399 = vst [vmem:[#allocation2 + $0x98] sm:$0x3] %v9370_v2  ;;  %v9093_v12 = vld [vmem:[%s9458_s17 + $0x18] sm:$0xff]   ;;  %v665_v13 = vld [vmem:[%s9458_s17] sm:$0xff]  }
  0x21   : > { %400 = vst [vmem:[#allocation2 + $0x120] sm:$0xff] %v9370_v2  ;;  %402 = vst [vmem:[#allocation2 + $0x108] sm:$0xff] %v9370_v2  ;;  %8707 = vmatpush3.bf16.msra.mxu0 %v9480_v1  ;;  %9001 = vmatpush3.bf16.msra.mxu1 %v9480_v1  ;;  %v667_v14 = vld [vmem:[%s9458_s17 + $0x8] sm:$0xff]   ;;  %v669_v15 = vld [vmem:[%s9458_s17 + $0x10] sm:$0xff]  }
  0x22   : > { %403 = vst [vmem:[#allocation2 + $0x60] sm:$0x3] %v9370_v2  ;;  %405 = vst [vmem:[#allocation2 + $0x188] sm:$0x3] %v9370_v2  ;;  %8708 = vmatprep.subr.bf16.mxu0 %v9084_v3  ;;  %8994 = vmatprep.subr.bf16.mxu1 %v9084_v3  ;;  %v671_v16 = vld [vmem:[%s9458_s17 + $0x18] sm:$0xff]  }
  0x23   : > { %406 = vst [vmem:[#allocation2 + $0x138] sm:$0xff] %v9370_v2  ;;  %407 = vst [vmem:[#allocation2 + $0x140] sm:$0xff] %v9370_v2  ;;  %v6924_v17 = vld [vmem:[%s10919_s3] ss:$0 sm:$0xff] }
  0x24   : > { %408 = vst [vmem:[#allocation2 + $0x80] sm:$0xff] %v9370_v2  ;;  %409 = vst [vmem:[#allocation2 + $0x1a8] sm:$0x3] %v9370_v2 }
  0x25   : > { %410 = vst [vmem:[#allocation2 + $0x1b8] sm:$0x3] %v9370_v2  ;;  %411 = vst [vmem:[#allocation2 + $0x28] sm:$0x3] %v9370_v2  ;;  %8709 = vmatpush3.bf16.msra.mxu0 %v9084_v3  ;;  %9002 = vmatpush3.bf16.msra.mxu1 %v9084_v3 }
  0x26   : > { %412 = vst [vmem:[#allocation2 + $0xf0] sm:$0xff] %v9370_v2  ;;  %414 = vst [vmem:[#allocation2 + $0x128] sm:$0xff] %v9370_v2  ;;  %8710 = vmatprep.subr.bf16.mxu0 %v9085_v4  ;;  %8995 = vmatprep.subr.bf16.mxu1 %v9085_v4 }
  0x27   : > { %415 = vst [vmem:[#allocation2 + $0x1d8] sm:$0x3] %v9370_v2  ;;  %417 = vst [vmem:[#allocation2 + $0x170] sm:$0x3] %v9370_v2 }
  0x28   : > { %418 = vst [vmem:[#allocation2 + $0xc0] sm:$0xff] %v9370_v2  ;;  %420 = vst [vmem:[#allocation2 + $0x148] sm:$0xff] %v9370_v2 }
  0x29   : > { %421 = vst [vmem:[#allocation2 + $0x1d0] sm:$0x3] %v9370_v2  ;;  %423 = vst [vmem:[#allocation2 + $0xf8] sm:$0x3] %v9370_v2  ;;  %8711 = vmatpush3.bf16.msra.mxu0 %v9085_v4  ;;  %9003 = vmatpush3.bf16.msra.mxu1 %v9085_v4 }
  0x2a   : > { %424 = vst [vmem:[#allocation2 + $0x40] sm:$0xff] %v9370_v2  ;;  %426 = vst [vmem:[#allocation2 + $0x190] sm:$0xff] %v9370_v2  ;;  %8712 = vmatprep.subr.bf16.mxu0 %v9086_v7  ;;  %8996 = vmatprep.subr.bf16.mxu1 %v9086_v7 }
  0x2b   : > { %427 = vst [vmem:[#allocation2 + $0x1a0] sm:$0x3] %v9370_v2  ;;  %429 = vst [vmem:[#allocation2] sm:$0x3] %v9370_v2 }
  0x2c   : > { %430 = vst [vmem:[#allocation2 + $0x38] sm:$0xff] %v9370_v2  ;;  %432 = vst [vmem:[#allocation2 + $0x10] sm:$0xff] %v9370_v2 }
  0x2d   : > { %433 = vst [vmem:[#allocation2 + $0x58] sm:$0x3] %v9370_v2  ;;  %435 = vst [vmem:[#allocation2 + $0xd0] sm:$0x3] %v9370_v2  ;;  %8713 = vmatpush3.bf16.msra.mxu0 %v9086_v7  ;;  %9004 = vmatpush3.bf16.msra.mxu1 %v9086_v7 }
  0x2e   : > { %436 = vst [vmem:[#allocation2 + $0x68] sm:$0xff] %v9370_v2  ;;  %438 = vst [vmem:[#allocation2 + $0x198] sm:$0xff] %v9370_v2  ;;  %8714 = vmatprep.subr.bf16.mxu0 %v9087_v8  ;;  %8997 = vmatprep.subr.bf16.mxu1 %v9087_v8 }
  0x2f   : > { %439 = vst [vmem:[#allocation2 + $0xe8] sm:$0x3] %v9370_v2  ;;  %441 = vst [vmem:[#allocation2 + $0x70] sm:$0x3] %v9370_v2 }
  0x30   : > { %442 = vst [vmem:[#allocation2 + $0x1c8] sm:$0xff] %v9370_v2  ;;  %443 = vst [vmem:[#allocation2 + $0x90] sm:$0xff] %v9370_v2 }
  0x31   : > { %444 = vst [vmem:[#allocation2 + $0x160] sm:$0xff] %v9370_v2  ;;  %445 = vst [vmem:[#allocation2 + $0x30] sm:$0x3] %v9370_v2  ;;  %8715 = vmatpush3.bf16.msra.mxu0 %v9087_v8  ;;  %9005 = vmatpush3.bf16.msra.mxu1 %v9087_v8 }
  0x32   : > { %446 = vst [vmem:[#allocation2 + $0x78] sm:$0x3] %v9370_v2  ;;  %447 = vst [vmem:[#allocation2 + $0x1c0] sm:$0x3] %v9370_v2  ;;  %8716 = vmatprep.subr.bf16.mxu0 %v9088_v9  ;;  %8998 = vmatprep.subr.bf16.mxu1 %v9088_v9 }
  0x33   : > { %395 = vst [vmem:[#allocation2 + $0x48] sm:$0xff] %v9370_v2  ;;  %398 = vst [vmem:[#allocation2 + $0x118] sm:$0x3] %v9370_v2 }
  0x34   : > { %401 = vst [vmem:[#allocation2 + $0x150] sm:$0xff] %v9370_v2  ;;  %404 = vst [vmem:[#allocation2 + $0xe0] sm:$0x3] %v9370_v2 }
  0x35   : > { %413 = vst [vmem:[#allocation2 + $0x158] sm:$0xff] %v9370_v2  ;;  %416 = vst [vmem:[#allocation2 + $0x8] sm:$0x3] %v9370_v2  ;;  %8717 = vmatpush3.bf16.msra.mxu0 %v9088_v9  ;;  %9006 = vmatpush3.bf16.msra.mxu1 %v9088_v9 }
  0x36   : > { %419 = vst [vmem:[#allocation2 + $0xa0] sm:$0xff] %v9370_v2  ;;  %422 = vst [vmem:[#allocation2 + $0x100] sm:$0x3] %v9370_v2  ;;  %8718 = vmatprep.subr.bf16.mxu0 %v9089_v10  ;;  %8999 = vmatprep.subr.bf16.mxu1 %v9089_v10 }
  0x37   : > { %425 = vst [vmem:[#allocation2 + $0xa8] sm:$0xff] %v9370_v2  ;;  %428 = vst [vmem:[#allocation2 + $0xb8] sm:$0x3] %v9370_v2 }
  0x38   : > { %431 = vst [vmem:[#allocation2 + $0x20] sm:$0xff] %v9370_v2  ;;  %434 = vst [vmem:[#allocation2 + $0x88] sm:$0x3] %v9370_v2 }
  0x39   : > { %437 = vst [vmem:[#allocation2 + $0xc8] sm:$0xff] %v9370_v2  ;;  %440 = vst [vmem:[#allocation2 + $0x178] sm:$0x3] %v9370_v2  ;;  %8719 = vmatpush3.bf16.msra.mxu0 %v9089_v10  ;;  %9007 = vmatpush3.bf16.msra.mxu1 %v9089_v10 }
  0x3a   : > { %673 = vst [vmem:[#allocation3] sm:$0xff] %v665_v13   ;;  %675 = vst [vmem:[#allocation3 + $0x8] sm:$0xff] %v667_v14  }
  0x3b   : > { %677 = vst [vmem:[#allocation3 + $0x10] sm:$0xff] %v669_v15   ;;  %679 = vst [vmem:[#allocation3 + $0x18] sm:$0xff] %v671_v16  }
  0x3c   : > { %8721 = vmatmul.mubr.bf16.vlgmr.msra.gmra.mxu0 %v9092_v11  ;;  %8725 = vmatmul.mubr.bf16.vlgmr.msra.gmra.mxu1 %v9093_v12 }
  0xfc   : > { %v8722_v18 = vpop.f32.mrf.mxu0  ;;  %v8726_v19 = vpop.f32.mrf.mxu1 }
  0xfd   : > { %v594_v20 = vadd.f32 %v8722_v18, %v6924_v17  ;;  %v610_v21 = vadd.f32 %v8726_v19, %v6924_v17 }
  0xfe   : > { %v585_v22 = vpop.f32.mrf.mxu0  ;;  %v601_v23 = vpop.f32.mrf.mxu1 }
  0xff   : > { %v618_v24 = vmax.f32 %v594_v20, 0.0  ;;  %v622_v25 = vmax.f32 %v610_v21, 0.0  ;;  %v586_v26 = vadd.f32 %v6924_v17, %v585_v22  ;;  %v602_v27 = vadd.f32 %v6924_v17, %v601_v23 }
 0x100   : > { %v8723_v28 = vpop.f32.mrf.mxu0  ;;  %v8727_v29 = vpop.f32.mrf.mxu1 }
 0x101   : > { %v634_v30 = vrot.slane %v618_v24, 7  ;;  %v638_v31 = vrot.slane %v622_v25, 7  ;;  %v616_v32 = vmax.f32 %v586_v26, 0.0  ;;  %v620_v33 = vmax.f32 %v602_v27, 0.0 }
 0x102   : > { %v597_v34 = vadd.f32 %v8723_v28, %v6924_v17  ;;  %v613_v35 = vadd.f32 %v8727_v29, %v6924_v17  ;;  %v588_v36 = vpop.f32.mrf.mxu0  ;;  %v604_v37 = vpop.f32.mrf.mxu1 }
 0x103   : > { %653 = vst [vmem:[#allocation2 + $0x140] sm:$0xfe] %v634_v30  ;;  %654 = vst [vmem:[#allocation2 + $0x1b8] sm:$0x1] %v634_v30  ;;  %v632_v38 = vrot.slane %v616_v32, 7  ;;  %v636_v39 = vrot.slane %v620_v33, 7  ;;  %v589_v40 = vadd.f32 %v6924_v17, %v588_v36  ;;  %v605_v41 = vadd.f32 %v6924_v17, %v604_v37 }
 0x104   : > { %661 = vst [vmem:[#allocation2 + $0x20] sm:$0xfe] %v638_v31  ;;  %662 = vst [vmem:[#allocation2 + $0x88] sm:$0x1] %v638_v31  ;;  %v619_v42 = vmax.f32 %v597_v34, 0.0  ;;  %v623_v43 = vmax.f32 %v613_v35, 0.0 }
 0x105   : > { %649 = vst [vmem:[#allocation2 + $0x48] sm:$0xfe] %v632_v38  ;;  %650 = vst [vmem:[#allocation2 + $0x118] sm:$0x1] %v632_v38  ;;  %v617_v44 = vmax.f32 %v589_v40, 0.0  ;;  %v621_v45 = vmax.f32 %v605_v41, 0.0 }
 0x106   : > { %657 = vst [vmem:[#allocation2 + $0xa0] sm:$0xfe] %v636_v39  ;;  %658 = vst [vmem:[#allocation2 + $0x100] sm:$0x1] %v636_v39  ;;  %v635_v46 = vrot.slane %v619_v42, 7  ;;  %v639_v47 = vrot.slane %v623_v43, 7 }
 0x107   : > { %v633_v48 = vrot.slane %v617_v44, 7  ;;  %v637_v49 = vrot.slane %v621_v45, 7 }
 0x108   : > { %655 = vst [vmem:[#allocation2 + $0x158] sm:$0xfe] %v635_v46  ;;  %656 = vst [vmem:[#allocation2 + $0x8] sm:$0x1] %v635_v46 }
 0x109   : > { %663 = vst [vmem:[#allocation2 + $0xc8] sm:$0xfe] %v639_v47  ;;  %664 = vst [vmem:[#allocation2 + $0x178] sm:$0x1] %v639_v47 }
 0x10a   : > { %651 = vst [vmem:[#allocation2 + $0x150] sm:$0xfe] %v633_v48  ;;  %652 = vst [vmem:[#allocation2 + $0xe0] sm:$0x1] %v633_v48 }
 0x10b   : > { %659 = vst [vmem:[#allocation2 + $0xa8] sm:$0xfe] %v637_v49  ;;  %660 = vst [vmem:[#allocation2 + $0xb8] sm:$0x1] %v637_v49 }
 0x10c PF: > { %p6937_p9 = scmp.le.s32.totalorder %s9352_s27, 0 }
 0x10e   : > { %684 = sbr.rel (%p6937_p9) target bundleno = 297 (0x129), region = 60 }
 0x113   : > { %v685_v50 = vld [vmem:[#allocation2 + $0x1b0] sm:$0xff]  ;;  %v686_v51 = vld [vmem:[#allocation2 + $0xd8] sm:$0xff]  ;;  %v688_v53 = vld [vmem:[#allocation2 + $0x168] sm:$0x3] }
 0x114   : > { %v687_v52 = vld [vmem:[#allocation2 + $0x50] sm:$0x3]  ;;  %725 = vst [vmem:[#allocation2 + $0xb0] sm:$0xff] %v685_v50  ;;  %726 = vst [vmem:[#allocation2 + $0x1b0] sm:$0xff] %v686_v51  ;;  %v689_v54 = vld [vmem:[#allocation2 + $0x48] sm:$0xff] }
 0x115   : > { %727 = vst [vmem:[#allocation2 + $0x18] sm:$0x3] %v687_v52  ;;  %v690_v55 = vld [vmem:[#allocation2 + $0x180] sm:$0xff]  ;;  %728 = vst [vmem:[#allocation2 + $0x50] sm:$0x3] %v688_v53  ;;  %v693_v58 = vld [vmem:[#allocation2 + $0x150] sm:$0xff] }
 0x116   : > { %729 = vst [vmem:[#allocation2 + $0x130] sm:$0xff] %v689_v54  ;;  %730 = vst [vmem:[#allocation2 + $0x48] sm:$0xff] %v690_v55  ;;  %v691_v56 = vld [vmem:[#allocation2 + $0x118] sm:$0x3]  ;;  %v694_v59 = vld [vmem:[#allocation2 + $0x108] sm:$0xff] }
 0x117   : > { %v692_v57 = vld [vmem:[#allocation2 + $0x98] sm:$0x3]  ;;  %731 = vst [vmem:[#allocation2 + $0x110] sm:$0x3] %v691_v56  ;;  %733 = vst [vmem:[#allocation2 + $0x120] sm:$0xff] %v693_v58  ;;  %v697_v62 = vld [vmem:[#allocation2 + $0x140] sm:$0xff] }
 0x118   : > { %732 = vst [vmem:[#allocation2 + $0x118] sm:$0x3] %v692_v57  ;;  %v695_v60 = vld [vmem:[#allocation2 + $0xe0] sm:$0x3]  ;;  %v696_v61 = vld [vmem:[#allocation2 + $0x188] sm:$0x3] }
 0x119   : > { %734 = vst [vmem:[#allocation2 + $0x150] sm:$0xff] %v694_v59  ;;  %735 = vst [vmem:[#allocation2 + $0x60] sm:$0x3] %v695_v60  ;;  %v698_v63 = vld [vmem:[#allocation2 + $0x80] sm:$0xff]  ;;  %v699_v0 = vld [vmem:[#allocation2 + $0x1b8] sm:$0x3] }
 0x11a   : > { %736 = vst [vmem:[#allocation2 + $0xe0] sm:$0x3] %v696_v61  ;;  %737 = vst [vmem:[#allocation2 + $0x138] sm:$0xff] %v697_v62  ;;  %v700_v1 = vld [vmem:[#allocation2 + $0x28] sm:$0x3]  ;;  %v701_v2 = vld [vmem:[#allocation2 + $0x158] sm:$0xff] }
 0x11b   : > { %738 = vst [vmem:[#allocation2 + $0x140] sm:$0xff] %v698_v63  ;;  %739 = vst [vmem:[#allocation2 + $0x1a8] sm:$0x3] %v699_v0  ;;  %v702_v3 = vld [vmem:[#allocation2 + $0x128] sm:$0xff]  ;;  %v704_v5 = vld [vmem:[#allocation2 + $0x170] sm:$0x3] }
 0x11c   : > { %740 = vst [vmem:[#allocation2 + $0x1b8] sm:$0x3] %v700_v1  ;;  %741 = vst [vmem:[#allocation2 + $0xf0] sm:$0xff] %v701_v2  ;;  %v703_v4 = vld [vmem:[#allocation2 + $0x8] sm:$0x3]  ;;  %v705_v6 = vld [vmem:[#allocation2 + $0xa0] sm:$0xff] }
 0x11d   : > { %742 = vst [vmem:[#allocation2 + $0x158] sm:$0xff] %v702_v3  ;;  %743 = vst [vmem:[#allocation2 + $0x1d8] sm:$0x3] %v703_v4  ;;  %v706_v7 = vld [vmem:[#allocation2 + $0x148] sm:$0xff]  ;;  %v707_v8 = vld [vmem:[#allocation2 + $0x100] sm:$0x3] }
 0x11e   : > { %744 = vst [vmem:[#allocation2 + $0x8] sm:$0x3] %v704_v5  ;;  %745 = vst [vmem:[#allocation2 + $0xc0] sm:$0xff] %v705_v6  ;;  %v708_v9 = vld [vmem:[#allocation2 + $0xf8] sm:$0x3]  ;;  %v709_v10 = vld [vmem:[#allocation2 + $0xa8] sm:$0xff] }
 0x11f   : > { %746 = vst [vmem:[#allocation2 + $0xa0] sm:$0xff] %v706_v7  ;;  %747 = vst [vmem:[#allocation2 + $0x1d0] sm:$0x3] %v707_v8  ;;  %v710_v11 = vld [vmem:[#allocation2 + $0x190] sm:$0xff]  ;;  %v711_v12 = vld [vmem:[#allocation2 + $0xb8] sm:$0x3] }
 0x120   : > { %748 = vst [vmem:[#allocation2 + $0x100] sm:$0x3] %v708_v9  ;;  %749 = vst [vmem:[#allocation2 + $0x40] sm:$0xff] %v709_v10  ;;  %v712_v13 = vld [vmem:[#allocation2] sm:$0x3]  ;;  %v714_v15 = vld [vmem:[#allocation2 + $0x10] sm:$0xff] }
 0x121   : > { %750 = vst [vmem:[#allocation2 + $0xa8] sm:$0xff] %v710_v11  ;;  %751 = vst [vmem:[#allocation2 + $0x1a0] sm:$0x3] %v711_v12  ;;  %v713_v14 = vld [vmem:[#allocation2 + $0x20] sm:$0xff]  ;;  %v715_v16 = vld [vmem:[#allocation2 + $0x88] sm:$0x3] }
 0x122   : > { %752 = vst [vmem:[#allocation2 + $0xb8] sm:$0x3] %v712_v13  ;;  %753 = vst [vmem:[#allocation2 + $0x38] sm:$0xff] %v713_v14  ;;  %v716_v17 = vld [vmem:[#allocation2 + $0xd0] sm:$0x3]  ;;  %v717_v18 = vld [vmem:[#allocation2 + $0xc8] sm:$0xff] }
 0x123   : > { %754 = vst [vmem:[#allocation2 + $0x20] sm:$0xff] %v714_v15  ;;  %755 = vst [vmem:[#allocation2 + $0x58] sm:$0x3] %v715_v16  ;;  %v718_v19 = vld [vmem:[#allocation2 + $0x198] sm:$0xff]  ;;  %v720_v21 = vld [vmem:[#allocation2 + $0x70] sm:$0x3] }
 0x124   : > { %756 = vst [vmem:[#allocation2 + $0x88] sm:$0x3] %v716_v17  ;;  %757 = vst [vmem:[#allocation2 + $0x68] sm:$0xff] %v717_v18  ;;  %v719_v20 = vld [vmem:[#allocation2 + $0x178] sm:$0x3]  ;;  %v721_v22 = vld [vmem:[#allocation2 + $0x90] sm:$0xff] }
 0x125   : > { %758 = vst [vmem:[#allocation2 + $0xc8] sm:$0xff] %v718_v19  ;;  %759 = vst [vmem:[#allocation2 + $0xe8] sm:$0x3] %v719_v20  ;;  %v722_v23 = vld [vmem:[#allocation2 + $0x160] sm:$0xff]  ;;  %v723_v24 = vld [vmem:[#allocation2 + $0x78] sm:$0x3] }
 0x126   : > { %760 = vst [vmem:[#allocation2 + $0x178] sm:$0x3] %v720_v21  ;;  %761 = vst [vmem:[#allocation2 + $0x1c8] sm:$0xff] %v721_v22  ;;  %v724_v25 = vld [vmem:[#allocation2 + $0x1c0] sm:$0x3] }
 0x127   : > { %762 = vst [vmem:[#allocation2 + $0x90] sm:$0xff] %v722_v23  ;;  %763 = vst [vmem:[#allocation2 + $0x30] sm:$0x3] %v723_v24 }
 0x128   : > { %764 = vst [vmem:[#allocation2 + $0x78] sm:$0x3] %v724_v25 }
 0x129 PF: > { %v9520_v26 = vld [vmem:[#allocation3] sm:$0xff]   ;;  %v9522_v27 = vld [vmem:[#allocation3 + $0x8] sm:$0xff]   ;;  %v9524_v28 = vld [vmem:[#allocation3 + $0x10] sm:$0xff]   ;;  %p6938_p10 = scmp.ge.s32.totalorder %s9450_s12, 8 }
 0x12a   : > { %10935 = vst [vmem:[#allocation8_spill] sm:$0xff] %v9524_v28  ;;  %v9530_v33 = vld [vmem:[#allocation3 + $0x18] sm:$0xff]  }
 0x12b   : > { %10936 = vst [vmem:[#allocation9_spill] sm:$0xff] %v9530_v33  ;;  %785 = sbr.rel (%p6938_p10) target bundleno = 545 (0x221), region = 64 }
 0x130   : > { %v9094_v38 = vld [vmem:[%s10918_s2 + $0x38] sm:$0xff]   ;;  %v9095_v39 = vld [vmem:[%s10918_s2 + $0x30] sm:$0xff]   ;;  %v9096_v40 = vld [vmem:[%s10918_s2 + $0x28] sm:$0xff]  }
 0x131   : > { %8728 = vmatprep.subr.bf16.mxu0 %v9094_v38  ;;  %9008 = vmatprep.subr.bf16.mxu1 %v9094_v38  ;;  %v9097_v41 = vld [vmem:[%s10918_s2 + $0x20] sm:$0xff]   ;;  %v9103_v43 = vld [vmem:[%s9464_s11 + $0x10] sm:$0xff]   ;;  %v9098_v44 = vld [vmem:[%s10918_s2 + $0x18] sm:$0xff]  }
 0x132   : > { %8729 = vmatpush3.bf16.msra.mxu0 %v9094_v38  ;;  %9016 = vmatpush3.bf16.msra.mxu1 %v9094_v38  ;;  %v9102_v42 = vld [vmem:[%s9464_s11] sm:$0xff]   ;;  %v9099_v45 = vld [vmem:[%s10918_s2 + $0x10] sm:$0xff]   ;;  %v9100_v46 = vld [vmem:[%s10918_s2 + $0x8] sm:$0xff]  }
 0x133   : > { %8730 = vmatprep.subr.bf16.mxu0 %v9095_v39  ;;  %9009 = vmatprep.subr.bf16.mxu1 %v9095_v39  ;;  %v9101_v47 = vld [vmem:[%s10918_s2] sm:$0xff]   ;;  %v9104_v48 = vld [vmem:[%s9464_s11 + $0x8] sm:$0xff]   ;;  %v9105_v49 = vld [vmem:[%s9464_s11 + $0x18] sm:$0xff]  }
 0x134   : > { %8744 = vmatprep.mubr.bf16.mxu0 %v9102_v42  ;;  %8748 = vmatprep.mubr.bf16.mxu1 %v9103_v43  ;;  %v1003_v50 = vld [vmem:[%s9464_s11] sm:$0xff]   ;;  %v1005_v51 = vld [vmem:[%s9464_s11 + $0x8] sm:$0xff]   ;;  %v1007_v52 = vld [vmem:[%s9464_s11 + $0x10] sm:$0xff]  }
 0x135   : > { %v1009_v53 = vld [vmem:[%s9464_s11 + $0x18] sm:$0xff]   ;;  %1011 = vst [vmem:[#allocation3] sm:$0xff] %v1003_v50   ;;  %1013 = vst [vmem:[#allocation3 + $0x8] sm:$0xff] %v1005_v51   ;;  %v6939_v54 = vld [vmem:[%s10919_s3] ss:$0 sm:$0xff] }
 0x136   : > { %8731 = vmatpush3.bf16.msra.mxu0 %v9095_v39  ;;  %9017 = vmatpush3.bf16.msra.mxu1 %v9095_v39  ;;  %1015 = vst [vmem:[#allocation3 + $0x10] sm:$0xff] %v1007_v52   ;;  %1017 = vst [vmem:[#allocation3 + $0x18] sm:$0xff] %v1009_v53  }
 0x137   : > { %8732 = vmatprep.subr.bf16.mxu0 %v9096_v40  ;;  %9010 = vmatprep.subr.bf16.mxu1 %v9096_v40 }
 0x13a   : > { %8733 = vmatpush3.bf16.msra.mxu0 %v9096_v40  ;;  %9018 = vmatpush3.bf16.msra.mxu1 %v9096_v40 }
 0x13b   : > { %8734 = vmatprep.subr.bf16.mxu0 %v9097_v41  ;;  %9011 = vmatprep.subr.bf16.mxu1 %v9097_v41 }
 0x13e   : > { %8735 = vmatpush3.bf16.msra.mxu0 %v9097_v41  ;;  %9019 = vmatpush3.bf16.msra.mxu1 %v9097_v41 }
 0x13f   : > { %8736 = vmatprep.subr.bf16.mxu0 %v9098_v44  ;;  %9012 = vmatprep.subr.bf16.mxu1 %v9098_v44 }
 0x142   : > { %8737 = vmatpush3.bf16.msra.mxu0 %v9098_v44  ;;  %9020 = vmatpush3.bf16.msra.mxu1 %v9098_v44 }
 0x143   : > { %8738 = vmatprep.subr.bf16.mxu0 %v9099_v45  ;;  %9013 = vmatprep.subr.bf16.mxu1 %v9099_v45 }
 0x146   : > { %8739 = vmatpush3.bf16.msra.mxu0 %v9099_v45  ;;  %9021 = vmatpush3.bf16.msra.mxu1 %v9099_v45 }
 0x147   : > { %8740 = vmatprep.subr.bf16.mxu0 %v9100_v46  ;;  %9014 = vmatprep.subr.bf16.mxu1 %v9100_v46 }
 0x14a   : > { %8741 = vmatpush3.bf16.msra.mxu0 %v9100_v46  ;;  %9022 = vmatpush3.bf16.msra.mxu1 %v9100_v46 }
 0x14b   : > { %8742 = vmatprep.subr.bf16.mxu0 %v9101_v47  ;;  %9015 = vmatprep.subr.bf16.mxu1 %v9101_v47 }
 0x14e   : > { %8743 = vmatpush3.bf16.msra.mxu0 %v9101_v47  ;;  %9023 = vmatpush3.bf16.msra.mxu1 %v9101_v47 }
 0x151   : > { %8745 = vmatmul.mubr.bf16.vlgmr.msra.gmra.mxu0 %v9104_v48  ;;  %8749 = vmatmul.mubr.bf16.vlgmr.msra.gmra.mxu1 %v9105_v49 }
 0x211   : > { %v8746_v55 = vpop.f32.mrf.mxu0  ;;  %v8750_v56 = vpop.f32.mrf.mxu1 }
 0x212   : > { %v932_v57 = vadd.f32 %v8746_v55, %v6939_v54  ;;  %v948_v58 = vadd.f32 %v8750_v56, %v6939_v54 }
 0x213   : > { %v923_v59 = vpop.f32.mrf.mxu0  ;;  %v939_v60 = vpop.f32.mrf.mxu1 }
 0x214   : > { %v956_v61 = vmax.f32 %v932_v57, 0.0  ;;  %v960_v62 = vmax.f32 %v948_v58, 0.0  ;;  %v924_v63 = vadd.f32 %v6939_v54, %v923_v59  ;;  %v940_v0 = vadd.f32 %v6939_v54, %v939_v60 }
 0x215   : > { %v8747_v1 = vpop.f32.mrf.mxu0  ;;  %v8751_v2 = vpop.f32.mrf.mxu1 }
 0x216   : > { %v972_v3 = vrot.slane %v956_v61, 7  ;;  %v976_v4 = vrot.slane %v960_v62, 7  ;;  %v954_v5 = vmax.f32 %v924_v63, 0.0  ;;  %v958_v6 = vmax.f32 %v940_v0, 0.0 }
 0x217   : > { %v935_v7 = vadd.f32 %v8747_v1, %v6939_v54  ;;  %v951_v8 = vadd.f32 %v8751_v2, %v6939_v54  ;;  %v926_v9 = vpop.f32.mrf.mxu0  ;;  %v942_v10 = vpop.f32.mrf.mxu1 }
 0x218   : > { %991 = vst [vmem:[#allocation2 + $0x80] sm:$0xfe] %v972_v3  ;;  %992 = vst [vmem:[#allocation2 + $0x28] sm:$0x1] %v972_v3  ;;  %v970_v11 = vrot.slane %v954_v5, 7  ;;  %v974_v12 = vrot.slane %v958_v6, 7  ;;  %v927_v13 = vadd.f32 %v6939_v54, %v926_v9  ;;  %v943_v14 = vadd.f32 %v6939_v54, %v942_v10 }
 0x219   : > { %999 = vst [vmem:[#allocation2 + $0x10] sm:$0xfe] %v976_v4  ;;  %1000 = vst [vmem:[#allocation2 + $0xd0] sm:$0x1] %v976_v4  ;;  %v957_v15 = vmax.f32 %v935_v7, 0.0  ;;  %v961_v16 = vmax.f32 %v951_v8, 0.0 }
 0x21a   : > { %987 = vst [vmem:[#allocation2 + $0x180] sm:$0xfe] %v970_v11  ;;  %988 = vst [vmem:[#allocation2 + $0x98] sm:$0x1] %v970_v11  ;;  %v955_v17 = vmax.f32 %v927_v13, 0.0  ;;  %v959_v18 = vmax.f32 %v943_v14, 0.0 }
 0x21b   : > { %995 = vst [vmem:[#allocation2 + $0x148] sm:$0xfe] %v974_v12  ;;  %996 = vst [vmem:[#allocation2 + $0xf8] sm:$0x1] %v974_v12  ;;  %v973_v19 = vrot.slane %v957_v15, 7  ;;  %v977_v20 = vrot.slane %v961_v16, 7 }
 0x21c   : > { %v971_v21 = vrot.slane %v955_v17, 7  ;;  %v975_v22 = vrot.slane %v959_v18, 7 }
 0x21d   : > { %993 = vst [vmem:[#allocation2 + $0x128] sm:$0xfe] %v973_v19  ;;  %994 = vst [vmem:[#allocation2 + $0x170] sm:$0x1] %v973_v19 }
 0x21e   : > { %1001 = vst [vmem:[#allocation2 + $0x198] sm:$0xfe] %v977_v20  ;;  %1002 = vst [vmem:[#allocation2 + $0x70] sm:$0x1] %v977_v20 }
 0x21f   : > { %989 = vst [vmem:[#allocation2 + $0x108] sm:$0xfe] %v971_v21  ;;  %990 = vst [vmem:[#allocation2 + $0x188] sm:$0x1] %v971_v21 }
 0x220   : > { %997 = vst [vmem:[#allocation2 + $0x190] sm:$0xfe] %v975_v22  ;;  %998 = vst [vmem:[#allocation2] sm:$0x1] %v975_v22 }
 0x221 PF: > { %p6952_p11 = scmp.lt.s32.totalorder %s9450_s12, 8 }
 0x223   : > { %1022 = sbr.rel (%p6952_p11) target bundleno = 563 (0x233), region = 68 }
 0x228   : > { %v9371_v23 = vmov 0.0  }
 0x229   : > { %1023 = vst [vmem:[#allocation2 + $0xd8] sm:$0xff] %v9371_v23  ;;  %1024 = vst [vmem:[#allocation2 + $0x168] sm:$0x3] %v9371_v23 }
 0x22a   : > { %1025 = vst [vmem:[#allocation2 + $0x180] sm:$0xff] %v9371_v23  ;;  %1026 = vst [vmem:[#allocation2 + $0x98] sm:$0x3] %v9371_v23 }
 0x22b   : > { %1027 = vst [vmem:[#allocation2 + $0x108] sm:$0xff] %v9371_v23  ;;  %1028 = vst [vmem:[#allocation2 + $0x188] sm:$0x3] %v9371_v23 }
 0x22c   : > { %1029 = vst [vmem:[#allocation2 + $0x80] sm:$0xff] %v9371_v23  ;;  %1030 = vst [vmem:[#allocation2 + $0x28] sm:$0x3] %v9371_v23 }
 0x22d   : > { %1031 = vst [vmem:[#allocation2 + $0x128] sm:$0xff] %v9371_v23  ;;  %1032 = vst [vmem:[#allocation2 + $0x170] sm:$0x3] %v9371_v23 }
 0x22e   : > { %1033 = vst [vmem:[#allocation2 + $0x148] sm:$0xff] %v9371_v23  ;;  %1034 = vst [vmem:[#allocation2 + $0xf8] sm:$0x3] %v9371_v23 }
 0x22f   : > { %1035 = vst [vmem:[#allocation2 + $0x190] sm:$0xff] %v9371_v23  ;;  %1036 = vst [vmem:[#allocation2] sm:$0x3] %v9371_v23 }
 0x230   : > { %1037 = vst [vmem:[#allocation2 + $0x10] sm:$0xff] %v9371_v23  ;;  %1038 = vst [vmem:[#allocation2 + $0xd0] sm:$0x3] %v9371_v23 }
 0x231   : > { %1039 = vst [vmem:[#allocation2 + $0x198] sm:$0xff] %v9371_v23  ;;  %1040 = vst [vmem:[#allocation2 + $0x70] sm:$0x3] %v9371_v23 }
 0x232   : > { %1041 = vst [vmem:[#allocation2 + $0x160] sm:$0xff] %v9371_v23  ;;  %1042 = vst [vmem:[#allocation2 + $0x1c0] sm:$0x3] %v9371_v23 }
 0x233 PF: > { %v9106_v24 = vld [vmem:[%s10920_s4 + $0x138] sm:$0xff]   ;;  %v9109_v39 = vld [vmem:[%s10920_s4 + $0x130] sm:$0xff]   ;;  %v9112_v42 = vld [vmem:[%s10920_s4 + $0x128] sm:$0xff]   ;;  %vm1363_vm0 = vsmask.f32 3328  ;;  %vm2435_vm3 = vcmask 1042432  }
 0x234   : > { %v9107_v25 = vld [vmem:[%s10920_s4 + $0xf8] sm:$0xff]   ;;  %8224 = vmatprep.subr.bf16.mxu0 %v9106_v24  ;;  %v9110_v40 = vld [vmem:[%s10920_s4 + $0xf0] sm:$0xff]   ;;  %v9113_v43 = vld [vmem:[%s10920_s4 + $0xe8] sm:$0xff]   ;;  %vm1364_vm1 = vsmask.f32 7440  ;;  %vm2436_vm4 = vcmask 1046532  }
 0x235   : > { %v9108_v38 = vld [vmem:[%s10920_s4 + $0x178] sm:$0xff]   ;;  %8225 = vmatpush3.bf16.msra.mxu0 %v9107_v25  ;;  %v9111_v41 = vld [vmem:[%s10920_s4 + $0x170] sm:$0xff]   ;;  %v9114_v44 = vld [vmem:[%s10920_s4 + $0x168] sm:$0xff]  }
 0x236   : > { %8752 = vmatprep.subr.bf16.mxu1 %v9108_v38  ;;  %8226 = vmatprep.subr.bf16.mxu0 %v9109_v39  ;;  %v9115_v45 = vld [vmem:[%s10920_s4 + $0x120] sm:$0xff]   ;;  %v9118_v48 = vld [vmem:[%s10920_s4 + $0x118] sm:$0xff]   ;;  %v9121_v51 = vld [vmem:[%s10920_s4 + $0x110] sm:$0xff]  }
 0x237   : > { %8753 = vmatpush3.bf16.msra.mxu1 %v9108_v38  ;;  %v9116_v46 = vld [vmem:[%s10920_s4 + $0xe0] sm:$0xff]   ;;  %v9120_v49 = vld [vmem:[%s10920_s4 + $0x158] sm:$0xff]   ;;  %v9123_v52 = vld [vmem:[%s10920_s4 + $0x150] sm:$0xff]  }
 0x238   : > { %8754 = vmatprep.subr.bf16.mxu1 %v9111_v41  ;;  %v9117_v47 = vld [vmem:[%s10920_s4 + $0x160] sm:$0xff]   ;;  %v9119_v50 = vld [vmem:[%s10920_s4 + $0xd8] sm:$0xff]   ;;  %v9122_v53 = vld [vmem:[%s10920_s4 + $0xd0] sm:$0xff]  }
 0x239   : > { %8227 = vmatpush3.bf16.msra.mxu0 %v9110_v40  ;;  %v9124_v54 = vld [vmem:[%s10920_s4 + $0x108] sm:$0xff]   ;;  %v9127_v57 = vld [vmem:[%s10920_s4 + $0x100] sm:$0xff]   ;;  %v1187_v59 = vld [vmem:[#allocation2 + $0xb0] sm:$0xfe] }
 0x23a   : > { %8228 = vmatprep.subr.bf16.mxu0 %v9112_v42  ;;  %v9125_v55 = vld [vmem:[%s10920_s4 + $0xc8] sm:$0xff]   ;;  %v9129_v58 = vld [vmem:[%s10920_s4 + $0x140] sm:$0xff]   ;;  %v1188_v60 = vld [vmem:[#allocation2 + $0x1b0] sm:$0xfe] }
 0x23b   : > { %8755 = vmatpush3.bf16.msra.mxu1 %v9111_v41  ;;  %v9126_v56 = vld [vmem:[%s10920_s4 + $0x148] sm:$0xff]   ;;  %v1190_v61 = vld [vmem:[#allocation2 + $0x18] sm:$0x1]  ;;  %v9128_v62 = vld [vmem:[%s10920_s4 + $0xc0] sm:$0xff]   ;;  %v7922_v2 = vpack.c.bf16 %v1188_v60, %v1187_v59 }
 0x23c   : > { %8756 = vmatprep.subr.bf16.mxu1 %v9114_v44  ;;  %v1191_v63 = vld [vmem:[#allocation2 + $0x50] sm:$0x1]  ;;  %v1193_v0 = vld [vmem:[#allocation2 + $0x130] sm:$0xfe]  ;;  %v1194_v1 = vld [vmem:[#allocation2 + $0x48] sm:$0xfe] }
 0x23d   : > { %8229 = vmatpush3.bf16.msra.mxu0 %v9113_v43  ;;  %v1196_v3 = vld [vmem:[#allocation2 + $0x110] sm:$0x1]  ;;  %v1197_v4 = vld [vmem:[#allocation2 + $0x118] sm:$0x1]  ;;  %v7924_v5 = vpack.c.bf16 %v1191_v63, %v1190_v61  ;;  %v7926_v6 = vpack.c.bf16 %v1194_v1, %v1193_v0  ;;  %v1367_v8 = vshrl.u32 %v7922_v2, 16  ;;  %v1370_v9 = vshll.u32 %v7922_v2, 16  ;;  %vm9655_vm2 = vmor %vm1363_vm0, %vm1364_vm1 }
 0x23e   : > { %8230 = vmatprep.subr.bf16.mxu0 %v9115_v45  ;;  %v7928_v7 = vpack.c.bf16 %v1197_v4, %v1196_v3  ;;  %v9130_v13 = vld [vmem:[%s10920_s4 + $0x78] sm:$0xff]   ;;  %v1192_v20 = vld [vmem:[#allocation2 + $0x168] sm:$0x1]  ;;  %v1195_v38 = vld [vmem:[#allocation2 + $0x180] sm:$0xfe] }
 0x23f   : > { %8757 = vmatpush3.bf16.msra.mxu1 %v9114_v44  ;;  %v1376_v10 = vshll.u32 %v7924_v5, 16  ;;  %v1395_v11 = vshrl.u32 %v7926_v6, 16  ;;  %v1398_v12 = vshll.u32 %v7926_v6, 16  ;;  %v1369_v14 = vrot.slane %v1367_v8, 4  ;;  %v1189_v17 = vld [vmem:[#allocation2 + $0xd8] sm:$0xfe]  ;;  %vm9858_vm5 = vmor %vm2435_vm3, %vm2436_vm4 }
 0x240   : > { %8758 = vmatprep.subr.bf16.mxu1 %v9117_v47  ;;  %v1372_v15 = vrot.slane %v1370_v9, 5  ;;  %v1404_v16 = vshll.u32 %v7928_v7, 16  ;;  %v7923_v21 = vpack.c.bf16 %v1189_v17, %v1189_v17  ;;  %v9651_v22 = vld [vmem:[%s10920_s4 + $0xb8] sm:$0xff]   ;;  %v7925_v40 = vpack.c.bf16 %v1192_v20, %v1192_v20  ;;  %v1207_v60 = vld [vmem:[#allocation2 + $0x80] sm:$0xfe]  ;;  %v9133_v6 = vld [vmem:[%s10920_s4 + $0x70] sm:$0xff]  }
 0x241   : > { %8231 = vmatpush3.bf16.msra.mxu0 %v9116_v46  ;;  %v1397_v18 = vrot.slane %v1395_v11, 4  ;;  %v1400_v19 = vrot.slane %v1398_v12, 5  ;;  %v1378_v24 = vrot.slane %v1376_v10, 5  ;;  %v1198_v39 = vld [vmem:[#allocation2 + $0x98] sm:$0x1]  ;;  %v7927_v43 = vpack.c.bf16 %v1195_v38, %v1195_v38 }
 0x242   : > { %8232 = vmatprep.subr.bf16.mxu0 %v9118_v48  ;;  %v1373_v23 = vor.u32 %v1372_v15, %v1369_v14  ;;  %v1406_v25 = vrot.slane %v1404_v16, 5  ;;  %v7929_v44 = vpack.c.bf16 %v1198_v39, %v1198_v39  ;;  %v1381_v45 = vshrl.u32 %v7923_v21, 16  ;;  %v1210_v0 = vld [vmem:[#allocation2 + $0x28] sm:$0x1]  ;;  %v6005_v35 = vld [vmem:[#allocation2 + $0x90] sm:$0xfc] }
 0x243   : > { %8759 = vmatpush3.bf16.msra.mxu1 %v9117_v47  ;;  %v1401_v42 = vor.u32 %v1400_v19, %v1397_v18  ;;  %v1384_v47 = vshll.u32 %v7923_v21, 16  ;;  %v1390_v48 = vshll.u32 %v7925_v40, 16  ;;  %v7935_v9 = vpack.c.bf16 %v1207_v60, %v1207_v60  ;;  %v6007_v36 = vld [vmem:[#allocation2 + $0x30] sm:$0x3]  ;;  %v6008_v30 = vld [vmem:[#allocation2 + $0x78] sm:$0x3] }
 0x244   : > { %8760 = vmatprep.subr.bf16.mxu1 %v9120_v49  ;;  %v1374_v46 = vrot.slane %v1373_v23, 4  ;;  %v1418_v59 = vshll.u32 %v7929_v44, 16  ;;  %v7937_v10 = vpack.c.bf16 %v1210_v0, %v1210_v0  ;;  %v9134_v23 = vld [vmem:[%s10920_s4 + $0x30] sm:$0xff]  }
 0x245   : > { %8233 = vmatpush3.bf16.msra.mxu0 %v9119_v50  ;;  %v1402_v50 = vrot.slane %v1401_v42, 4  ;;  %v1465_v16 = vshrl.u32 %v7935_v9, 16  ;;  %v1468_v17 = vshll.u32 %v7935_v9, 16  ;;  %v1200_v42 = vld [vmem:[#allocation2 + $0x150] sm:$0xfe]  ;;  %v9140_v9 = vld [vmem:[%s10920_s4 + $0x20] sm:$0xff]  }
 0x246   : > { %8234 = vmatprep.subr.bf16.mxu0 %v9121_v51  ;;  %v1383_v51 = vrot.slane %v1381_v45, 4  ;;  %v1420_v5 = vrot.slane %v1418_v59, 5  ;;  %v1474_v21 = vshll.u32 %v7937_v10, 16 }
 0x247   : > { %8761 = vmatpush3.bf16.msra.mxu1 %v9120_v49  ;;  %v1201_v49 = vld [vmem:[#allocation2 + $0x108] sm:$0xfe]  ;;  %v1407_v61 = vsel %vm9655_vm2, %v1402_v50, %v1406_v25  ;;  %v1467_v39 = vrot.slane %v1465_v16, 4  ;;  %v1470_v40 = vrot.slane %v1468_v17, 5 }
 0x248   : > { %8762 = vmatprep.subr.bf16.mxu1 %v9123_v52  ;;  %v7931_v1 = vpack.c.bf16 %v1201_v49, %v1201_v49  ;;  %v9137_v50 = vld [vmem:[%s10920_s4 + $0x28] sm:$0xff]  }
 0x249   : > { %8235 = vmatpush3.bf16.msra.mxu0 %v9122_v53  ;;  %v1412_v53 = vshll.u32 %v7927_v43, 16 }
 0x24a   : > { %8236 = vmatprep.subr.bf16.mxu0 %v9124_v54  ;;  %v1204_v54 = vld [vmem:[#allocation2 + $0x188] sm:$0x1]  ;;  %v1437_v12 = vshrl.u32 %v7931_v1, 16 }
 0x24b   : > { %8763 = vmatpush3.bf16.msra.mxu1 %v9123_v52  ;;  %v1409_v52 = vshrl.u32 %v7927_v43, 16  ;;  %v1414_v63 = vrot.slane %v1412_v53, 5  ;;  %v7933_v8 = vpack.c.bf16 %v1204_v54, %v1204_v54  ;;  %v9136_v43 = vld [vmem:[%s10920_s4 + $0x68] sm:$0xff]   ;;  %v1206_v53 = vld [vmem:[#allocation2 + $0x140] sm:$0xfe] }
 0x24c   : > { %8764 = vmatprep.subr.bf16.mxu1 %v9126_v56  ;;  %v1439_v19 = vrot.slane %v1437_v12, 4  ;;  %v1208_v54 = vld [vmem:[#allocation2 + $0x1a8] sm:$0x1] }
 0x24d   : > { %8237 = vmatpush3.bf16.msra.mxu0 %v9125_v55  ;;  %v1379_v55 = vsel %vm9655_vm2, %v1374_v46, %v1378_v24  ;;  %v1446_v15 = vshll.u32 %v7933_v8, 16  ;;  %v1199_v24 = vld [vmem:[#allocation2 + $0x120] sm:$0xfe]  ;;  %v1476_v46 = vrot.slane %v1474_v21, 5  ;;  %v1211_v21 = vld [vmem:[#allocation2 + $0xf0] sm:$0xfe] }
 0x24e   : > { %8238 = vmatprep.subr.bf16.mxu0 %v9127_v57  ;;  %v1392_v57 = vrot.slane %v1390_v48, 5  ;;  %v7033_v2 = vcombine.low %v1379_v55, %v1407_v61  ;;  %v7034_v3 = vcombine.high %v1379_v55, %v1407_v61  ;;  %v1203_v48 = vld [vmem:[#allocation2 + $0xe0] sm:$0x1]  ;;  %v7930_v49 = vpack.c.bf16 %v1200_v42, %v1199_v24  ;;  %v1214_v24 = vld [vmem:[#allocation2 + $0x1d8] sm:$0x1] }
 0x24f   : > { %8765 = vmatpush3.bf16.msra.mxu1 %v9126_v56  ;;  %v1386_v56 = vrot.slane %v1384_v47, 5  ;;  %v1448_v38 = vrot.slane %v1446_v15, 5  ;;  %v1202_v47 = vld [vmem:[#allocation2 + $0x60] sm:$0x1]  ;;  %v1218_v42 = vld [vmem:[#allocation2 + $0xa0] sm:$0xfe] }
 0x250   : > { %8766 = vmatprep.subr.bf16.mxu1 %v9129_v58  ;;  %1863 = vmatprep.mubr.bf16.mxu0 %v7034_v3  ;;  %v7932_v55 = vpack.c.bf16 %v1203_v48, %v1202_v47  ;;  %v1426_v60 = vshll.u32 %v7930_v49, 16  ;;  %v9139_v61 = vld [vmem:[%s10920_s4 + $0x60] sm:$0xff]  }
 0x251   : > { %8239 = vmatpush3.bf16.msra.mxu0 %v9128_v62  ;;  %v1411_v62 = vrot.slane %v1409_v52, 4  ;;  %v1387_v4 = vor.u32 %v1386_v56, %v1383_v51  ;;  %v1471_v51 = vor.u32 %v1470_v40, %v1467_v39  ;;  %v1205_v52 = vld [vmem:[#allocation2 + $0x138] sm:$0xfe]  ;;  %v1217_v40 = vld [vmem:[#allocation2 + $0xc0] sm:$0xfe] }
 0x252   : > { %8276 = vmatprep.subr.bf16.mxu0 %v9130_v13  ;;  %v1440_v13 = vshll.u32 %v7931_v1, 16  ;;  %v7934_v59 = vpack.c.bf16 %v1206_v53, %v1205_v52  ;;  %v1432_v0 = vshll.u32 %v7932_v55, 16  ;;  %v1428_v3 = vrot.slane %v1426_v60, 5  ;;  %v1221_v47 = vld [vmem:[#allocation2 + $0x100] sm:$0x1] }
 0x253   : > { %8767 = vmatpush3.bf16.msra.mxu1 %v9129_v58  ;;  %v9131_v58 = vld [vmem:[%s10920_s4 + $0x38] sm:$0xff]   ;;  %v1415_v7 = vor.u32 %v1414_v63, %v1411_v62  ;;  %v1388_v11 = vrot.slane %v1387_v4, 4  ;;  %v1472_v62 = vrot.slane %v1471_v51, 4  ;;  %v7942_v48 = vpack.c.bf16 %v1218_v42, %v1217_v40  ;;  %v1219_v60 = vld [vmem:[#allocation2 + $0x148] sm:$0xfe] }
 0x254   : > { %8776 = vmatprep.subr.bf16.mxu1 %v9651_v22  ;;  %1864 = vmatmul.mubr.bf16.vlgmr.msra.gmra.mxu0 %v7033_v2  ;;  %v1442_v20 = vrot.slane %v1440_v13, 5  ;;  %v1451_v4 = vshrl.u32 %v7934_v59, 16  ;;  %v9142_v13 = vld [vmem:[%s10920_s4 + $0x58] sm:$0xff]  }
 0x255   : > { %v1416_v14 = vrot.slane %v1415_v7, 4  ;;  %v1393_v18 = vsel %vm9655_vm2, %v1388_v11, %v1392_v57  ;;  %8277 = vmatpush3.bf16.msra.mxu0 %v9131_v58  ;;  %v1209_v57 = vld [vmem:[#allocation2 + $0x1b8] sm:$0x1]  ;;  %v1423_v58 = vshrl.u32 %v7930_v49, 16  ;;  %v1454_v7 = vshll.u32 %v7934_v59, 16  ;;  %v9146_v49 = vld [vmem:[%s10920_s4 + $0x10] sm:$0xff]  }
 0x256   : > { %8278 = vmatprep.subr.bf16.mxu0 %v9133_v6  ;;  %v1443_v45 = vor.u32 %v1442_v20, %v1439_v19  ;;  %v7936_v63 = vpack.c.bf16 %v1209_v57, %v1208_v54  ;;  %v9135_v6 = vld [vmem:[%s10920_s4 + $0xb0] sm:$0xff]   ;;  %v1453_v12 = vrot.slane %v1451_v4, 4  ;;  %v9143_v19 = vld [vmem:[%s10920_s4 + $0x18] sm:$0xff]   ;;  %v1213_v54 = vld [vmem:[#allocation2 + $0x128] sm:$0xfe]  ;;  %v1507_v59 = vshrl.u32 %v7942_v48, 16 }
 0x257   : > { %v1421_v25 = vsel %vm9655_vm2, %v1416_v14, %v1420_v5  ;;  %v1425_v2 = vrot.slane %v1423_v58, 4  ;;  %v1477_v5 = vsel %vm9655_vm2, %v1472_v62, %v1476_v46  ;;  %v1434_v14 = vrot.slane %v1432_v0, 5  ;;  %v1220_v46 = vld [vmem:[#allocation2 + $0x1d0] sm:$0x1] }
 0x258   : > { %v7035_v44 = vcombine.low %v1393_v18, %v1421_v25  ;;  %v1444_v56 = vrot.slane %v1443_v45, 4  ;;  %v1460_v8 = vshll.u32 %v7936_v63, 16  ;;  %v1456_v15 = vrot.slane %v1454_v7, 5  ;;  %v9138_v18 = vld [vmem:[%s10920_s4 + $0xa8] sm:$0xff]   ;;  %v9141_v45 = vld [vmem:[%s10920_s4 + $0xa0] sm:$0xff]  }
 0x259   : > { %8279 = vmatpush3.bf16.msra.mxu0 %v9134_v23  ;;  %v1429_v11 = vor.u32 %v1428_v3, %v1425_v2  ;;  %v1212_v23 = vld [vmem:[#allocation2 + $0x158] sm:$0xfe]  ;;  %v1215_v25 = vld [vmem:[#allocation2 + $0x8] sm:$0x1]  ;;  %v7944_v51 = vpack.c.bf16 %v1221_v47, %v1220_v46  ;;  %v1216_v58 = vld [vmem:[#allocation2 + $0x170] sm:$0x1]  ;;  %v7939_v4 = vpack.c.bf16 %v1213_v54, %v1213_v54 }
 0x25a   : > { %8768 = vmatprep.mubr.bf16.mxu1 %v7035_v44  ;;  %8280 = vmatprep.subr.bf16.mxu0 %v9136_v43  ;;  %v1449_v1 = vsel %vm9655_vm2, %v1444_v56, %v1448_v38  ;;  %v1462_v17 = vrot.slane %v1460_v8, 5  ;;  %v1457_v20 = vor.u32 %v1456_v15, %v1453_v12  ;;  %v7938_v43 = vpack.c.bf16 %v1212_v23, %v1211_v21  ;;  %v1228_v12 = vld [vmem:[#allocation2] sm:$0x1]  ;;  %v9147_v47 = vld [vmem:[%s10920_s4 + $0x90] sm:$0xff]  }
 0x25b   : > { %v7038_v10 = vcombine.low %v1449_v1, %v1477_v5  ;;  %v1430_v16 = vrot.slane %v1429_v11, 4  ;;  %v7940_v44 = vpack.c.bf16 %v1215_v25, %v1214_v24  ;;  %v1510_v63 = vshll.u32 %v7942_v48, 16  ;;  %v1222_v1 = vld [vmem:[#allocation2 + $0xf8] sm:$0x1]  ;;  %v1225_v11 = vld [vmem:[#allocation2 + $0x190] sm:$0xfe] }
 0x25c   : > { %v1458_v39 = vrot.slane %v1457_v20, 4  ;;  %v1479_v52 = vshrl.u32 %v7938_v43, 16  ;;  %v1482_v53 = vshll.u32 %v7938_v43, 16  ;;  %v1516_v0 = vshll.u32 %v7944_v51, 16  ;;  %v1234_v24 = vld [vmem:[#allocation2 + $0xd0] sm:$0x1] }
 0x25d   : > { %8281 = vmatpush3.bf16.msra.mxu0 %v9137_v50  ;;  %8769 = vmatmul.mubr.bf16.vlgmr.msra.gmra.mxu1 %v7038_v10  ;;  %v1435_v38 = vsel %vm9655_vm2, %v1430_v16, %v1434_v14  ;;  %v1488_v57 = vshll.u32 %v7940_v44, 16  ;;  %v1509_v3 = vrot.slane %v1507_v59, 4  ;;  %v7941_v5 = vpack.c.bf16 %v1216_v58, %v1216_v58  ;;  %v9149_v25 = vld [vmem:[%s10920_s4 + $0x8] sm:$0xff]  }
 0x25e   : > { %8282 = vmatprep.subr.bf16.mxu0 %v9139_v61  ;;  %8777 = vmatpush3.bf16.msra.mxu1 %v9651_v22  ;;  %v9145_v22 = vld [vmem:[%s10920_s4 + $0x50] sm:$0xff]   ;;  %v1463_v50 = vsel %vm9655_vm2, %v1458_v39, %v1462_v17  ;;  %v1481_v61 = vrot.slane %v1479_v52, 4  ;;  %v1484_v62 = vrot.slane %v1482_v53, 5  ;;  %v1512_v8 = vrot.slane %v1510_v63, 5  ;;  %v9151_v52 = vld [vmem:[%s10920_s4 + $0x40] sm:$0xff]  }
 0x25f   : > { %8778 = vmatprep.subr.bf16.mxu1 %v9135_v6  ;;  %v7037_v55 = vcombine.high %v1435_v38, %v1463_v50  ;;  %v7036_v56 = vcombine.low %v1435_v38, %v1463_v50  ;;  %v1490_v2 = vrot.slane %v1488_v57, 5  ;;  %v7943_v10 = vpack.c.bf16 %v1219_v60, %v1219_v60  ;;  %v1231_v17 = vld [vmem:[#allocation2 + $0x10] sm:$0xfe]  ;;  %v1223_v60 = vld [vmem:[#allocation2 + $0x40] sm:$0xfe] }
 0x260   : > { %v1485_v7 = vor.u32 %v1484_v62, %v1481_v61  ;;  %v1493_v14 = vshrl.u32 %v7939_v4, 16  ;;  %v1496_v15 = vshll.u32 %v7939_v4, 16  ;;  %v1502_v16 = vshll.u32 %v7941_v5, 16  ;;  %v9150_v61 = vld [vmem:[%s10920_s4 + $0x88] sm:$0xff]  }
 0x261   : > { %8283 = vmatpush3.bf16.msra.mxu0 %v9140_v9  ;;  %1871 = vmatprep.mubr.bf16.mxu0 %v7037_v55  ;;  %v1518_v9 = vrot.slane %v1516_v0, 5  ;;  %v1513_v21 = vor.u32 %v1512_v8, %v1509_v3  ;;  %v1524_v23 = vshll.u32 %v7943_v10, 16  ;;  %v7947_v50 = vpack.c.bf16 %v1225_v11, %v1225_v11  ;;  %v1226_v8 = vld [vmem:[#allocation2 + $0x1a0] sm:$0x1] }
 0x262   : > { %8284 = vmatprep.subr.bf16.mxu0 %v9142_v13  ;;  %8779 = vmatpush3.bf16.msra.mxu1 %v9135_v6  ;;  %v9144_v6 = vld [vmem:[%s10920_s4 + $0x98] sm:$0xff]   ;;  %v7945_v13 = vpack.c.bf16 %v1222_v1, %v1222_v1  ;;  %v1486_v20 = vrot.slane %v1485_v7, 4  ;;  %v1495_v38 = vrot.slane %v1493_v14, 4  ;;  %v1498_v39 = vrot.slane %v1496_v15, 5 }
 0x263   : > { %8780 = vmatprep.subr.bf16.mxu1 %v9138_v18  ;;  %1872 = vmatmul.mubr.bf16.gmra.mxu0 %v7036_v56  ;;  %v1504_v40 = vrot.slane %v1502_v16, 5  ;;  %v1514_v44 = vrot.slane %v1513_v21, 4  ;;  %v1526_v46 = vrot.slane %v1524_v23, 5  ;;  %v7949_v51 = vpack.c.bf16 %v1228_v12, %v1228_v12  ;;  %v9153_v21 = vld [vmem:[%s10920_s4 + $0x80] sm:$0xff]   ;;  %v1232_v23 = vld [vmem:[#allocation2 + $0x58] sm:$0x1] }
 0x264   : > { %v1530_v42 = vshll.u32 %v7945_v13, 16  ;;  %v1491_v43 = vsel %vm9655_vm2, %v1486_v20, %v1490_v2  ;;  %v1499_v48 = vor.u32 %v1498_v39, %v1495_v38  ;;  %v7951_v54 = vpack.c.bf16 %v1231_v17, %v1231_v17  ;;  %v1224_v2 = vld [vmem:[#allocation2 + $0xa8] sm:$0xfe]  ;;  %v1227_v13 = vld [vmem:[#allocation2 + $0xb8] sm:$0x1] }
 0x265   : > { %8285 = vmatpush3.bf16.msra.mxu0 %v9143_v19  ;;  %v9148_v19 = vld [vmem:[%s10920_s4 + $0x48] sm:$0xff]   ;;  %v1519_v53 = vsel %vm9655_vm2, %v1514_v44, %v1518_v9  ;;  %v7953_v55 = vpack.c.bf16 %v1234_v24, %v1234_v24  ;;  %v1549_v58 = vshrl.u32 %v7947_v50, 16  ;;  %v1552_v63 = vshll.u32 %v7947_v50, 16  ;;  %v9152_v9 = vld [vmem:[%s10920_s4] sm:$0xff]   ;;  %v1229_v17 = vld [vmem:[#allocation2 + $0x38] sm:$0xfe] }
 0x266   : > { %8286 = vmatprep.subr.bf16.mxu0 %v9145_v22  ;;  %8781 = vmatpush3.bf16.msra.mxu1 %v9138_v18  ;;  %v1521_v18 = vshrl.u32 %v7943_v10, 16  ;;  %v7040_v56 = vcombine.high %v1491_v43, %v1519_v53  ;;  %v7039_v57 = vcombine.low %v1491_v43, %v1519_v53  ;;  %v1500_v59 = vrot.slane %v1499_v48, 4  ;;  %v1233_v24 = vld [vmem:[#allocation2 + $0x88] sm:$0x1] }
 0x267   : > { %8782 = vmatprep.subr.bf16.mxu1 %v9141_v45  ;;  %v1558_v0 = vshll.u32 %v7949_v51, 16  ;;  %v1577_v1 = vshrl.u32 %v7951_v54, 16  ;;  %v1551_v4 = vrot.slane %v1549_v58, 4  ;;  %v1580_v5 = vshll.u32 %v7951_v54, 16 }
 0x268   : > { %v1523_v22 = vrot.slane %v1521_v18, 4  ;;  %1879 = vmatprep.mubr.bf16.mxu0 %v7040_v56  ;;  %v1505_v3 = vsel %vm9655_vm2, %v1500_v59, %v1504_v40  ;;  %v1586_v7 = vshll.u32 %v7953_v55, 16  ;;  %v1554_v11 = vrot.slane %v1552_v63, 5  ;;  %v9755_v63 = vld [vmem:[#allocation2 + $0x48] sm:$0xff] }
 0x269   : > { %8287 = vmatpush3.bf16.msra.mxu0 %v9146_v49  ;;  %v1532_v49 = vrot.slane %v1530_v42, 5  ;;  %v1579_v12 = vrot.slane %v1577_v1, 4  ;;  %v1582_v15 = vrot.slane %v1580_v5, 5  ;;  %v7946_v20 = vpack.c.bf16 %v1224_v2, %v1223_v60  ;;  %v9154_v1 = vld [vmem:[%s10920_s4 + $0x1f8] sm:$0xff]  }
 0x26a   : > { %8288 = vmatprep.subr.bf16.mxu0 %v9148_v19  ;;  %8783 = vmatpush3.bf16.msra.mxu1 %v9141_v45  ;;  %v1527_v45 = vor.u32 %v1526_v46, %v1523_v22  ;;  %v1588_v16 = vrot.slane %v1586_v7, 5  ;;  %v1230_v19 = vld [vmem:[#allocation2 + $0x20] sm:$0xfe]  ;;  %v1555_v18 = vor.u32 %v1554_v11, %v1551_v4  ;;  %v7952_v40 = vpack.c.bf16 %v1233_v24, %v1232_v23  ;;  %v9771_v11 = vld [vmem:[#allocation2 + $0x108] sm:$0xff]  ;;  %v9157_v23 = vld [vmem:[%s10920_s4 + $0x1f0] sm:$0xff]  }
 0x26b   : > { %8784 = vmatprep.subr.bf16.mxu1 %v9144_v6  ;;  %1880 = vmatmul.mubr.bf16.gmra.mxu0 %v7039_v57  ;;  %v7950_v38 = vpack.c.bf16 %v1230_v19, %v1229_v17  ;;  %v1583_v39 = vor.u32 %v1582_v15, %v1579_v12  ;;  %v1535_v42 = vshrl.u32 %v7946_v20, 16  ;;  %v1538_v43 = vshll.u32 %v7946_v20, 16  ;;  %v9764_v4 = vld [vmem:[#allocation2 + $0x180] sm:$0xff]  ;;  %v9159_v15 = vld [vmem:[%s10920_s4 + $0x230] sm:$0xff]   ;;  %v9155_v20 = vld [vmem:[%s10920_s4 + $0x1b8] sm:$0xff]  }
 0x26c   : > { %v1528_v62 = vrot.slane %v1527_v45, 4  ;;  %v1556_v44 = vrot.slane %v1555_v18, 4  ;;  %v9784_v17 = vld [vmem:[#allocation2 + $0x140] sm:$0xff]  ;;  %v9162_v18 = vld [vmem:[%s10920_s4 + $0x228] sm:$0xff]   ;;  %v9158_v24 = vld [vmem:[%s10920_s4 + $0x1b0] sm:$0xff]  }
 0x26d   : > { %8289 = vmatpush3.bf16.msra.mxu0 %v9149_v25  ;;  %v7948_v25 = vpack.c.bf16 %v1227_v13, %v1226_v8  ;;  %v1563_v46 = vshrl.u32 %v7950_v38, 16  ;;  %v1566_v48 = vshll.u32 %v7950_v38, 16  ;;  %v1537_v50 = vrot.slane %v1535_v42, 4  ;;  %v1043_v13 = vld [vmem:[#allocation2 + $0xb0] sm:$0xff]  ;;  %v9165_v38 = vld [vmem:[%s10920_s4 + $0x220] sm:$0xff]   ;;  %v9811_v42 = vld [vmem:[#allocation2 + $0x158] sm:$0xff] }
 0x26e   : > { %8290 = vmatprep.subr.bf16.mxu0 %v9151_v52  ;;  %8785 = vmatpush3.bf16.msra.mxu1 %v9144_v6  ;;  %v1533_v10 = vsel %vm9655_vm2, %v1528_v62, %v1532_v49  ;;  %v1560_v6 = vrot.slane %v1558_v0, 5  ;;  %v1584_v49 = vrot.slane %v1583_v39, 4  ;;  %v1540_v51 = vrot.slane %v1538_v43, 5  ;;  %v1044_v62 = vld [vmem:[#allocation2 + $0x1b0] sm:$0xff]  ;;  %v9806_v39 = vld [vmem:[#allocation2 + $0x138] sm:$0xff]  ;;  %v9813_v43 = vld [vmem:[#allocation2 + $0xa0] sm:$0xff] }
 0x26f   : > { %8786 = vmatprep.subr.bf16.mxu1 %v9147_v47  ;;  %v7041_v14 = vcombine.low %v1505_v3, %v1533_v10  ;;  %v1544_v22 = vshll.u32 %v7948_v25, 16  ;;  %v1572_v52 = vshll.u32 %v7952_v40, 16  ;;  %v1565_v45 = vrot.slane %v1563_v46, 4  ;;  %v1045_v3 = vld [vmem:[#allocation2 + $0xd8] sm:$0xff]  ;;  %v9801_v25 = vld [vmem:[#allocation2 + $0x120] sm:$0xff]  ;;  %v9160_v40 = vld [vmem:[%s10920_s4 + $0x1e8] sm:$0xff]  }
 0x270   : > { %v1561_v53 = vsel %vm9655_vm2, %v1556_v44, %v1560_v6  ;;  %v1568_v54 = vrot.slane %v1566_v48, 5  ;;  %v1541_v55 = vor.u32 %v1540_v51, %v1537_v50  ;;  %v7955_v8 = vpack.c.bf16 %v9755_v63, %v1044_v62  ;;  %v9156_v10 = vld [vmem:[%s10920_s4 + $0x238] sm:$0xff]   ;;  %v9773_v6 = vld [vmem:[#allocation2 + $0x80] sm:$0xff]  ;;  %v9161_v44 = vld [vmem:[%s10920_s4 + $0x1a8] sm:$0xff]  }
 0x271   : > { %8291 = vmatpush3.bf16.msra.mxu0 %v9152_v9  ;;  %8772 = vmatprep.mubr.bf16.mxu1 %v7041_v14  ;;  %v1546_v56 = vrot.slane %v1544_v22, 5  ;;  %v1574_v57 = vrot.slane %v1572_v52, 5  ;;  %v7956_v9 = vpack.c.bf16 %v9764_v4, %v1045_v3  ;;  %v7959_v12 = vpack.c.bf16 %v9773_v6, %v9771_v11  ;;  %v9777_v14 = vld [vmem:[#allocation2 + $0x130] sm:$0xff]  ;;  %v9163_v46 = vld [vmem:[%s10920_s4 + $0x1e0] sm:$0xff]   ;;  %v9168_v48 = vld [vmem:[%s10920_s4 + $0x218] sm:$0xff]  }
 0x272   : > { %8787 = vmatpush3.bf16.msra.mxu1 %v9147_v47  ;;  %v1589_v47 = vsel %vm9655_vm2, %v1584_v49, %v1588_v16  ;;  %v1569_v58 = vor.u32 %v1568_v54, %v1565_v45  ;;  %v1542_v60 = vrot.slane %v1541_v55, 4  ;;  %8328 = vmatprep.subr.bf16.mxu0 %v9154_v1  ;;  %v9782_v16 = vld [vmem:[#allocation2 + $0x150] sm:$0xff]  ;;  %v7954_v19 = vpack.c.bf16 %v9777_v14, %v1043_v13  ;;  %v9828_v50 = vld [vmem:[#allocation2 + $0x128] sm:$0xff]  ;;  %v9164_v54 = vld [vmem:[%s10920_s4 + $0x1a0] sm:$0xff]  }
 0x273   : > { %8788 = vmatprep.subr.bf16.mxu1 %v9150_v61  ;;  %v7044_v59 = vcombine.low %v1561_v53, %v1589_v47  ;;  %v7957_v22 = vpack.c.bf16 %v9806_v39, %v9801_v25  ;;  %v7961_v49 = vpack.c.bf16 %v9813_v43, %v9811_v42  ;;  %v9830_v51 = vld [vmem:[#allocation2 + $0x148] sm:$0xff]  ;;  %v9832_v52 = vld [vmem:[#allocation2 + $0x190] sm:$0xff]  ;;  %v9167_v1 = vld [vmem:[%s10920_s4 + $0x198] sm:$0xff]  }
 0x274   : > { %v1570_v0 = vrot.slane %v1569_v58, 4  ;;  %v7962_v53 = vpack.c.bf16 %v9830_v51, %v9828_v50  ;;  %v9836_v45 = vld [vmem:[#allocation2 + $0x10] sm:$0xff]  ;;  %v9853_v58 = vld [vmem:[#allocation2 + $0xa8] sm:$0xff] }
 0x275   : > { %8773 = vmatmul.mubr.bf16.gmra.mxu1 %v7044_v59  ;;  %v9841_v47 = vld [vmem:[#allocation2 + $0xf0] sm:$0xff]  ;;  %v7965_v55 = vpack.c.bf16 %v9836_v45, %v9832_v52 }
 0x276   : > { %8789 = vmatpush3.bf16.msra.mxu1 %v9150_v61  ;;  %v1547_v61 = vsel %vm9655_vm2, %v1542_v60, %v1546_v56  ;;  %v1575_v2 = vsel %vm9655_vm2, %v1570_v0, %v1574_v57  ;;  %8792 = vmatprep.mubr.bf16.mxu1 %v7956_v9  ;;  %v9845_v56 = vld [vmem:[#allocation2 + $0xc0] sm:$0xff]  ;;  %v9166_v57 = vld [vmem:[%s10920_s4 + $0x1d8] sm:$0xff]   ;;  %v9171_v59 = vld [vmem:[%s10920_s4 + $0x210] sm:$0xff]  }
 0x277   : > { %8790 = vmatprep.subr.bf16.mxu1 %v9153_v21  ;;  %v7043_v5 = vcombine.high %v1547_v61, %v1575_v2  ;;  %v7042_v7 = vcombine.low %v1547_v61, %v1575_v2  ;;  %v9855_v60 = vld [vmem:[#allocation2 + $0x20] sm:$0xff]  ;;  %v7960_v0 = vpack.c.bf16 %v9845_v56, %v9841_v47  ;;  %v9174_v2 = vld [vmem:[%s10920_s4 + $0x208] sm:$0xff]   ;;  %v9169_v3 = vld [vmem:[%s10920_s4 + $0x1d0] sm:$0xff]  }
 0x278   : > { %v7964_v61 = vpack.c.bf16 %v9855_v60, %v9853_v58  ;;  %v9172_v9 = vld [vmem:[%s10920_s4 + $0x1c8] sm:$0xff]   ;;  %v2260_v13 = vld [vmem:[#allocation2 + $0x1b0] sm:$0xfc] }
 0x279   : > { %1887 = vmatprep.mubr.bf16.mxu0 %v7043_v5  ;;  %v9170_v5 = vld [vmem:[%s10920_s4 + $0x190] sm:$0xff]  }
 0x27a   : > { %8791 = vmatpush3.bf16.msra.mxu1 %v9153_v21  ;;  %1888 = vmatmul.mubr.bf16.gmra.mxu0 %v7042_v7  ;;  %v7958_v21 = vpack.c.bf16 %v9784_v17, %v9782_v16  ;;  %v9878_v7 = vld [vmem:[#allocation2 + $0x40] sm:$0xff] }
 0x27b   : > { %8800 = vmatprep.subr.bf16.mxu1 %v9156_v10  ;;  %2161 = vmatprep.mubr.bf16.mxu0 %v7955_v8  ;;  %v9880_v8 = vld [vmem:[#allocation2 + $0x38] sm:$0xff] }
 0x27d   : > { %8793 = vmatmul.mubr.bf16.vlgmr.msra.gmra.mxu1 %v7959_v12  ;;  %v2259_v12 = vld [vmem:[#allocation2 + $0xb0] sm:$0xfc] }
 0x27e   : > { %8801 = vmatpush3.bf16.msra.mxu1 %v9156_v10  ;;  %8796 = vmatprep.mubr.bf16.mxu1 %v7962_v53  ;;  %v9177_v10 = vld [vmem:[%s10920_s4 + $0x200] sm:$0xff]   ;;  %v2261_v53 = vld [vmem:[#allocation2 + $0xd8] sm:$0xfc] }
 0x27f   : > { %8802 = vmatprep.subr.bf16.mxu1 %v9159_v15 }
 0x282   : > { %8803 = vmatpush3.bf16.msra.mxu1 %v9159_v15  ;;  %2162 = vmatmul.mubr.bf16.vlgmr.msra.gmra.mxu0 %v7954_v19  ;;  %v2262_v15 = vld [vmem:[#allocation2 + $0x18] sm:$0x3]  ;;  %v2263_v19 = vld [vmem:[#allocation2 + $0x50] sm:$0x3] }
 0x283   : > { %8804 = vmatprep.subr.bf16.mxu1 %v9162_v18  ;;  %8329 = vmatpush3.bf16.msra.mxu0 %v9155_v20  ;;  %v2265_v20 = vld [vmem:[#allocation2 + $0x130] sm:$0xfc] }
 0x284   : > { %2169 = vmatprep.mubr.bf16.mxu0 %v7958_v21  ;;  %8330 = vmatprep.subr.bf16.mxu0 %v9157_v23  ;;  %v2266_v21 = vld [vmem:[#allocation2 + $0x48] sm:$0xfc]  ;;  %v7966_v23 = vpack.c.bf16 %v2260_v13, %v2259_v12 }
 0x285   : > { %8797 = vmatmul.mubr.bf16.gmra.mxu1 %v7965_v55  ;;  %v2264_v55 = vld [vmem:[#allocation2 + $0x168] sm:$0x3] }
 0x286   : > { %8805 = vmatpush3.bf16.msra.mxu1 %v9162_v18  ;;  %v2268_v18 = vld [vmem:[#allocation2 + $0x110] sm:$0x3] }
 0x287   : > { %8806 = vmatprep.subr.bf16.mxu1 %v9165_v38  ;;  %8331 = vmatpush3.bf16.msra.mxu0 %v9158_v24  ;;  %v7968_v24 = vpack.c.bf16 %v2263_v19, %v2262_v15  ;;  %v2273_v19 = vld [vmem:[#allocation2 + $0x108] sm:$0xfc] }
 0x288   : > { %8332 = vmatprep.subr.bf16.mxu0 %v9160_v40  ;;  %v7970_v40 = vpack.c.bf16 %v2266_v21, %v2265_v20 }
 0x28a   : > { %8807 = vmatpush3.bf16.msra.mxu1 %v9165_v38  ;;  %2170 = vmatmul.mubr.bf16.gmra.mxu0 %v7957_v22  ;;  %v2269_v38 = vld [vmem:[#allocation2 + $0x118] sm:$0x3]  ;;  %v9173_v22 = vld [vmem:[%s10920_s4 + $0x188] sm:$0xff]  }
 0x28b   : > { %8808 = vmatprep.subr.bf16.mxu1 %v9168_v48  ;;  %8333 = vmatpush3.bf16.msra.mxu0 %v9161_v44  ;;  %v7963_v44 = vpack.c.bf16 %v9880_v8, %v9878_v7 }
 0x28c   : > { %2177 = vmatprep.mubr.bf16.mxu0 %v7961_v49  ;;  %8334 = vmatprep.subr.bf16.mxu0 %v9163_v46  ;;  %v7972_v46 = vpack.c.bf16 %v2269_v38, %v2268_v18  ;;  %v2440_v49 = vrot.slane %v7968_v24, 5  ;;  %v2276_v18 = vld [vmem:[#allocation2 + $0x188] sm:$0x3]  ;;  %v7975_v24 = vpack.c.bf16 %v2273_v19, %v2273_v19  ;;  %v9176_v38 = vld [vmem:[%s10920_s4 + $0x180] sm:$0xff]  }
 0x28d   : > { %v2271_v19 = vld [vmem:[#allocation2 + $0x120] sm:$0xfc] }
 0x28e   : > { %8809 = vmatpush3.bf16.msra.mxu1 %v9168_v48  ;;  %v7137_v48 = vrot.slane %v7966_v23, 9  ;;  %v2279_v23 = vld [vmem:[#allocation2 + $0x80] sm:$0xfc] }
 0x28f   : > { %8810 = vmatprep.subr.bf16.mxu1 %v9171_v59  ;;  %8335 = vmatpush3.bf16.msra.mxu0 %v9164_v54  ;;  %v7139_v54 = vrot.slane %v7970_v40, 9 }
 0x290   : > { %8336 = vmatprep.subr.bf16.mxu0 %v9166_v57  ;;  %v2267_v57 = vld [vmem:[#allocation2 + $0x180] sm:$0xfc] }
 0x291   : > { %v7971_v12 = vpack.c.bf16 %v2267_v57, %v2267_v57  ;;  %v9179_v57 = vld [vmem:[%s10920_s4 + $0x278] sm:$0xff]  }
 0x292   : > { %8811 = vmatpush3.bf16.msra.mxu1 %v9171_v59  ;;  %2178 = vmatmul.mubr.bf16.gmra.mxu0 %v7960_v0  ;;  %v7967_v59 = vpack.c.bf16 %v2261_v53, %v2261_v53  ;;  %v9896_v0 = vld [vmem:[%s10920_s4 + $0x2f8] sm:$0xff]   ;;  %v7979_v53 = vpack.c.bf16 %v2279_v23, %v2279_v23 }
 0x293   : > { %8812 = vmatprep.subr.bf16.mxu1 %v9174_v2  ;;  %8337 = vmatpush3.bf16.msra.mxu0 %v9167_v1  ;;  %v9175_v1 = vld [vmem:[%s10920_s4 + $0x1c0] sm:$0xff]   ;;  %v7140_v21 = vrot.slane %v7971_v12, 9  ;;  %v9181_v12 = vld [vmem:[%s10920_s4 + $0x2b0] sm:$0xff]  }
 0x294   : > { %2185 = vmatprep.mubr.bf16.mxu0 %v7964_v61  ;;  %8338 = vmatprep.subr.bf16.mxu0 %v9169_v3  ;;  %v2441_v61 = vsel %vm9858_vm5, %v7137_v48, %v2440_v49  ;;  %v2270_v3 = vld [vmem:[#allocation2 + $0x98] sm:$0x3]  ;;  %v7138_v15 = vrot.slane %v7967_v59, 9  ;;  %v7977_v48 = vpack.c.bf16 %v2276_v18, %v2276_v18  ;;  %v2277_v18 = vld [vmem:[#allocation2 + $0x138] sm:$0xfc] }
 0x295   : > { %v7973_v13 = vpack.c.bf16 %v2270_v3, %v2270_v3  ;;  %v7144_v3 = vrot.slane %v7979_v53, 9 }
 0x296   : > { %8813 = vmatpush3.bf16.msra.mxu1 %v9174_v2  ;;  %v2448_v2 = vrot.slane %v7972_v46, 5  ;;  %v2282_v46 = vld [vmem:[#allocation2 + $0x28] sm:$0x3]  ;;  %v2460_v59 = vrot.slane %v7977_v48, 5 }
 0x297   : > { %8814 = vmatprep.subr.bf16.mxu1 %v9177_v10  ;;  %8339 = vmatpush3.bf16.msra.mxu0 %v9170_v5  ;;  %v7969_v5 = vpack.c.bf16 %v2264_v55, %v2264_v55  ;;  %v2452_v40 = vrot.slane %v7973_v13, 5  ;;  %v7142_v55 = vrot.slane %v7975_v24, 9 }
 0x298   : > { %8340 = vmatprep.subr.bf16.mxu0 %v9172_v9  ;;  %v2449_v20 = vsel %vm9858_vm5, %v7139_v54, %v2448_v2  ;;  %v7981_v54 = vpack.c.bf16 %v2282_v46, %v2282_v46  ;;  %v2281_v46 = vld [vmem:[#allocation2 + $0x1b8] sm:$0x3] }
 0x299   : > { %v2444_v9 = vrot.slane %v7969_v5, 5  ;;  %v2461_v13 = vsel %vm9858_vm5, %v7142_v55, %v2460_v59 }
 0x29a   : > { %8815 = vmatpush3.bf16.msra.mxu1 %v9177_v10  ;;  %2186 = vmatmul.mubr.bf16.gmra.mxu0 %v7963_v44  ;;  %v7202_v10 = vcombine.high %v2441_v61, %v2449_v20  ;;  %v9178_v44 = vld [vmem:[%s10920_s4 + $0x2b8] sm:$0xff]   ;;  %v2468_v5 = vrot.slane %v7981_v54, 5  ;;  %v9184_v54 = vld [vmem:[%s10920_s4 + $0x2a8] sm:$0xff]  }
 0x29b   : > { %8824 = vmatprep.subr.bf16.mxu1 %v9896_v0  ;;  %8341 = vmatpush3.bf16.msra.mxu0 %v9173_v22  ;;  %v2445_v49 = vsel %vm9858_vm5, %v7138_v15, %v2444_v9  ;;  %v2453_v22 = vsel %vm9858_vm5, %v7140_v21, %v2452_v40  ;;  %v9183_v15 = vld [vmem:[%s10920_s4 + $0x2f0] sm:$0xff]   ;;  %v2275_v21 = vld [vmem:[#allocation2 + $0xe0] sm:$0x3]  ;;  %v2280_v40 = vld [vmem:[#allocation2 + $0x1a8] sm:$0x3] }
 0x29c   : > { %8342 = vmatprep.subr.bf16.mxu0 %v9175_v1  ;;  %2775 = vmatprep.mubr.bf16.mxu0 %v7202_v10  ;;  %v7201_v1 = vcombine.low %v2441_v61, %v2449_v20  ;;  %v7203_v2 = vcombine.low %v2445_v49, %v2453_v22  ;;  %v2272_v9 = vld [vmem:[#allocation2 + $0x150] sm:$0xfc]  ;;  %v2469_v61 = vsel %vm9858_vm5, %v7144_v3, %v2468_v5  ;;  %v2274_v20 = vld [vmem:[#allocation2 + $0x60] sm:$0x3]  ;;  %v2278_v10 = vld [vmem:[#allocation2 + $0x140] sm:$0xfc] }
 0x29d   : > { %v7974_v23 = vpack.c.bf16 %v2272_v9, %v2271_v19  ;;  %v7206_v24 = vcombine.low %v2461_v13, %v2469_v61  ;;  %v7976_v48 = vpack.c.bf16 %v2275_v21, %v2274_v20  ;;  %v7978_v49 = vpack.c.bf16 %v2278_v10, %v2277_v18  ;;  %v9186_v22 = vld [vmem:[%s10920_s4 + $0x2e8] sm:$0xff]   ;;  %v9187_v5 = vld [vmem:[%s10920_s4 + $0x2a0] sm:$0xff]   ;;  %v2283_v19 = vld [vmem:[#allocation2 + $0xf0] sm:$0xfc] }
 0x29e   : > { %8816 = vmatprep.mubr.bf16.mxu1 %v7203_v2  ;;  %v9185_v3 = vld [vmem:[%s10920_s4 + $0x268] sm:$0xff]   ;;  %v9189_v13 = vld [vmem:[%s10920_s4 + $0x2e0] sm:$0xff]   ;;  %v2284_v9 = vld [vmem:[#allocation2 + $0x158] sm:$0xfc] }
 0x29f   : > { %8343 = vmatpush3.bf16.msra.mxu0 %v9176_v38  ;;  %v9182_v38 = vld [vmem:[%s10920_s4 + $0x270] sm:$0xff]   ;;  %v7141_v53 = vrot.slane %v7974_v23, 9  ;;  %8817 = vmatmul.mubr.bf16.vlgmr.msra.gmra.mxu1 %v7206_v24  ;;  %v2456_v55 = vrot.slane %v7976_v48, 5  ;;  %v7143_v59 = vrot.slane %v7978_v49, 9  ;;  %v2286_v61 = vld [vmem:[#allocation2 + $0x1d8] sm:$0x3]  ;;  %v7982_v24 = vpack.c.bf16 %v2284_v9, %v2283_v19 }
 0x2a0   : > { %8380 = vmatprep.subr.bf16.mxu0 %v9178_v44  ;;  %v7980_v44 = vpack.c.bf16 %v2281_v46, %v2280_v40  ;;  %8825 = vmatpush3.bf16.msra.mxu1 %v9896_v0  ;;  %v2287_v20 = vld [vmem:[#allocation2 + $0x8] sm:$0x3]  ;;  %v2289_v21 = vld [vmem:[#allocation2 + $0xc0] sm:$0xfc]  ;;  %v2292_v23 = vld [vmem:[#allocation2 + $0x1d0] sm:$0x3] }
 0x2a1   : > { %8826 = vmatprep.subr.bf16.mxu1 %v9183_v15  ;;  %v2290_v18 = vld [vmem:[#allocation2 + $0xa0] sm:$0xfc]  ;;  %v7984_v10 = vpack.c.bf16 %v2287_v20, %v2286_v61  ;;  %v7145_v48 = vrot.slane %v7982_v24, 9  ;;  %v2297_v9 = vld [vmem:[#allocation2 + $0x190] sm:$0xfc] }
 0x2a2   : > { %2776 = vmatmul.mubr.bf16.vlgmr.msra.gmra.mxu0 %v7201_v1  ;;  %v2464_v2 = vrot.slane %v7980_v44, 5  ;;  %v2457_v1 = vsel %vm9858_vm5, %v7141_v53, %v2456_v55  ;;  %v7986_v40 = vpack.c.bf16 %v2290_v18, %v2289_v21  ;;  %v9188_v46 = vld [vmem:[%s10920_s4 + $0x260] sm:$0xff]   ;;  %v2285_v44 = vld [vmem:[#allocation2 + $0x128] sm:$0xfc]  ;;  %v2288_v55 = vld [vmem:[#allocation2 + $0x170] sm:$0x3]  ;;  %v7991_v24 = vpack.c.bf16 %v2297_v9, %v2297_v9 }
 0x2a3   : > { %8381 = vmatpush3.bf16.msra.mxu0 %v9179_v57  ;;  %v2472_v49 = vrot.slane %v7984_v10, 5  ;;  %v2300_v18 = vld [vmem:[#allocation2] sm:$0x3]  ;;  %v2296_v9 = vld [vmem:[#allocation2 + $0xa8] sm:$0xfc] }
 0x2a4   : > { %8382 = vmatprep.subr.bf16.mxu0 %v9181_v12  ;;  %v2465_v57 = vsel %vm9858_vm5, %v7143_v59, %v2464_v2  ;;  %8827 = vmatpush3.bf16.msra.mxu1 %v9183_v15  ;;  %v7147_v53 = vrot.slane %v7986_v40, 9  ;;  %v2291_v59 = vld [vmem:[#allocation2 + $0x148] sm:$0xfc]  ;;  %v7983_v2 = vpack.c.bf16 %v2285_v44, %v2285_v44 }
 0x2a5   : > { %v7205_v0 = vcombine.high %v2457_v1, %v2465_v57  ;;  %v7204_v12 = vcombine.low %v2457_v1, %v2465_v57  ;;  %8828 = vmatprep.subr.bf16.mxu1 %v9186_v22  ;;  %v2473_v1 = vsel %vm9858_vm5, %v7145_v48, %v2472_v49  ;;  %v2294_v57 = vld [vmem:[#allocation2 + $0xf8] sm:$0x3]  ;;  %v2306_v48 = vld [vmem:[#allocation2 + $0xd0] sm:$0x3]  ;;  %v7993_v49 = vpack.c.bf16 %v2300_v18, %v2300_v18  ;;  %v2301_v18 = vld [vmem:[#allocation2 + $0x38] sm:$0xfc] }
 0x2a6   : > { %v7146_v19 = vrot.slane %v7983_v2, 9  ;;  %v9194_v2 = vld [vmem:[%s10920_s4 + $0x250] sm:$0xff]  }
 0x2a7   : > { %8383 = vmatpush3.bf16.msra.mxu0 %v9182_v38  ;;  %2783 = vmatprep.mubr.bf16.mxu0 %v7205_v0  ;;  %v2293_v38 = vld [vmem:[#allocation2 + $0x100] sm:$0x3]  ;;  %v7985_v0 = vpack.c.bf16 %v2288_v55, %v2288_v55  ;;  %v7150_v55 = vrot.slane %v7991_v24, 9 }
 0x2a8   : > { %8384 = vmatprep.subr.bf16.mxu0 %v9184_v54  ;;  %v7988_v15 = vpack.c.bf16 %v2293_v38, %v2292_v23  ;;  %8829 = vmatpush3.bf16.msra.mxu1 %v9186_v22  ;;  %v9190_v54 = vld [vmem:[%s10920_s4 + $0x298] sm:$0xff]   ;;  %v2303_v23 = vld [vmem:[#allocation2 + $0x10] sm:$0xfc] }
 0x2a9   : > { %8830 = vmatprep.subr.bf16.mxu1 %v9189_v13  ;;  %v9192_v22 = vld [vmem:[%s10920_s4 + $0x2d8] sm:$0xff]   ;;  %v2476_v20 = vrot.slane %v7985_v0, 5  ;;  %v7995_v44 = vpack.c.bf16 %v2303_v23, %v2303_v23 }
 0x2aa   : > { %2784 = vmatmul.mubr.bf16.gmra.mxu0 %v7204_v12  ;;  %v7987_v12 = vpack.c.bf16 %v2291_v59, %v2291_v59  ;;  %v2492_v59 = vrot.slane %v7993_v49, 5 }
 0x2ab   : > { %8385 = vmatpush3.bf16.msra.mxu0 %v9185_v3  ;;  %v2480_v3 = vrot.slane %v7988_v15, 5  ;;  %v9191_v15 = vld [vmem:[%s10920_s4 + $0x258] sm:$0xff]  }
 0x2ac   : > { %8386 = vmatprep.subr.bf16.mxu0 %v9187_v5  ;;  %v7989_v5 = vpack.c.bf16 %v2294_v57, %v2294_v57  ;;  %v7148_v21 = vrot.slane %v7987_v12, 9  ;;  %8831 = vmatpush3.bf16.msra.mxu1 %v9189_v13  ;;  %v9193_v13 = vld [vmem:[%s10920_s4 + $0x290] sm:$0xff]   ;;  %v7152_v57 = vrot.slane %v7995_v44, 9  ;;  %v9196_v12 = vld [vmem:[%s10920_s4 + $0x288] sm:$0xff]  }
 0x2ad   : > { %v2481_v61 = vsel %vm9858_vm5, %v7147_v53, %v2480_v3  ;;  %v7997_v53 = vpack.c.bf16 %v2306_v48, %v2306_v48  ;;  %8832 = vmatprep.subr.bf16.mxu1 %v9192_v22  ;;  %v8000_v48 = vpack.c.bf16 %v9771_v11, %v9764_v4 }
 0x2ae   : > { %v7208_v10 = vcombine.high %v2473_v1, %v2481_v61  ;;  %v7207_v38 = vcombine.low %v2473_v1, %v2481_v61  ;;  %v2484_v40 = vrot.slane %v7989_v5, 5  ;;  %v9195_v1 = vld [vmem:[%s10920_s4 + $0x2d0] sm:$0xff]   ;;  %v2493_v5 = vsel %vm9858_vm5, %v7150_v55, %v2492_v59 }
 0x2af   : > { %8387 = vmatpush3.bf16.msra.mxu0 %v9188_v46  ;;  %v2477_v46 = vsel %vm9858_vm5, %v7146_v19, %v2476_v20  ;;  %v2500_v0 = vrot.slane %v7997_v53, 5  ;;  %v2295_v19 = vld [vmem:[#allocation2 + $0x40] sm:$0xfc]  ;;  %v2298_v20 = vld [vmem:[#allocation2 + $0x1a0] sm:$0x3]  ;;  %v9198_v53 = vld [vmem:[%s10920_s4 + $0x2c8] sm:$0xff]  }
 0x2b0   : > { %8388 = vmatprep.subr.bf16.mxu0 %v9190_v54  ;;  %2791 = vmatprep.mubr.bf16.mxu0 %v7208_v10  ;;  %v2485_v54 = vsel %vm9858_vm5, %v7148_v21, %v2484_v40  ;;  %v2299_v21 = vld [vmem:[#allocation2 + $0xb8] sm:$0x3]  ;;  %v7990_v23 = vpack.c.bf16 %v2296_v9, %v2295_v19  ;;  %v2302_v10 = vld [vmem:[#allocation2 + $0x20] sm:$0xfc]  ;;  %v2305_v40 = vld [vmem:[#allocation2 + $0x88] sm:$0x3]  ;;  %v8003_v19 = vpack.c.bf16 %v9828_v50, %v9773_v6 }
 0x2b1   : > { %v7209_v3 = vcombine.low %v2477_v46, %v2485_v54  ;;  %8833 = vmatpush3.bf16.msra.mxu1 %v9192_v22  ;;  %v2501_v61 = vsel %vm9858_vm5, %v7152_v57, %v2500_v0  ;;  %v9197_v22 = vld [vmem:[%s10920_s4 + $0x248] sm:$0xff]   ;;  %v7994_v49 = vpack.c.bf16 %v2302_v10, %v2301_v18  ;;  %v7999_v0 = vpack.c.bf16 %v9782_v16, %v9755_v63  ;;  %v9207_v16 = vld [vmem:[%s10920_s4 + $0x3b0] sm:$0xff]   ;;  %v9215_v10 = vld [vmem:[%s10920_s4 + $0x318] sm:$0xff]  }
 0x2b2   : > { %2792 = vmatmul.mubr.bf16.gmra.mxu0 %v7207_v38  ;;  %v7212_v24 = vcombine.low %v2493_v5, %v2501_v61  ;;  %8834 = vmatprep.subr.bf16.mxu1 %v9195_v1  ;;  %v2304_v38 = vld [vmem:[#allocation2 + $0x58] sm:$0x3]  ;;  %v7149_v44 = vrot.slane %v7990_v23, 9  ;;  %v8006_v63 = vpack.c.bf16 %v9832_v52, %v9830_v51  ;;  %v7998_v9 = vpack.c.bf16 %v9801_v25, %v9777_v14  ;;  %v9205_v50 = vld [vmem:[%s10920_s4 + $0x370] sm:$0xff]   ;;  %v9210_v51 = vld [vmem:[%s10920_s4 + $0x3a8] sm:$0xff]  }
 0x2b3   : > { %8389 = vmatpush3.bf16.msra.mxu0 %v9191_v15  ;;  %8820 = vmatprep.mubr.bf16.mxu1 %v7209_v3  ;;  %v7992_v15 = vpack.c.bf16 %v2299_v21, %v2298_v20  ;;  %v7996_v46 = vpack.c.bf16 %v2305_v40, %v2304_v38  ;;  %v7151_v54 = vrot.slane %v7994_v49, 9  ;;  %v9204_v5 = vld [vmem:[%s10920_s4 + $0x3b8] sm:$0xff]   ;;  %v8002_v6 = vpack.c.bf16 %v9811_v42, %v9784_v17  ;;  %v9206_v14 = vld [vmem:[%s10920_s4 + $0x330] sm:$0xff]   ;;  %v9208_v17 = vld [vmem:[%s10920_s4 + $0x368] sm:$0xff]  }
 0x2b4   : > { %8390 = vmatprep.subr.bf16.mxu0 %v9193_v13  ;;  %8821 = vmatmul.mubr.bf16.gmra.mxu1 %v7212_v24  ;;  %v9199_v13 = vld [vmem:[%s10920_s4 + $0x280] sm:$0xff]   ;;  %v9203_v61 = vld [vmem:[%s10920_s4 + $0x338] sm:$0xff]   ;;  %v8001_v52 = vpack.c.bf16 %v9841_v47, %v9806_v39  ;;  %v9209_v21 = vld [vmem:[%s10920_s4 + $0x328] sm:$0xff]   ;;  %v8005_v18 = vpack.c.bf16 %v9853_v58, %v9813_v43  ;;  %v8004_v24 = vpack.c.bf16 %v9878_v7, %v9845_v56 }
 0x2b5   : > { %v2488_v55 = vrot.slane %v7992_v15, 5  ;;  %v2496_v59 = vrot.slane %v7996_v46, 5  ;;  %8835 = vmatpush3.bf16.msra.mxu1 %v9195_v1  ;;  %8840 = vmatprep.mubr.bf16.mxu1 %v8000_v48  ;;  %v9201_v1 = vld [vmem:[%s10920_s4 + $0x2c0] sm:$0xff]   ;;  %v2905_v42 = vld [vmem:[#allocation2 + $0x198] sm:$0xff]  ;;  %v2904_v47 = vld [vmem:[#allocation2 + $0xc8] sm:$0xff] }
 0x2b6   : > { %8836 = vmatprep.subr.bf16.mxu1 %v9198_v53  ;;  %v9213_v25 = vld [vmem:[%s10920_s4 + $0x3a0] sm:$0xff]   ;;  %v8009_v20 = vpack.c.bf16 %v2905_v42, %v9836_v45  ;;  %v9216_v39 = vld [vmem:[%s10920_s4 + $0x398] sm:$0xff]   ;;  %v9219_v58 = vld [vmem:[%s10920_s4 + $0x390] sm:$0xff]   ;;  %v8008_v40 = vpack.c.bf16 %v2904_v47, %v9855_v60 }
 0x2b7   : > { %8391 = vmatpush3.bf16.msra.mxu0 %v9194_v2  ;;  %v2489_v4 = vsel %vm9858_vm5, %v7149_v44, %v2488_v55  ;;  %v2497_v11 = vsel %vm9858_vm5, %v7151_v54, %v2496_v59  ;;  %v9200_v2 = vld [vmem:[%s10920_s4 + $0x240] sm:$0xff]   ;;  %v9214_v43 = vld [vmem:[%s10920_s4 + $0x358] sm:$0xff]   ;;  %v9217_v38 = vld [vmem:[%s10920_s4 + $0x350] sm:$0xff]  }
 0x2b8   : > { %8392 = vmatprep.subr.bf16.mxu0 %v9196_v12  ;;  %v7211_v3 = vcombine.high %v2489_v4, %v2497_v11  ;;  %v7210_v57 = vcombine.low %v2489_v4, %v2497_v11  ;;  %v9202_v12 = vld [vmem:[%s10920_s4 + $0x378] sm:$0xff]   ;;  %v9211_v23 = vld [vmem:[%s10920_s4 + $0x360] sm:$0xff]   ;;  %v2903_v15 = vld [vmem:[#allocation2 + $0x68] sm:$0xff] }
 0x2b9   : > { %8837 = vmatpush3.bf16.msra.mxu1 %v9198_v53  ;;  %v9212_v45 = vld [vmem:[%s10920_s4 + $0x320] sm:$0xff]   ;;  %v3333_v48 = vld [vmem:[#allocation2 + $0x130] sm:$0xfe]  ;;  %v3334_v7 = vld [vmem:[#allocation2 + $0x48] sm:$0xfe] }
 0x2ba   : > { %2799 = vmatprep.mubr.bf16.mxu0 %v7211_v3  ;;  %8838 = vmatprep.subr.bf16.mxu1 %v9201_v1  ;;  %v9218_v56 = vld [vmem:[%s10920_s4 + $0x310] sm:$0xff]   ;;  %v3337_v46 = vld [vmem:[#allocation2 + $0x118] sm:$0x1]  ;;  %v9220_v60 = vld [vmem:[%s10920_s4 + $0x348] sm:$0xff]  }
 0x2bb   : > { %8393 = vmatpush3.bf16.msra.mxu0 %v9197_v22  ;;  %v9222_v22 = vld [vmem:[%s10920_s4 + $0x388] sm:$0xff]   ;;  %v3336_v49 = vld [vmem:[#allocation2 + $0x110] sm:$0x1]  ;;  %v3339_v44 = vld [vmem:[#allocation2 + $0x120] sm:$0xfe] }
 0x2bc   : > { %8394 = vmatprep.subr.bf16.mxu0 %v9199_v13  ;;  %2800 = vmatmul.mubr.bf16.gmra.mxu0 %v7210_v57  ;;  %v3340_v53 = vld [vmem:[#allocation2 + $0x150] sm:$0xfe]  ;;  %v3342_v55 = vld [vmem:[#allocation2 + $0x60] sm:$0x1]  ;;  %v8010_v13 = vpack.c.bf16 %v3334_v7, %v3333_v48  ;;  %v8012_v54 = vpack.c.bf16 %v3337_v46, %v3336_v49  ;;  %v3353_v49 = vld [vmem:[#allocation2 + $0x128] sm:$0xfe] }
 0x2bd   : > { %3227 = vmatprep.mubr.bf16.mxu0 %v7999_v0  ;;  %8839 = vmatpush3.bf16.msra.mxu1 %v9201_v1  ;;  %v3343_v59 = vld [vmem:[#allocation2 + $0xe0] sm:$0x1]  ;;  %v8014_v4 = vpack.c.bf16 %v3340_v53, %v3339_v44  ;;  %v3335_v0 = vld [vmem:[#allocation2 + $0x180] sm:$0xfe] }
 0x2be   : > { %8848 = vmatprep.subr.bf16.mxu1 %v9204_v5  ;;  %v9225_v11 = vld [vmem:[%s10920_s4 + $0x380] sm:$0xff]   ;;  %v3510_v3 = vshrl.u32 %v8010_v13, 16  ;;  %v3513_v57 = vshll.u32 %v8010_v13, 16  ;;  %v3519_v1 = vshll.u32 %v8012_v54, 16 }
 0x2bf   : > { %8395 = vmatpush3.bf16.msra.mxu0 %v9200_v2  ;;  %v8016_v2 = vpack.c.bf16 %v3343_v59, %v3342_v55  ;;  %v3356_v55 = vld [vmem:[#allocation2 + $0x170] sm:$0x1] }
 0x2c0   : > { %8432 = vmatprep.subr.bf16.mxu0 %v9202_v12  ;;  %8841 = vmatmul.mubr.bf16.vlgmr.msra.gmra.mxu1 %v8003_v19  ;;  %v8007_v12 = vpack.c.bf16 %v2903_v15, %v9880_v8  ;;  %v3538_v19 = vshrl.u32 %v8014_v4, 16 }
 0x2c1   : > { %8849 = vmatpush3.bf16.msra.mxu1 %v9204_v5  ;;  %8844 = vmatprep.mubr.bf16.mxu1 %v8006_v63  ;;  %v9221_v5 = vld [vmem:[%s10920_s4 + $0x308] sm:$0xff]   ;;  %v3541_v63 = vshll.u32 %v8014_v4, 16 }
 0x2c2   : > { %8850 = vmatprep.subr.bf16.mxu1 %v9207_v16 }
 0x2c3   : > { %v3543_v42 = vrot.slane %v3541_v63, 5  ;;  %v8025_v63 = vpack.c.bf16 %v3356_v55, %v3356_v55 }
 0x2c4   : > { %3228 = vmatmul.mubr.bf16.vlgmr.msra.gmra.mxu0 %v7998_v9  ;;  %v3341_v9 = vld [vmem:[#allocation2 + $0x108] sm:$0xfe] }
 0x2c5   : > { %8433 = vmatpush3.bf16.msra.mxu0 %v9203_v61  ;;  %3235 = vmatprep.mubr.bf16.mxu0 %v8002_v6  ;;  %v8011_v61 = vpack.c.bf16 %v3335_v0, %v3335_v0  ;;  %v3512_v6 = vrot.slane %v3510_v3, 4  ;;  %v8015_v8 = vpack.c.bf16 %v3341_v9, %v3341_v9 }
 0x2c6   : > { %8434 = vmatprep.subr.bf16.mxu0 %v9205_v50  ;;  %8851 = vmatpush3.bf16.msra.mxu1 %v9207_v16  ;;  %v3338_v16 = vld [vmem:[#allocation2 + $0x98] sm:$0x1]  ;;  %v3515_v50 = vrot.slane %v3513_v57, 5 }
 0x2c7   : > { %8852 = vmatprep.subr.bf16.mxu1 %v9210_v51 }
 0x2c8   : > { %8845 = vmatmul.mubr.bf16.gmra.mxu1 %v8009_v20  ;;  %v9223_v20 = vld [vmem:[%s10920_s4 + $0x340] sm:$0xff]  }
 0x2c9   : > { %8435 = vmatpush3.bf16.msra.mxu0 %v9206_v14  ;;  %v3547_v14 = vshll.u32 %v8016_v2, 16 }
 0x2ca   : > { %8436 = vmatprep.subr.bf16.mxu0 %v9208_v17  ;;  %8853 = vmatpush3.bf16.msra.mxu1 %v9210_v51  ;;  %v3521_v51 = vrot.slane %v3519_v1, 5  ;;  %v3344_v17 = vld [vmem:[#allocation2 + $0x188] sm:$0x1]  ;;  %v8023_v1 = vpack.c.bf16 %v3353_v49, %v3353_v49 }
 0x2cb   : > { %8854 = vmatprep.subr.bf16.mxu1 %v9213_v25  ;;  %v3355_v49 = vld [vmem:[#allocation2 + $0x8] sm:$0x1] }
 0x2cc   : > { %3236 = vmatmul.mubr.bf16.gmra.mxu0 %v8001_v52  ;;  %v8013_v52 = vpack.c.bf16 %v3338_v16, %v3338_v16 }
 0x2cd   : > { %8437 = vmatpush3.bf16.msra.mxu0 %v9209_v21  ;;  %3243 = vmatprep.mubr.bf16.mxu0 %v8005_v18  ;;  %v3516_v21 = vor.u32 %v3515_v50, %v3512_v6  ;;  %v3549_v18 = vrot.slane %v3547_v14, 5  ;;  %v3608_v50 = vshrl.u32 %v8023_v1, 16  ;;  %v3617_v14 = vshll.u32 %v8025_v63, 16  ;;  %v9235_v63 = vld [vmem:[%s10920_s4 + $0x420] sm:$0xff]  }
 0x2ce   : > { %8438 = vmatprep.subr.bf16.mxu0 %v9211_v23  ;;  %8855 = vmatpush3.bf16.msra.mxu1 %v9213_v25  ;;  %v3540_v25 = vrot.slane %v3538_v19, 4  ;;  %v8017_v23 = vpack.c.bf16 %v3344_v17, %v3344_v17  ;;  %v9227_v19 = vld [vmem:[%s10920_s4 + $0x3f8] sm:$0xff]   ;;  %v9229_v17 = vld [vmem:[%s10920_s4 + $0x430] sm:$0xff]  }
 0x2cf   : > { %8856 = vmatprep.subr.bf16.mxu1 %v9216_v39  ;;  %v3517_v15 = vrot.slane %v3516_v21, 4  ;;  %v3345_v21 = vld [vmem:[#allocation2 + $0x138] sm:$0xfe] }
 0x2d0   : > { %v3544_v47 = vor.u32 %v3543_v42, %v3540_v25  ;;  %v3561_v7 = vshll.u32 %v8017_v23, 16  ;;  %v3610_v23 = vrot.slane %v3608_v50, 4 }
 0x2d1   : > { %8439 = vmatpush3.bf16.msra.mxu0 %v9212_v45  ;;  %v3347_v45 = vld [vmem:[#allocation2 + $0x80] sm:$0xfe]  ;;  %v3522_v13 = vsel %vm9655_vm2, %v3517_v15, %v3521_v51  ;;  %v3611_v51 = vshll.u32 %v8023_v1, 16  ;;  %v3351_v15 = vld [vmem:[#allocation2 + $0xf0] sm:$0xfe]  ;;  %v9233_v1 = vld [vmem:[%s10920_s4 + $0x3e8] sm:$0xff]  }
 0x2d2   : > { %8440 = vmatprep.subr.bf16.mxu0 %v9214_v43  ;;  %8857 = vmatpush3.bf16.msra.mxu1 %v9216_v39  ;;  %v3524_v39 = vshrl.u32 %v8011_v61, 16  ;;  %v9224_v43 = vld [vmem:[%s10920_s4 + $0x300] sm:$0xff]   ;;  %v3545_v46 = vrot.slane %v3544_v47, 4  ;;  %v3563_v59 = vrot.slane %v3561_v7, 5  ;;  %v8019_v4 = vpack.c.bf16 %v3347_v45, %v3347_v45  ;;  %v9232_v47 = vld [vmem:[%s10920_s4 + $0x428] sm:$0xff]  }
 0x2d3   : > { %8858 = vmatprep.subr.bf16.mxu1 %v9219_v58  ;;  %v3619_v45 = vrot.slane %v3617_v14, 5  ;;  %v3354_v7 = vld [vmem:[#allocation2 + $0x1d8] sm:$0x1] }
 0x2d4   : > { %3244 = vmatmul.mubr.bf16.gmra.mxu0 %v8004_v24  ;;  %v3533_v24 = vshll.u32 %v8013_v52, 16  ;;  %v3526_v48 = vrot.slane %v3524_v39, 4  ;;  %v3550_v2 = vsel %vm9655_vm2, %v3545_v46, %v3549_v18  ;;  %v3580_v16 = vshrl.u32 %v8019_v4, 16 }
 0x2d5   : > { %8441 = vmatpush3.bf16.msra.mxu0 %v9215_v10  ;;  %3251 = vmatprep.mubr.bf16.mxu0 %v8008_v40  ;;  %v3552_v10 = vshrl.u32 %v8015_v8, 16  ;;  %v10103_v40 = vld [vmem:[%s10920_s4 + $0x478] sm:$0xff]   ;;  %v7401_v0 = vcombine.low %v3522_v13, %v3550_v2  ;;  %v3583_v9 = vshll.u32 %v8019_v4, 16  ;;  %v3613_v39 = vrot.slane %v3611_v51, 5 }
 0x2d6   : > { %8442 = vmatprep.subr.bf16.mxu0 %v9217_v38  ;;  %8859 = vmatpush3.bf16.msra.mxu1 %v9219_v58  ;;  %v3527_v58 = vshll.u32 %v8011_v61, 16  ;;  %v3350_v38 = vld [vmem:[#allocation2 + $0x28] sm:$0x1]  ;;  %v3535_v44 = vrot.slane %v3533_v24, 5  ;;  %v3582_v42 = vrot.slane %v3580_v16, 4 }
 0x2d7   : > { %8860 = vmatprep.subr.bf16.mxu1 %v9222_v22  ;;  %v3554_v53 = vrot.slane %v3552_v10, 4  ;;  %v8021_v57 = vpack.c.bf16 %v3350_v38, %v3350_v38  ;;  %v3585_v52 = vrot.slane %v3583_v9, 5  ;;  %v3348_v10 = vld [vmem:[#allocation2 + $0x1a8] sm:$0x1]  ;;  %v3349_v38 = vld [vmem:[#allocation2 + $0x1b8] sm:$0x1] }
 0x2d8   : > { %v8020_v46 = vpack.c.bf16 %v3349_v38, %v3348_v10  ;;  %v9237_v10 = vld [vmem:[%s10920_s4 + $0x460] sm:$0xff]   ;;  %v3367_v38 = vld [vmem:[#allocation2 + $0xb8] sm:$0x1] }
 0x2d9   : > { %8443 = vmatpush3.bf16.msra.mxu0 %v9218_v56  ;;  %v3555_v56 = vshll.u32 %v8015_v8, 16  ;;  %v3589_v61 = vshll.u32 %v8021_v57, 16  ;;  %v3586_v24 = vor.u32 %v3585_v52, %v3582_v42  ;;  %v3358_v42 = vld [vmem:[#allocation2 + $0xa0] sm:$0xfe]  ;;  %v9238_v52 = vld [vmem:[%s10920_s4 + $0x418] sm:$0xff]  }
 0x2da   : > { %8444 = vmatprep.subr.bf16.mxu0 %v9220_v60  ;;  %8861 = vmatpush3.bf16.msra.mxu1 %v9222_v22  ;;  %v9226_v22 = vld [vmem:[%s10920_s4 + $0x438] sm:$0xff]   ;;  %v3529_v60 = vrot.slane %v3527_v58, 5 }
 0x2db   : > { %8862 = vmatprep.subr.bf16.mxu1 %v9225_v11  ;;  %v3557_v54 = vrot.slane %v3555_v56, 5  ;;  %v3591_v8 = vrot.slane %v3589_v61, 5  ;;  %v3352_v56 = vld [vmem:[#allocation2 + $0x158] sm:$0xfe]  ;;  %v9236_v61 = vld [vmem:[%s10920_s4 + $0x3e0] sm:$0xff]  }
 0x2dc   : > { %3252 = vmatmul.mubr.bf16.gmra.mxu0 %v8007_v12  ;;  %v3530_v3 = vor.u32 %v3529_v60, %v3526_v48  ;;  %v7402_v12 = vcombine.high %v3522_v13, %v3550_v2  ;;  %v3614_v48 = vor.u32 %v3613_v39, %v3610_v23  ;;  %v3587_v60 = vrot.slane %v3586_v24, 4  ;;  %v3363_v39 = vld [vmem:[#allocation2 + $0x40] sm:$0xfe] }
 0x2dd   : > { %8445 = vmatpush3.bf16.msra.mxu0 %v9221_v5  ;;  %v3558_v5 = vor.u32 %v3557_v54, %v3554_v53  ;;  %v8024_v53 = vpack.c.bf16 %v3355_v49, %v3354_v7 }
 0x2de   : > { %8446 = vmatprep.subr.bf16.mxu0 %v9223_v20  ;;  %8863 = vmatpush3.bf16.msra.mxu1 %v9225_v11  ;;  %v3531_v11 = vrot.slane %v3530_v3, 4  ;;  %v9230_v20 = vld [vmem:[%s10920_s4 + $0x3f0] sm:$0xff]   ;;  %v3615_v13 = vrot.slane %v3614_v48, 4  ;;  %v3592_v4 = vsel %vm9655_vm2, %v3587_v60, %v3591_v8  ;;  %v3359_v60 = vld [vmem:[#allocation2 + $0x148] sm:$0xfe] }
 0x2df   : > { %8872 = vmatprep.subr.bf16.mxu1 %v10103_v40  ;;  %4006 = vmatprep.mubr.bf16.mxu0 %v7402_v12  ;;  %v3559_v6 = vrot.slane %v3558_v5, 4  ;;  %v9231_v12 = vld [vmem:[%s10920_s4 + $0x470] sm:$0xff]  }
 0x2e0   : > { %v3536_v25 = vsel %vm9655_vm2, %v3531_v11, %v3535_v44  ;;  %v8022_v44 = vpack.c.bf16 %v3352_v56, %v3351_v15 }
 0x2e1   : > { %8447 = vmatpush3.bf16.msra.mxu0 %v9224_v43  ;;  %v3564_v18 = vsel %vm9655_vm2, %v3559_v6, %v3563_v59  ;;  %v3346_v43 = vld [vmem:[#allocation2 + $0x140] sm:$0xfe]  ;;  %v3575_v59 = vshll.u32 %v8020_v46, 16 }
 0x2e2   : > { %8484 = vmatprep.subr.bf16.mxu0 %v9226_v22  ;;  %v7403_v58 = vcombine.low %v3536_v25, %v3564_v18  ;;  %v8018_v22 = vpack.c.bf16 %v3346_v43, %v3345_v21  ;;  %v3594_v3 = vshrl.u32 %v8022_v44, 16  ;;  %v3597_v57 = vshll.u32 %v8022_v44, 16  ;;  %v3357_v25 = vld [vmem:[#allocation2 + $0xc0] sm:$0xfe]  ;;  %v3360_v21 = vld [vmem:[#allocation2 + $0x1d0] sm:$0x1] }
 0x2e3   : > { %v3577_v50 = vrot.slane %v3575_v59, 5  ;;  %v3361_v18 = vld [vmem:[#allocation2 + $0x100] sm:$0x1]  ;;  %v8026_v23 = vpack.c.bf16 %v3358_v42, %v3357_v25  ;;  %v9241_v44 = vld [vmem:[%s10920_s4 + $0x410] sm:$0xff]   ;;  %v3362_v59 = vld [vmem:[#allocation2 + $0xf8] sm:$0x1] }
 0x2e4   : > { %4007 = vmatmul.mubr.bf16.vlgmr.msra.gmra.mxu0 %v7401_v0  ;;  %8864 = vmatprep.mubr.bf16.mxu1 %v7403_v58  ;;  %v3566_v55 = vshrl.u32 %v8018_v22, 16  ;;  %v3569_v54 = vshll.u32 %v8018_v22, 16  ;;  %v3620_v0 = vsel %vm9655_vm2, %v3615_v13, %v3619_v45  ;;  %v3596_v16 = vrot.slane %v3594_v3, 4  ;;  %v3364_v45 = vld [vmem:[#allocation2 + $0xa8] sm:$0xfe]  ;;  %v9239_v58 = vld [vmem:[%s10920_s4 + $0x3d8] sm:$0xff]  }
 0x2e5   : > { %8485 = vmatpush3.bf16.msra.mxu0 %v9227_v19  ;;  %v3603_v19 = vshll.u32 %v8024_v53, 16  ;;  %v7406_v11 = vcombine.low %v3592_v4, %v3620_v0  ;;  %v3599_v9 = vrot.slane %v3597_v57, 5  ;;  %v3366_v43 = vld [vmem:[#allocation2 + $0x1a0] sm:$0x1]  ;;  %v8030_v15 = vpack.c.bf16 %v3364_v45, %v3363_v39  ;;  %v3365_v3 = vld [vmem:[#allocation2 + $0x190] sm:$0xfe] }
 0x2e6   : > { %8486 = vmatprep.subr.bf16.mxu0 %v9229_v17  ;;  %v3568_v2 = vrot.slane %v3566_v55, 4  ;;  %v3571_v5 = vrot.slane %v3569_v54, 5  ;;  %v3622_v22 = vshrl.u32 %v8026_v23, 16  ;;  %v3625_v48 = vshll.u32 %v8026_v23, 16  ;;  %v3368_v57 = vld [vmem:[#allocation2] sm:$0x1] }
 0x2e7   : > { %v3605_v51 = vrot.slane %v3603_v19, 5  ;;  %8865 = vmatmul.mubr.bf16.vlgmr.msra.gmra.mxu1 %v7406_v11  ;;  %v3600_v14 = vor.u32 %v3599_v9, %v3596_v16  ;;  %v8032_v49 = vpack.c.bf16 %v3367_v38, %v3366_v43  ;;  %v3650_v13 = vshrl.u32 %v8030_v15, 16  ;;  %v3374_v42 = vld [vmem:[#allocation2 + $0xd0] sm:$0x1]  ;;  %v3377_v23 = vld [vmem:[#allocation2 + $0x198] sm:$0xfe] }
 0x2e8   : > { %v3572_v6 = vor.u32 %v3571_v5, %v3568_v2  ;;  %8873 = vmatpush3.bf16.msra.mxu1 %v10103_v40  ;;  %v3624_v53 = vrot.slane %v3622_v22, 4  ;;  %v3627_v55 = vrot.slane %v3625_v48, 5  ;;  %v3653_v54 = vshll.u32 %v8030_v15, 16 }
 0x2e9   : > { %8487 = vmatpush3.bf16.msra.mxu0 %v9230_v20  ;;  %8874 = vmatprep.subr.bf16.mxu1 %v9231_v12  ;;  %v3601_v8 = vrot.slane %v3600_v14, 4  ;;  %v9234_v20 = vld [vmem:[%s10920_s4 + $0x468] sm:$0xff]   ;;  %v3659_v2 = vshll.u32 %v8032_v49, 16  ;;  %v8029_v0 = vpack.c.bf16 %v3362_v59, %v3362_v59  ;;  %v3652_v5 = vrot.slane %v3650_v13, 4 }
 0x2ea   : > { %8488 = vmatprep.subr.bf16.mxu0 %v9232_v47  ;;  %v3573_v17 = vrot.slane %v3572_v6, 4  ;;  %v8028_v47 = vpack.c.bf16 %v3361_v18, %v3360_v21  ;;  %v3655_v19 = vrot.slane %v3653_v54, 5  ;;  %v8033_v16 = vpack.c.bf16 %v3368_v57, %v3368_v57  ;;  %v3371_v6 = vld [vmem:[#allocation2 + $0x10] sm:$0xfe] }
 0x2eb   : > { %v3606_v24 = vsel %vm9655_vm2, %v3601_v8, %v3605_v51  ;;  %v3661_v11 = vrot.slane %v3659_v2, 5  ;;  %v8035_v48 = vpack.c.bf16 %v3371_v6, %v3371_v6  ;;  %v8039_v49 = vpack.c.bf16 %v3377_v23, %v3377_v23 }
 0x2ec   : > { %v3578_v40 = vsel %vm9655_vm2, %v3573_v17, %v3577_v50  ;;  %8875 = vmatpush3.bf16.msra.mxu1 %v9231_v12  ;;  %v3631_v46 = vshll.u32 %v8028_v47, 16  ;;  %v3628_v12 = vor.u32 %v3627_v55, %v3624_v53  ;;  %v9242_v50 = vld [vmem:[%s10920_s4 + $0x3d0] sm:$0xff]   ;;  %v3656_v14 = vor.u32 %v3655_v19, %v3652_v5 }
 0x2ed   : > { %8489 = vmatpush3.bf16.msra.mxu0 %v9233_v1  ;;  %v7405_v56 = vcombine.high %v3578_v40, %v3606_v24  ;;  %v7404_v7 = vcombine.low %v3578_v40, %v3606_v24  ;;  %8876 = vmatprep.subr.bf16.mxu1 %v9234_v20  ;;  %v8027_v1 = vpack.c.bf16 %v3359_v60, %v3359_v60  ;;  %v3645_v17 = vshll.u32 %v8029_v0, 16  ;;  %v3380_v47 = vld [vmem:[#allocation2 + $0x70] sm:$0x1]  ;;  %v9244_v24 = vld [vmem:[%s10920_s4 + $0x408] sm:$0xff]   ;;  %v3369_v0 = vld [vmem:[#allocation2 + $0x38] sm:$0xfe] }
 0x2ee   : > { %8490 = vmatprep.subr.bf16.mxu0 %v9235_v63  ;;  %v3633_v4 = vrot.slane %v3631_v46, 5  ;;  %v8031_v63 = vpack.c.bf16 %v3365_v3, %v3365_v3  ;;  %v3629_v51 = vrot.slane %v3628_v12, 4  ;;  %v3673_v18 = vshll.u32 %v8033_v16, 16  ;;  %v9246_v12 = vld [vmem:[%s10920_s4 + $0x448] sm:$0xff]   ;;  %v3370_v16 = vld [vmem:[#allocation2 + $0x20] sm:$0xfe] }
 0x2ef   : > { %4014 = vmatprep.mubr.bf16.mxu0 %v7405_v56  ;;  %v3636_v9 = vshrl.u32 %v8027_v1, 16  ;;  %v3657_v39 = vrot.slane %v3656_v14, 4  ;;  %v3647_v45 = vrot.slane %v3645_v17, 5  ;;  %v8041_v46 = vpack.c.bf16 %v3380_v47, %v3380_v47 }
 0x2f0   : > { %4015 = vmatmul.mubr.bf16.gmra.mxu0 %v7404_v7  ;;  %8877 = vmatpush3.bf16.msra.mxu1 %v9234_v20  ;;  %v3664_v25 = vshrl.u32 %v8031_v63, 16  ;;  %v3667_v21 = vshll.u32 %v8031_v63, 16  ;;  %v3634_v40 = vsel %vm9655_vm2, %v3629_v51, %v3633_v4  ;;  %v3675_v22 = vrot.slane %v3673_v18, 5  ;;  %v3373_v51 = vld [vmem:[#allocation2 + $0x88] sm:$0x1] }
 0x2f1   : > { %8491 = vmatpush3.bf16.msra.mxu0 %v9236_v61  ;;  %v3639_v61 = vshll.u32 %v8027_v1, 16  ;;  %8878 = vmatprep.subr.bf16.mxu1 %v9237_v10  ;;  %v3638_v8 = vrot.slane %v3636_v9, 4  ;;  %v3662_v56 = vsel %vm9655_vm2, %v3657_v39, %v3661_v11  ;;  %v8037_v7 = vpack.c.bf16 %v3374_v42, %v3374_v42  ;;  %v3375_v42 = vld [vmem:[#allocation2 + $0x68] sm:$0xfe]  ;;  %v3379_v18 = vld [vmem:[#allocation2 + $0x178] sm:$0x1] }
 0x2f2   : > { %8492 = vmatprep.subr.bf16.mxu0 %v9238_v52  ;;  %v9240_v52 = vld [vmem:[%s10920_s4 + $0x458] sm:$0xff]   ;;  %v3666_v43 = vrot.slane %v3664_v25, 4  ;;  %v3669_v15 = vrot.slane %v3667_v21, 5  ;;  %v7408_v60 = vcombine.high %v3634_v40, %v3662_v56  ;;  %v3692_v13 = vshrl.u32 %v8035_v48, 16 }
 0x2f3   : > { %v3641_v20 = vrot.slane %v3639_v61, 5  ;;  %v3695_v54 = vshll.u32 %v8035_v48, 16  ;;  %v3701_v59 = vshll.u32 %v8037_v7, 16  ;;  %v3720_v4 = vshrl.u32 %v8039_v49, 16 }
 0x2f4   : > { %8879 = vmatpush3.bf16.msra.mxu1 %v9237_v10  ;;  %v3670_v55 = vor.u32 %v3669_v15, %v3666_v43  ;;  %v9245_v10 = vld [vmem:[%s10920_s4 + $0x3c8] sm:$0xff]   ;;  %4022 = vmatprep.mubr.bf16.mxu0 %v7408_v60  ;;  %v3723_v57 = vshll.u32 %v8039_v49, 16  ;;  %v3729_v1 = vshll.u32 %v8041_v46, 16  ;;  %v3694_v5 = vrot.slane %v3692_v13, 4  ;;  %v9247_v46 = vld [vmem:[%s10920_s4 + $0x400] sm:$0xff]  }
 0x2f5   : > { %8493 = vmatpush3.bf16.msra.mxu0 %v9239_v58  ;;  %v9243_v58 = vld [vmem:[%s10920_s4 + $0x450] sm:$0xff]   ;;  %v3642_v38 = vor.u32 %v3641_v20, %v3638_v8  ;;  %8880 = vmatprep.subr.bf16.mxu1 %v9240_v52  ;;  %v3697_v19 = vrot.slane %v3695_v54, 5  ;;  %v3703_v63 = vrot.slane %v3701_v59, 5  ;;  %v3722_v11 = vrot.slane %v3720_v4, 4  ;;  %v3378_v8 = vld [vmem:[#allocation2 + $0xe8] sm:$0x1] }
 0x2f6   : > { %8494 = vmatprep.subr.bf16.mxu0 %v9241_v44  ;;  %v7407_v44 = vcombine.low %v3634_v40, %v3662_v56  ;;  %v3671_v3 = vrot.slane %v3670_v55, 4  ;;  %v3725_v61 = vrot.slane %v3723_v57, 5  ;;  %v3731_v6 = vrot.slane %v3729_v1, 5  ;;  %v9249_v59 = vld [vmem:[%s10920_s4 + $0x440] sm:$0xff]   ;;  %v4115_v1 = vld [vmem:[#allocation2 + $0x110] sm:$0x3] }
 0x2f7   : > { %v3643_v53 = vrot.slane %v3642_v38, 4  ;;  %v8034_v14 = vpack.c.bf16 %v3370_v16, %v3369_v0  ;;  %v3698_v25 = vor.u32 %v3697_v19, %v3694_v5  ;;  %v8040_v43 = vpack.c.bf16 %v3379_v18, %v3378_v8  ;;  %v4116_v0 = vld [vmem:[#allocation2 + $0x118] sm:$0x3]  ;;  %v4121_v16 = vld [vmem:[#allocation2 + $0x60] sm:$0x3] }
 0x2f8   : > { %8881 = vmatpush3.bf16.msra.mxu1 %v9240_v52  ;;  %4023 = vmatmul.mubr.bf16.gmra.mxu0 %v7407_v44  ;;  %v3676_v9 = vsel %vm9655_vm2, %v3671_v3, %v3675_v22  ;;  %v3376_v52 = vld [vmem:[#allocation2 + $0xc8] sm:$0xfe]  ;;  %v3726_v21 = vor.u32 %v3725_v61, %v3722_v11  ;;  %v4119_v11 = vld [vmem:[#allocation2 + $0x150] sm:$0xfc]  ;;  %v9250_v61 = vld [vmem:[%s10920_s4 + $0x4f8] sm:$0xff]  }
 0x2f9   : > { %8495 = vmatpush3.bf16.msra.mxu0 %v9242_v50  ;;  %v3648_v2 = vsel %vm9655_vm2, %v3643_v53, %v3647_v45  ;;  %8882 = vmatprep.subr.bf16.mxu1 %v9243_v58  ;;  %v3372_v50 = vld [vmem:[#allocation2 + $0x58] sm:$0x1]  ;;  %v8038_v23 = vpack.c.bf16 %v3376_v52, %v3375_v42  ;;  %v3678_v40 = vshrl.u32 %v8034_v14, 16  ;;  %v3681_v39 = vshll.u32 %v8034_v14, 16  ;;  %v9248_v53 = vld [vmem:[%s10920_s4 + $0x3c0] sm:$0xff]  }
 0x2fa   : > { %8496 = vmatprep.subr.bf16.mxu0 %v9244_v24  ;;  %v7409_v17 = vcombine.low %v3648_v2, %v3676_v9  ;;  %v8036_v20 = vpack.c.bf16 %v3373_v51, %v3372_v50  ;;  %v3699_v45 = vrot.slane %v3698_v25, 4  ;;  %v3727_v24 = vrot.slane %v3726_v21, 4  ;;  %v4112_v2 = vld [vmem:[#allocation2 + $0x130] sm:$0xfc]  ;;  %v4113_v3 = vld [vmem:[#allocation2 + $0x48] sm:$0xfc] }
 0x2fb   : > { %v3680_v38 = vrot.slane %v3678_v40, 4  ;;  %v3683_v15 = vrot.slane %v3681_v39, 5  ;;  %v3706_v22 = vshrl.u32 %v8038_v23, 16  ;;  %v3709_v7 = vshll.u32 %v8038_v23, 16  ;;  %v4122_v50 = vld [vmem:[#allocation2 + $0xe0] sm:$0x3] }
 0x2fc   : > { %8883 = vmatpush3.bf16.msra.mxu1 %v9243_v58  ;;  %8868 = vmatprep.mubr.bf16.mxu1 %v7409_v17  ;;  %v3687_v47 = vshll.u32 %v8036_v20, 16  ;;  %v3704_v48 = vsel %vm9655_vm2, %v3699_v45, %v3703_v63  ;;  %v3715_v49 = vshll.u32 %v8040_v43, 16  ;;  %v3732_v58 = vsel %vm9655_vm2, %v3727_v24, %v3731_v6  ;;  %v4114_v8 = vld [vmem:[#allocation2 + $0x180] sm:$0xfc]  ;;  %v10214_v20 = vld [vmem:[%s10920_s4 + $0x538] sm:$0xff]  }
 0x2fd   : > { %8497 = vmatpush3.bf16.msra.mxu0 %v9245_v10  ;;  %8884 = vmatprep.subr.bf16.mxu1 %v9246_v12  ;;  %v3684_v60 = vor.u32 %v3683_v15, %v3680_v38  ;;  %v3708_v44 = vrot.slane %v3706_v22, 4  ;;  %v7412_v55 = vcombine.low %v3704_v48, %v3732_v58  ;;  %v3711_v10 = vrot.slane %v3709_v7, 5  ;;  %v4117_v40 = vld [vmem:[#allocation2 + $0x98] sm:$0x3]  ;;  %v4120_v39 = vld [vmem:[#allocation2 + $0x108] sm:$0xfc] }
 0x2fe   : > { %v3689_v56 = vrot.slane %v3687_v47, 5  ;;  %v3717_v13 = vrot.slane %v3715_v49, 5  ;;  %8498 = vmatprep.subr.bf16.mxu0 %v9247_v46  ;;  %v8042_v5 = vpack.c.bf16 %v4113_v3, %v4112_v2  ;;  %v8044_v9 = vpack.c.bf16 %v4116_v0, %v4115_v1  ;;  %v4123_v24 = vld [vmem:[#allocation2 + $0x188] sm:$0x3]  ;;  %v9251_v1 = vld [vmem:[%s10920_s4 + $0x4b8] sm:$0xff]  }
 0x2ff   : > { %v3685_v54 = vrot.slane %v3684_v60, 4  ;;  %8869 = vmatmul.mubr.bf16.gmra.mxu1 %v7412_v55  ;;  %v3712_v4 = vor.u32 %v3711_v10, %v3708_v44  ;;  %v8048_v42 = vpack.c.bf16 %v4122_v50, %v4121_v16  ;;  %v8043_v45 = vpack.c.bf16 %v4114_v8, %v4114_v8  ;;  %v4129_v60 = vld [vmem:[#allocation2 + $0x28] sm:$0x3]  ;;  %v4132_v44 = vld [vmem:[#allocation2 + $0x128] sm:$0xfc] }
 0x300   : > { %8885 = vmatpush3.bf16.msra.mxu1 %v9246_v12  ;;  %v4118_v12 = vld [vmem:[#allocation2 + $0x120] sm:$0xfc]  ;;  %v7469_v14 = vrot.slane %v8042_v5, 9  ;;  %v4290_v52 = vrot.slane %v8044_v9, 5  ;;  %v8045_v38 = vpack.c.bf16 %v4117_v40, %v4117_v40  ;;  %v8047_v15 = vpack.c.bf16 %v4120_v39, %v4120_v39  ;;  %v9253_v9 = vld [vmem:[%s10920_s4 + $0x4f0] sm:$0xff]  }
 0x301   : > { %8499 = vmatpush3.bf16.msra.mxu0 %v9248_v53  ;;  %8886 = vmatprep.subr.bf16.mxu1 %v9249_v59  ;;  %v3690_v19 = vsel %vm9655_vm2, %v3685_v54, %v3689_v56  ;;  %v3713_v63 = vrot.slane %v3712_v4, 4  ;;  %v8046_v51 = vpack.c.bf16 %v4119_v11, %v4118_v12  ;;  %v4298_v47 = vrot.slane %v8048_v42, 5  ;;  %v4126_v56 = vld [vmem:[#allocation2 + $0x80] sm:$0xfc]  ;;  %v4124_v50 = vld [vmem:[#allocation2 + $0x138] sm:$0xfc] }
 0x302   : > { %8536 = vmatprep.subr.bf16.mxu0 %v9250_v61  ;;  %v4291_v43 = vsel %vm9858_vm5, %v7469_v14, %v4290_v52  ;;  %v8049_v22 = vpack.c.bf16 %v4123_v24, %v4123_v24  ;;  %v7470_v48 = vrot.slane %v8043_v45, 9  ;;  %v4294_v46 = vrot.slane %v8045_v38, 5  ;;  %v4127_v42 = vld [vmem:[#allocation2 + $0x1a8] sm:$0x3]  ;;  %v4128_v52 = vld [vmem:[#allocation2 + $0x1b8] sm:$0x3] }
 0x303   : > { %v3718_v25 = vsel %vm9655_vm2, %v3713_v63, %v3717_v13  ;;  %v7471_v23 = vrot.slane %v8046_v51, 9  ;;  %v7472_v58 = vrot.slane %v8047_v15, 9  ;;  %v8051_v53 = vpack.c.bf16 %v4126_v56, %v4126_v56  ;;  %v4135_v13 = vld [vmem:[#allocation2 + $0x170] sm:$0x3]  ;;  %v4125_v51 = vld [vmem:[#allocation2 + $0x140] sm:$0xfc] }
 0x304   : > { %8887 = vmatpush3.bf16.msra.mxu1 %v9249_v59  ;;  %v7411_v21 = vcombine.high %v3690_v19, %v3718_v25  ;;  %v7410_v18 = vcombine.low %v3690_v19, %v3718_v25  ;;  %v4302_v10 = vrot.slane %v8049_v22, 5  ;;  %v8053_v54 = vpack.c.bf16 %v4129_v60, %v4129_v60  ;;  %v4130_v8 = vld [vmem:[#allocation2 + $0xf0] sm:$0xfc]  ;;  %v4131_v45 = vld [vmem:[#allocation2 + $0x158] sm:$0xfc] }
 0x305   : > { %8896 = vmatprep.subr.bf16.mxu1 %v10214_v20  ;;  %v4299_v49 = vsel %vm9858_vm5, %v7471_v23, %v4298_v47  ;;  %v4295_v59 = vsel %vm9858_vm5, %v7470_v48, %v4294_v46  ;;  %v8055_v4 = vpack.c.bf16 %v4132_v44, %v4132_v44  ;;  %v8057_v2 = vpack.c.bf16 %v4135_v13, %v4135_v13  ;;  %v9254_v39 = vld [vmem:[%s10920_s4 + $0x4b0] sm:$0xff]   ;;  %v4134_v47 = vld [vmem:[#allocation2 + $0x8] sm:$0x3] }
 0x306   : > { %4030 = vmatprep.mubr.bf16.mxu0 %v7411_v21  ;;  %v7534_v55 = vcombine.high %v4291_v43, %v4299_v49  ;;  %v7474_v3 = vrot.slane %v8051_v53, 9  ;;  %v4310_v0 = vrot.slane %v8053_v54, 5  ;;  %v7533_v19 = vcombine.low %v4291_v43, %v4299_v49  ;;  %v4133_v43 = vld [vmem:[#allocation2 + $0x1d8] sm:$0x3]  ;;  %v9257_v53 = vld [vmem:[%s10920_s4 + $0x4a8] sm:$0xff]  }
 0x307   : > { %4031 = vmatmul.mubr.bf16.gmra.mxu0 %v7410_v18  ;;  %v7476_v11 = vrot.slane %v8055_v4, 9  ;;  %v4318_v16 = vrot.slane %v8057_v2, 5  ;;  %v8050_v21 = vpack.c.bf16 %v4125_v51, %v4124_v50  ;;  %v8052_v24 = vpack.c.bf16 %v4128_v52, %v4127_v42  ;;  %v4136_v4 = vld [vmem:[#allocation2 + $0xc0] sm:$0xfc]  ;;  %v9262_v42 = vld [vmem:[%s10920_s4 + $0x4d8] sm:$0xff]  }
 0x308   : > { %4625 = vmatprep.mubr.bf16.mxu0 %v7534_v55  ;;  %v4311_v61 = vsel %vm9858_vm5, %v7474_v3, %v4310_v0  ;;  %v8054_v15 = vpack.c.bf16 %v4131_v45, %v4130_v8  ;;  %v8056_v22 = vpack.c.bf16 %v4134_v47, %v4133_v43  ;;  %v4137_v2 = vld [vmem:[#allocation2 + $0xa0] sm:$0xfc]  ;;  %v4139_v3 = vld [vmem:[#allocation2 + $0x1d0] sm:$0x3]  ;;  %v4138_v52 = vld [vmem:[#allocation2 + $0x148] sm:$0xfc] }
 0x309   : > { %v4319_v25 = vsel %vm9858_vm5, %v7476_v11, %v4318_v16  ;;  %v7473_v48 = vrot.slane %v8050_v21, 9  ;;  %v4306_v56 = vrot.slane %v8052_v24, 5  ;;  %v8058_v0 = vpack.c.bf16 %v4137_v2, %v4136_v4  ;;  %v4146_v11 = vld [vmem:[#allocation2 + $0xb8] sm:$0x3]  ;;  %v4147_v45 = vld [vmem:[#allocation2] sm:$0x3] }
 0x30a   : > { %v7538_v40 = vcombine.low %v4311_v61, %v4319_v25  ;;  %v7475_v46 = vrot.slane %v8054_v15, 9  ;;  %v9260_v61 = vld [vmem:[%s10920_s4 + $0x4a0] sm:$0xff]   ;;  %v4141_v8 = vld [vmem:[#allocation2 + $0xf8] sm:$0x3]  ;;  %v8059_v43 = vpack.c.bf16 %v4138_v52, %v4138_v52 }
 0x30b   : > { %v4307_v44 = vsel %vm9858_vm5, %v7473_v48, %v4306_v56  ;;  %v7477_v51 = vrot.slane %v8058_v0, 9  ;;  %v8061_v47 = vpack.c.bf16 %v4141_v8, %v4141_v8  ;;  %v8065_v48 = vpack.c.bf16 %v4147_v45, %v4147_v45  ;;  %v4149_v52 = vld [vmem:[#allocation2 + $0x20] sm:$0xfc]  ;;  %v4151_v8 = vld [vmem:[#allocation2 + $0x58] sm:$0x3] }
 0x30c   : > { %v4155_v45 = vld [vmem:[#allocation2 + $0xc8] sm:$0xfc] }
 0x30f   : > { %4626 = vmatmul.mubr.bf16.vlgmr.msra.gmra.mxu0 %v7533_v19  ;;  %v4143_v19 = vld [vmem:[#allocation2 + $0xa8] sm:$0xfc] }
 0x310   : > { %8537 = vmatpush3.bf16.msra.mxu0 %v9251_v1  ;;  %v4142_v1 = vld [vmem:[#allocation2 + $0x40] sm:$0xfc] }
 0x311   : > { %8538 = vmatprep.subr.bf16.mxu0 %v9253_v9  ;;  %v8062_v50 = vpack.c.bf16 %v4143_v19, %v4142_v1  ;;  %v9264_v1 = vld [vmem:[%s10920_s4 + $0x518] sm:$0xff]  }
 0x314   : > { %v8240_v57 = vpop.f32.mrf.mxu0  ;;  %8539 = vmatpush3.bf16.msra.mxu0 %v9254_v39  ;;  %v4144_v39 = vld [vmem:[#allocation2 + $0x190] sm:$0xfc] }
 0x316   : > { %v8241_v6 = vpop.f32.mrf.mxu0 }
 0x317   : > { %v8242_v17 = vadd.f32 %v8241_v6, %v8240_v57  ;;  %v4303_v57 = vsel %vm9858_vm5, %v7472_v58, %v4302_v10  ;;  %v9255_v6 = vld [vmem:[%s10920_s4 + $0x530] sm:$0xff]   ;;  %v4314_v58 = vrot.slane %v8056_v22, 5  ;;  %v8063_v22 = vpack.c.bf16 %v4144_v39, %v4144_v39  ;;  %v4154_v39 = vld [vmem:[#allocation2 + $0x68] sm:$0xfc] }
 0x318   : > { %v8243_v7 = vpop.f32.mrf.mxu0  ;;  %v7535_v63 = vcombine.low %v4295_v59, %v4303_v57  ;;  %v9261_v59 = vld [vmem:[%s10920_s4 + $0x520] sm:$0xff]  }
 0x319   : > { %v4315_v55 = vsel %vm9858_vm5, %v7475_v46, %v4314_v58  ;;  %v4140_v57 = vld [vmem:[#allocation2 + $0x100] sm:$0x3]  ;;  %v4326_v46 = vrot.slane %v8061_v47, 5  ;;  %v4153_v58 = vld [vmem:[#allocation2 + $0xd0] sm:$0x3] }
 0x31a   : > { %v8244_v5 = vpop.f32.mrf.mxu0  ;;  %8888 = vmatprep.mubr.bf16.mxu1 %v7535_v63  ;;  %v7537_v13 = vcombine.high %v4307_v44, %v4315_v55  ;;  %v7536_v54 = vcombine.low %v4307_v44, %v4315_v55  ;;  %v4145_v63 = vld [vmem:[#allocation2 + $0x1a0] sm:$0x3]  ;;  %v8060_v16 = vpack.c.bf16 %v4140_v57, %v4139_v3  ;;  %v4156_v44 = vld [vmem:[#allocation2 + $0x198] sm:$0xfc]  ;;  %v8069_v2 = vpack.c.bf16 %v4153_v58, %v4153_v58 }
 0x31b   : > { %v8245_v23 = vadd.f32 %v8244_v5, %v8243_v7  ;;  %8889 = vmatmul.mubr.bf16.vlgmr.msra.gmra.mxu1 %v7538_v40  ;;  %v9258_v7 = vld [vmem:[%s10920_s4 + $0x528] sm:$0xff]   ;;  %v8071_v3 = vpack.c.bf16 %v4156_v44, %v4156_v44 }
 0x31c   : > { %8897 = vmatpush3.bf16.msra.mxu1 %v10214_v20  ;;  %v9259_v20 = vld [vmem:[%s10920_s4 + $0x4e0] sm:$0xff]   ;;  %4633 = vmatprep.mubr.bf16.mxu0 %v7537_v13  ;;  %v4322_v25 = vrot.slane %v8060_v16, 5  ;;  %v4334_v13 = vrot.slane %v8065_v48, 5  ;;  %v4342_v16 = vrot.slane %v8069_v2, 5  ;;  %v8070_v48 = vpack.c.bf16 %v4155_v45, %v4154_v39  ;;  %v9270_v44 = vld [vmem:[%s10920_s4 + $0x508] sm:$0xff]   ;;  %v9275_v45 = vld [vmem:[%s10920_s4 + $0x578] sm:$0xff]  }
 0x31d   : > { %v10228_v12 = vpop.f32.mrf.mxu1  ;;  %8898 = vmatprep.subr.bf16.mxu1 %v9255_v6  ;;  %4634 = vmatmul.mubr.bf16.gmra.mxu0 %v7536_v54  ;;  %v4159_v54 = vld [vmem:[#allocation2 + $0x70] sm:$0x3] }
 0x31e   : > { %v4323_v15 = vsel %vm9858_vm5, %v7477_v51, %v4322_v25  ;;  %v8073_v19 = vpack.c.bf16 %v4159_v54, %v4159_v54  ;;  %v9272_v54 = vld [vmem:[%s10920_s4 + $0x480] sm:$0xff]  }
 0x31f   : > { %v1930_v14 = vpop.f32.mrf.mxu1 }
 0x320   : > { %v10240_v18 = vadd.f32 %v8242_v17, %v1930_v14  ;;  %v9256_v17 = vld [vmem:[%s10920_s4 + $0x4e8] sm:$0xff]   ;;  %8899 = vmatpush3.bf16.msra.mxu1 %v9255_v6  ;;  %v8064_v6 = vpack.c.bf16 %v4146_v11, %v4145_v63  ;;  %v4350_v51 = vrot.slane %v8073_v19, 5 }
 0x321   : > { %v10245_v38 = vpop.f32.mrf.mxu1  ;;  %8540 = vmatprep.subr.bf16.mxu0 %v9256_v17  ;;  %8900 = vmatprep.subr.bf16.mxu1 %v9258_v7  ;;  %v4150_v17 = vld [vmem:[#allocation2 + $0x10] sm:$0xfc] }
 0x322   : > { %8541 = vmatpush3.bf16.msra.mxu0 %v9257_v53  ;;  %v4330_v40 = vrot.slane %v8064_v6, 5  ;;  %v8067_v53 = vpack.c.bf16 %v4150_v17, %v4150_v17 }
 0x323   : > { %v1933_v49 = vpop.f32.mrf.mxu1  ;;  %v8246_v10 = vpop.f32.mrf.mxu0  ;;  %8542 = vmatprep.subr.bf16.mxu0 %v9259_v20 }
 0x324   : > { %v10254_v60 = vadd.f32 %v8245_v23, %v1933_v49  ;;  %8901 = vmatpush3.bf16.msra.mxu1 %v9258_v7  ;;  %v7479_v23 = vrot.slane %v8062_v50, 9  ;;  %v7478_v49 = vrot.slane %v8059_v43, 9  ;;  %v7482_v57 = vrot.slane %v8067_v53, 9  ;;  %v9267_v50 = vld [vmem:[%s10920_s4 + $0x510] sm:$0xff]  }
 0x325   : > { %v8247_v5 = vpop.f32.mrf.mxu0  ;;  %8902 = vmatprep.subr.bf16.mxu1 %v9261_v59 }
 0x326   : > { %v8248_v9 = vadd.f32 %v8247_v5, %v8246_v10  ;;  %v4331_v7 = vsel %vm9858_vm5, %v7479_v23, %v4330_v40  ;;  %8543 = vmatpush3.bf16.msra.mxu0 %v9260_v61  ;;  %v7480_v10 = vrot.slane %v8063_v22, 9  ;;  %v4327_v4 = vsel %vm9858_vm5, %v7478_v49, %v4326_v46  ;;  %v9266_v61 = vld [vmem:[%s10920_s4 + $0x490] sm:$0xff]   ;;  %v4152_v40 = vld [vmem:[#allocation2 + $0x88] sm:$0x3] }
 0x327   : > { %v8249_v14 = vpop.f32.mrf.mxu0  ;;  %v7540_v55 = vcombine.high %v4323_v15, %v4331_v7  ;;  %v7539_v20 = vcombine.low %v4323_v15, %v4331_v7  ;;  %8544 = vmatprep.subr.bf16.mxu0 %v9262_v42  ;;  %v4343_v25 = vsel %vm9858_vm5, %v7482_v57, %v4342_v16  ;;  %v4148_v42 = vld [vmem:[#allocation2 + $0x38] sm:$0xfc]  ;;  %v4158_v15 = vld [vmem:[#allocation2 + $0x178] sm:$0x3]  ;;  %v8068_v22 = vpack.c.bf16 %v4152_v40, %v4151_v8  ;;  %v9269_v7 = vld [vmem:[%s10920_s4 + $0x488] sm:$0xff]  }
 0x328   : > { %v10276_v21 = vadd.f32 %v10228_v12, %v8248_v9  ;;  %v9263_v12 = vld [vmem:[%s10920_s4 + $0x498] sm:$0xff]   ;;  %8903 = vmatpush3.bf16.msra.mxu1 %v9261_v59  ;;  %v4335_v5 = vsel %vm9858_vm5, %v7480_v10, %v4334_v13  ;;  %v9265_v59 = vld [vmem:[%s10920_s4 + $0x4d0] sm:$0xff]   ;;  %v7484_v9 = vrot.slane %v8071_v3, 9  ;;  %v8066_v43 = vpack.c.bf16 %v4149_v52, %v4148_v42  ;;  %v9273_v3 = vld [vmem:[%s10920_s4 + $0x500] sm:$0xff]  }
 0x329   : > { %v8250_v24 = vpop.f32.mrf.mxu0  ;;  %4641 = vmatprep.mubr.bf16.mxu0 %v7540_v55  ;;  %v7541_v11 = vcombine.low %v4327_v4, %v4335_v5  ;;  %8904 = vmatprep.subr.bf16.mxu1 %v9264_v1  ;;  %v4338_v49 = vrot.slane %v8068_v22, 5  ;;  %v7483_v46 = vrot.slane %v8070_v48, 9  ;;  %v9271_v55 = vld [vmem:[%s10920_s4 + $0x4c0] sm:$0xff]   ;;  %v4733_v57 = vld [vmem:[#allocation2 + $0x150] sm:$0xff]  ;;  %v9274_v16 = vld [vmem:[%s10920_s4 + $0x5b8] sm:$0xff]  }
 0x32a   : > { %v8251_v56 = vadd.f32 %v8250_v24, %v8249_v14  ;;  %4642 = vmatmul.mubr.bf16.gmra.mxu0 %v7539_v20  ;;  %v4351_v23 = vsel %vm9858_vm5, %v7484_v9, %v4350_v51  ;;  %v4157_v24 = vld [vmem:[#allocation2 + $0xe8] sm:$0x3]  ;;  %v9279_v22 = vld [vmem:[%s10920_s4 + $0x5f0] sm:$0xff]   ;;  %v4739_v48 = vld [vmem:[#allocation2 + $0x158] sm:$0xff] }
 0x32b   : > { %v8252_v0 = vpop.f32.mrf.mxu0  ;;  %8545 = vmatpush3.bf16.msra.mxu0 %v9263_v12  ;;  %8892 = vmatprep.mubr.bf16.mxu1 %v7541_v11  ;;  %v7544_v47 = vcombine.low %v4343_v25, %v4351_v23  ;;  %v8072_v17 = vpack.c.bf16 %v4158_v15, %v4157_v24  ;;  %v4732_v11 = vld [vmem:[#allocation2 + $0x120] sm:$0xff]  ;;  %v4743_v42 = vld [vmem:[#allocation2 + $0x148] sm:$0xff]  ;;  %v9276_v23 = vld [vmem:[%s10920_s4 + $0x5f8] sm:$0xff]  }
 0x32c   : > { %v10296_v63 = vadd.f32 %v10245_v38, %v8251_v56  ;;  %v9268_v38 = vld [vmem:[%s10920_s4 + $0x4c8] sm:$0xff]   ;;  %8905 = vmatpush3.bf16.msra.mxu1 %v9264_v1  ;;  %8546 = vmatprep.subr.bf16.mxu0 %v9265_v59  ;;  %v7481_v56 = vrot.slane %v8066_v43, 9 }
 0x32d   : > { %v8253_v6 = vpop.f32.mrf.mxu0  ;;  %8906 = vmatprep.subr.bf16.mxu1 %v9267_v50  ;;  %8893 = vmatmul.mubr.bf16.gmra.mxu1 %v7544_v47  ;;  %v4346_v58 = vrot.slane %v8072_v17, 5  ;;  %v9277_v47 = vld [vmem:[%s10920_s4 + $0x5b0] sm:$0xff]  }
 0x32e   : > { %v8254_v14 = vadd.f32 %v8253_v6, %v8252_v0  ;;  %v4339_v53 = vsel %vm9858_vm5, %v7481_v56, %v4338_v49  ;;  %v4736_v0 = vld [vmem:[#allocation2 + $0x140] sm:$0xff]  ;;  %v4735_v6 = vld [vmem:[#allocation2 + $0x138] sm:$0xff]  ;;  %v9278_v56 = vld [vmem:[%s10920_s4 + $0x570] sm:$0xff]  }
 0x32f   : > { %v8255_v12 = vpop.f32.mrf.mxu0  ;;  %8547 = vmatpush3.bf16.msra.mxu0 %v9266_v61  ;;  %v4347_v13 = vsel %vm9858_vm5, %v7483_v46, %v4346_v58  ;;  %v8075_v59 = vpack.c.bf16 %v4736_v0, %v4733_v57  ;;  %v4734_v61 = vld [vmem:[#allocation2 + $0x108] sm:$0xff]  ;;  %v8074_v39 = vpack.c.bf16 %v4735_v6, %v4732_v11  ;;  %v4738_v49 = vld [vmem:[#allocation2 + $0xf0] sm:$0xff]  ;;  %v4741_v58 = vld [vmem:[#allocation2 + $0xc0] sm:$0xff] }
 0x330   : > { %8548 = vmatprep.subr.bf16.mxu0 %v9268_v38  ;;  %8907 = vmatpush3.bf16.msra.mxu1 %v9267_v50  ;;  %v7543_v4 = vcombine.high %v4339_v53, %v4347_v13  ;;  %v7542_v2 = vcombine.low %v4339_v53, %v4347_v13  ;;  %v4737_v50 = vld [vmem:[#allocation2 + $0x80] sm:$0xff]  ;;  %v4740_v38 = vld [vmem:[#allocation2 + $0x128] sm:$0xff]  ;;  %v4747_v6 = vld [vmem:[#allocation2 + $0x38] sm:$0xff] }
 0x331   : > { %v8256_v10 = vpop.f32.mrf.mxu0  ;;  %8908 = vmatprep.subr.bf16.mxu1 %v9270_v44  ;;  %v8076_v51 = vpack.c.bf16 %v4737_v50, %v4734_v61  ;;  %v8079_v8 = vpack.c.bf16 %v4743_v42, %v4740_v38  ;;  %v9280_v53 = vld [vmem:[%s10920_s4 + $0x5a8] sm:$0xff]   ;;  %v9285_v57 = vld [vmem:[%s10920_s4 + $0x5e0] sm:$0xff]   ;;  %v4746_v38 = vld [vmem:[#allocation2 + $0x190] sm:$0xff] }
 0x332   : > { %v8257_v19 = vadd.f32 %v8256_v10, %v8255_v12  ;;  %4649 = vmatprep.mubr.bf16.mxu0 %v7543_v4  ;;  %v4742_v12 = vld [vmem:[#allocation2 + $0xa0] sm:$0xff]  ;;  %v9282_v10 = vld [vmem:[%s10920_s4 + $0x5e8] sm:$0xff]   ;;  %v8077_v4 = vpack.c.bf16 %v4741_v58, %v4738_v49 }
 0x333   : > { %8549 = vmatpush3.bf16.msra.mxu0 %v9269_v7  ;;  %8912 = vmatprep.mubr.bf16.mxu1 %v8076_v51  ;;  %v8078_v7 = vpack.c.bf16 %v4742_v12, %v4739_v48  ;;  %v4748_v11 = vld [vmem:[#allocation2 + $0x20] sm:$0xff]  ;;  %v9287_v12 = vld [vmem:[%s10920_s4 + $0x558] sm:$0xff]   ;;  %v4751_v58 = vld [vmem:[#allocation2 + $0xc8] sm:$0xff] }
 0x334   : > { %8550 = vmatprep.subr.bf16.mxu0 %v9271_v55  ;;  %8909 = vmatpush3.bf16.msra.mxu1 %v9270_v44  ;;  %v4744_v50 = vld [vmem:[#allocation2 + $0x40] sm:$0xff] }
 0x335   : > { %v8774_v20 = vpop.f32.mrf.mxu1  ;;  %8910 = vmatprep.subr.bf16.mxu1 %v9273_v3  ;;  %4650 = vmatmul.mubr.bf16.gmra.mxu0 %v7542_v2  ;;  %v9281_v2 = vld [vmem:[%s10920_s4 + $0x568] sm:$0xff]   ;;  %v8080_v48 = vpack.c.bf16 %v4747_v6, %v4744_v50  ;;  %v5183_v6 = vld [vmem:[#allocation2 + $0x120] sm:$0xfe] }
 0x336   : > { %5077 = vmatprep.mubr.bf16.mxu0 %v8075_v59  ;;  %v9283_v59 = vld [vmem:[%s10920_s4 + $0x5a0] sm:$0xff]  }
 0x337   : > { %v1946_v1 = vpop.f32.mrf.mxu1  ;;  %8551 = vmatpush3.bf16.msra.mxu0 %v9272_v54 }
 0x338   : > { %v10330_v5 = vadd.f32 %v8254_v14, %v1946_v1  ;;  %8911 = vmatpush3.bf16.msra.mxu1 %v9273_v3  ;;  %8588 = vmatprep.subr.bf16.mxu0 %v9274_v16  ;;  %v4745_v1 = vld [vmem:[#allocation2 + $0xa8] sm:$0xff] }
 0x339   : > { %v8775_v9 = vpop.f32.mrf.mxu1  ;;  %8920 = vmatprep.subr.bf16.mxu1 %v9276_v23  ;;  %v8081_v61 = vpack.c.bf16 %v4748_v11, %v4745_v1 }
 0x33a   : > { %v8258_v14 = vpop.f32.mrf.mxu0 }
 0x33b   : > { %v1949_v25 = vpop.f32.mrf.mxu1  ;;  %8913 = vmatmul.mubr.bf16.vlgmr.msra.gmra.mxu1 %v8079_v8 }
 0x33c   : > { %v10335_v52 = vadd.f32 %v8257_v19, %v1949_v25  ;;  %v8259_v40 = vpop.f32.mrf.mxu0  ;;  %8921 = vmatpush3.bf16.msra.mxu1 %v9276_v23  ;;  %v4752_v23 = vld [vmem:[#allocation2 + $0x198] sm:$0xff] }
 0x33d   : > { %v8260_v43 = vadd.f32 %v8259_v40, %v8258_v14  ;;  %v10346_v15 = vpop.f32.mrf.mxu1  ;;  %5078 = vmatmul.mubr.bf16.vlgmr.msra.gmra.mxu0 %v8074_v39  ;;  %8922 = vmatprep.subr.bf16.mxu1 %v9279_v22  ;;  %v4749_v14 = vld [vmem:[#allocation2 + $0x10] sm:$0xff] }
 0x33e   : > { %v8261_v24 = vpop.f32.mrf.mxu0  ;;  %8589 = vmatpush3.bf16.msra.mxu0 %v9275_v45  ;;  %5085 = vmatprep.mubr.bf16.mxu0 %v8078_v7  ;;  %v8082_v8 = vpack.c.bf16 %v4749_v14, %v4746_v38  ;;  %v4755_v45 = vld [vmem:[#allocation2 + $0x160] sm:$0xff]  ;;  %v5184_v14 = vld [vmem:[#allocation2 + $0x150] sm:$0xfe] }
 0x33f   : > { %v10351_v17 = vadd.f32 %v8774_v20, %v8260_v43  ;;  %v2228_v20 = vpop.f32.mrf.mxu1  ;;  %8590 = vmatprep.subr.bf16.mxu0 %v9277_v47  ;;  %v8085_v47 = vpack.c.bf16 %v4755_v45, %v4752_v23  ;;  %v5189_v23 = vld [vmem:[#allocation2 + $0x138] sm:$0xfe]  ;;  %v8086_v45 = vpack.c.bf16 %v5184_v14, %v5183_v6 }
 0x340   : > { %v8262_v46 = vpop.f32.mrf.mxu0  ;;  %8923 = vmatpush3.bf16.msra.mxu1 %v9279_v22  ;;  %8916 = vmatprep.mubr.bf16.mxu1 %v8082_v8 }
 0x341   : > { %v8263_v44 = vadd.f32 %v8262_v46, %v8261_v24  ;;  %8924 = vmatprep.subr.bf16.mxu1 %v9282_v10  ;;  %v10370_v19 = vpop.f32.mrf.mxu1  ;;  %v9288_v24 = vld [vmem:[%s10920_s4 + $0x5d8] sm:$0xff]   ;;  %v9291_v46 = vld [vmem:[%s10920_s4 + $0x5d0] sm:$0xff]  }
 0x342   : > { %v8292_v55 = vpop.f32.mrf.mxu0  ;;  %8591 = vmatpush3.bf16.msra.mxu0 %v9278_v56 }
 0x343   : > { %v10362_v13 = vadd.f32 %v8775_v9, %v8263_v44  ;;  %8592 = vmatprep.subr.bf16.mxu0 %v9280_v53  ;;  %v9284_v9 = vld [vmem:[%s10920_s4 + $0x560] sm:$0xff]   ;;  %v2231_v39 = vpop.f32.mrf.mxu1  ;;  %8917 = vmatmul.mubr.bf16.gmra.mxu1 %v8085_v47  ;;  %v4754_v44 = vld [vmem:[#allocation2 + $0x90] sm:$0xff] }
 0x344   : > { %v8293_v54 = vpop.f32.mrf.mxu0  ;;  %8925 = vmatpush3.bf16.msra.mxu1 %v9282_v10  ;;  %v4750_v10 = vld [vmem:[#allocation2 + $0x68] sm:$0xff] }
 0x345   : > { %v8294_v3 = vadd.f32 %v8293_v54, %v8292_v55  ;;  %8926 = vmatprep.subr.bf16.mxu1 %v9285_v57  ;;  %5086 = vmatmul.mubr.bf16.gmra.mxu0 %v8077_v4  ;;  %v9290_v55 = vld [vmem:[%s10920_s4 + $0x550] sm:$0xff]   ;;  %v4753_v4 = vld [vmem:[#allocation2 + $0x1c8] sm:$0xff]  ;;  %v10409_v1 = vpop.f32.mrf.mxu1 }
 0x346   : > { %v8295_v0 = vpop.f32.mrf.mxu0  ;;  %8593 = vmatpush3.bf16.msra.mxu0 %v9281_v2  ;;  %5093 = vmatprep.mubr.bf16.mxu0 %v8081_v61 }
 0x347   : > { %v2164_v16 = vadd.f32 %v8294_v3, %v10240_v18  ;;  %v9286_v18 = vld [vmem:[%s10920_s4 + $0x598] sm:$0xff]   ;;  %8594 = vmatprep.subr.bf16.mxu0 %v9283_v59  ;;  %v2244_v38 = vpop.f32.mrf.mxu1 }
 0x348   : > { %v8296_v51 = vpop.f32.mrf.mxu0  ;;  %8927 = vmatpush3.bf16.msra.mxu1 %v9285_v57 }
 0x349   : > { %v8297_v25 = vadd.f32 %v8296_v51, %v8295_v0  ;;  %v10379_v42 = vadd.f32 %v2228_v20, %v2164_v16  ;;  %8928 = vmatprep.subr.bf16.mxu1 %v9288_v24  ;;  %v8084_v20 = vpack.c.bf16 %v4754_v44, %v4751_v58  ;;  %v9294_v0 = vld [vmem:[%s10920_s4 + $0x5c8] sm:$0xff]   ;;  %v8083_v16 = vpack.c.bf16 %v4753_v4, %v4750_v10  ;;  %v5191_v10 = vld [vmem:[#allocation2 + $0x80] sm:$0xfe] }
 0x34a   : > { %v8298_v40 = vpop.f32.mrf.mxu0  ;;  %8595 = vmatpush3.bf16.msra.mxu0 %v9284_v9  ;;  %v9295_v9 = vld [vmem:[%s10920_s4 + $0x580] sm:$0xff]   ;;  %v5185_v58 = vld [vmem:[#allocation2 + $0x108] sm:$0xfe] }
 0x34b   : > { %v2167_v43 = vadd.f32 %v8297_v25, %v10254_v60  ;;  %v9289_v60 = vld [vmem:[%s10920_s4 + $0x590] sm:$0xff]   ;;  %8596 = vmatprep.subr.bf16.mxu0 %v9286_v18  ;;  %v5186_v25 = vld [vmem:[#allocation2 + $0x60] sm:$0x1] }
 0x34c   : > { %v8299_v22 = vpop.f32.mrf.mxu0  ;;  %8929 = vmatpush3.bf16.msra.mxu1 %v9288_v24  ;;  %v5187_v18 = vld [vmem:[#allocation2 + $0xe0] sm:$0x1]  ;;  %v5193_v24 = vld [vmem:[#allocation2 + $0x1b8] sm:$0x1] }
 0x34d   : > { %v8300_v56 = vadd.f32 %v8299_v22, %v8298_v40  ;;  %v10391_v7 = vadd.f32 %v2231_v39, %v2167_v43  ;;  %5094 = vmatmul.mubr.bf16.gmra.mxu0 %v8080_v48  ;;  %8930 = vmatprep.subr.bf16.mxu1 %v9291_v46  ;;  %v5190_v40 = vld [vmem:[#allocation2 + $0x140] sm:$0xfe]  ;;  %v5192_v39 = vld [vmem:[#allocation2 + $0x1a8] sm:$0x1]  ;;  %v8088_v43 = vpack.c.bf16 %v5187_v18, %v5186_v25  ;;  %v5197_v25 = vld [vmem:[#allocation2 + $0x128] sm:$0xfe]  ;;  %v10448_v18 = vpop.f32.mrf.mxu1 }
 0x34e   : > { %v8301_v49 = vpop.f32.mrf.mxu0  ;;  %8597 = vmatpush3.bf16.msra.mxu0 %v9287_v12  ;;  %5101 = vmatprep.mubr.bf16.mxu0 %v8084_v20  ;;  %v8090_v22 = vpack.c.bf16 %v5190_v40, %v5189_v23  ;;  %v5188_v20 = vld [vmem:[#allocation2 + $0x188] sm:$0x1] }
 0x34f   : > { %v2172_v53 = vadd.f32 %v8300_v56, %v10276_v21  ;;  %v9292_v21 = vld [vmem:[%s10920_s4 + $0x588] sm:$0xff]   ;;  %8598 = vmatprep.subr.bf16.mxu0 %v9289_v60  ;;  %v5360_v56 = vshrl.u32 %v8086_v45, 16  ;;  %v5363_v60 = vshll.u32 %v8086_v45, 16 }
 0x350   : > { %v8302_v54 = vpop.f32.mrf.mxu0  ;;  %8931 = vmatpush3.bf16.msra.mxu1 %v9291_v46  ;;  %v9298_v46 = vld [vmem:[%s10920_s4 + $0x678] sm:$0xff]  }
 0x351   : > { %v10404_v2 = vadd.f32 %v10346_v15, %v2172_v53  ;;  %v8303_v3 = vadd.f32 %v8302_v54, %v8301_v49  ;;  %v9293_v15 = vld [vmem:[%s10920_s4 + $0x548] sm:$0xff]   ;;  %8932 = vmatprep.subr.bf16.mxu1 %v9294_v0  ;;  %v5369_v49 = vshll.u32 %v8088_v43, 16  ;;  %v5388_v53 = vshrl.u32 %v8090_v22, 16 }
 0x352   : > { %v8304_v57 = vpop.f32.mrf.mxu0  ;;  %8599 = vmatpush3.bf16.msra.mxu0 %v9290_v55  ;;  %v5391_v55 = vshll.u32 %v8090_v22, 16  ;;  %v8087_v54 = vpack.c.bf16 %v5185_v58, %v5185_v58  ;;  %v5203_v22 = vld [vmem:[#allocation2 + $0x148] sm:$0xfe]  ;;  %v5206_v58 = vld [vmem:[#allocation2 + $0xf8] sm:$0x1] }
 0x353   : > { %v2175_v59 = vadd.f32 %v8303_v3, %v10296_v63  ;;  %v9297_v63 = vld [vmem:[%s10920_s4 + $0x5c0] sm:$0xff]   ;;  %8600 = vmatprep.subr.bf16.mxu0 %v9292_v21  ;;  %v5362_v3 = vrot.slane %v5360_v56, 4  ;;  %v5365_v21 = vrot.slane %v5363_v60, 5 }
 0x354   : > { %v8305_v11 = vpop.f32.mrf.mxu0  ;;  %8933 = vmatpush3.bf16.msra.mxu1 %v9294_v0  ;;  %v5374_v14 = vshrl.u32 %v8087_v54, 16  ;;  %v5377_v23 = vshll.u32 %v8087_v54, 16  ;;  %v2247_v54 = vpop.f32.mrf.mxu1 }
 0x355   : > { %v10422_v61 = vadd.f32 %v10370_v19, %v2175_v59  ;;  %v8306_v50 = vadd.f32 %v8305_v11, %v8304_v57  ;;  %v9296_v19 = vld [vmem:[%s10920_s4 + $0x540] sm:$0xff]   ;;  %5102 = vmatmul.mubr.bf16.gmra.mxu0 %v8083_v16  ;;  %8934 = vmatprep.subr.bf16.mxu1 %v9297_v63  ;;  %v5371_v57 = vrot.slane %v5369_v49, 5  ;;  %v5194_v59 = vld [vmem:[#allocation2 + $0x28] sm:$0x1]  ;;  %v5390_v11 = vrot.slane %v5388_v53, 4 }
 0x356   : > { %v8307_v51 = vpop.f32.mrf.mxu0  ;;  %8601 = vmatpush3.bf16.msra.mxu0 %v9293_v15  ;;  %v5393_v16 = vrot.slane %v5391_v55, 5  ;;  %v5366_v6 = vor.u32 %v5365_v21, %v5362_v3  ;;  %v5376_v43 = vrot.slane %v5374_v14, 4  ;;  %v5379_v56 = vrot.slane %v5377_v23, 5 }
 0x357   : > { %v2180_v8 = vadd.f32 %v8306_v50, %v10330_v5  ;;  %v8092_v5 = vpack.c.bf16 %v5193_v24, %v5192_v39  ;;  %8602 = vmatprep.subr.bf16.mxu0 %v9295_v9  ;;  %v8089_v50 = vpack.c.bf16 %v5188_v20, %v5188_v20  ;;  %v8091_v9 = vpack.c.bf16 %v5191_v10, %v5191_v10  ;;  %v9299_v20 = vld [vmem:[%s10920_s4 + $0x638] sm:$0xff]  }
 0x358   : > { %v8308_v47 = vpop.f32.mrf.mxu0  ;;  %8935 = vmatpush3.bf16.msra.mxu1 %v9297_v63  ;;  %v5367_v45 = vrot.slane %v5366_v6, 4  ;;  %v8095_v10 = vpack.c.bf16 %v5197_v25, %v5197_v25  ;;  %v9301_v6 = vld [vmem:[%s10920_s4 + $0x670] sm:$0xff]  }
 0x359   : > { %v8309_v48 = vadd.f32 %v8308_v47, %v8307_v51  ;;  %v10431_v12 = vadd.f32 %v2244_v38, %v2180_v8  ;;  %v5397_v0 = vshll.u32 %v8092_v5, 16  ;;  %v8093_v38 = vpack.c.bf16 %v5194_v59, %v5194_v59 }
 0x35a   : > { %v10436_v44 = vpop.f32.mrf.mxu0  ;;  %8603 = vmatpush3.bf16.msra.mxu0 %v9296_v19  ;;  %v5394_v8 = vor.u32 %v5393_v16, %v5390_v11  ;;  %v5383_v40 = vshll.u32 %v8089_v50, 16  ;;  %v5402_v39 = vshrl.u32 %v8091_v9, 16  ;;  %v5200_v19 = vld [vmem:[#allocation2 + $0x170] sm:$0x1]  ;;  %v5405_v47 = vshll.u32 %v8091_v9, 16 }
 0x35b   : > { %v10439_v4 = vadd.f32 %v8309_v48, %v10335_v52  ;;  %v5399_v51 = vrot.slane %v5397_v0, 5  ;;  %v10446_v52 = vld [vmem:[%s10920_s4 + $0x6b8] sm:$0xff]   ;;  %8640 = vmatprep.subr.bf16.mxu0 %v9298_v46  ;;  %v5411_v24 = vshll.u32 %v8093_v38, 16  ;;  %v5372_v46 = vsel %vm9655_vm2, %v5367_v45, %v5371_v57 }
 0x35c   : > { %v10441_v15 = vpop.f32.mrf.mxu0  ;;  %8944 = vmatprep.subr.bf16.mxu1 %v10446_v52  ;;  %v5395_v5 = vrot.slane %v5394_v8, 4  ;;  %v5385_v60 = vrot.slane %v5383_v40, 5  ;;  %v5404_v49 = vrot.slane %v5402_v39, 4  ;;  %v5407_v53 = vrot.slane %v5405_v47, 5 }
 0x35d   : > { %v5413_v55 = vrot.slane %v5411_v24, 5  ;;  %v5380_v0 = vor.u32 %v5379_v56, %v5376_v43  ;;  %v8097_v59 = vpack.c.bf16 %v5200_v19, %v5200_v19  ;;  %v8099_v11 = vpack.c.bf16 %v5203_v22, %v5203_v22  ;;  %v9302_v56 = vld [vmem:[%s10920_s4 + $0x630] sm:$0xff]  }
 0x35e   : > { %v10450_v63 = vpop.f32.mrf.mxu0  ;;  %v5400_v21 = vsel %vm9655_vm2, %v5395_v5, %v5399_v51  ;;  %v5408_v9 = vor.u32 %v5407_v53, %v5404_v49  ;;  %v8101_v57 = vpack.c.bf16 %v5206_v58, %v5206_v58  ;;  %v5430_v8 = vshrl.u32 %v8095_v10, 16  ;;  %v5195_v49 = vld [vmem:[#allocation2 + $0xf0] sm:$0xfe] }
 0x35f   : > { %v7733_v16 = vcombine.low %v5372_v46, %v5400_v21  ;;  %v7734_v50 = vcombine.high %v5372_v46, %v5400_v21  ;;  %v10469_v14 = vpop.f32.mrf.mxu1  ;;  %v5381_v25 = vrot.slane %v5380_v0, 4  ;;  %v5433_v23 = vshll.u32 %v8095_v10, 16  ;;  %v5196_v21 = vld [vmem:[#allocation2 + $0x158] sm:$0xfe] }
 0x360   : > { %v10453_v48 = vpop.f32.mrf.mxu0  ;;  %v5439_v40 = vshll.u32 %v8097_v59, 16  ;;  %v5409_v51 = vrot.slane %v5408_v9, 4  ;;  %v5458_v39 = vshrl.u32 %v8099_v11, 16  ;;  %v5461_v19 = vshll.u32 %v8099_v11, 16  ;;  %v5199_v9 = vld [vmem:[#allocation2 + $0x8] sm:$0x1] }
 0x361   : > { %5856 = vmatprep.mubr.bf16.mxu0 %v7734_v50  ;;  %v5467_v45 = vshll.u32 %v8101_v57, 16  ;;  %v5386_v47 = vsel %vm9655_vm2, %v5381_v25, %v5385_v60  ;;  %v5432_v24 = vrot.slane %v5430_v8, 4  ;;  %v5435_v22 = vrot.slane %v5433_v23, 5  ;;  %v9304_v60 = vld [vmem:[%s10920_s4 + $0x668] sm:$0xff]   ;;  %v10483_v0 = vpop.f32.mrf.mxu1  ;;  %v5198_v50 = vld [vmem:[#allocation2 + $0x1d8] sm:$0x1] }
 0x362   : > { %v10460_v3 = vpop.f32.mrf.mxu0  ;;  %5857 = vmatmul.mubr.bf16.vlgmr.msra.gmra.mxu0 %v7733_v16  ;;  %v5441_v5 = vrot.slane %v5439_v40, 5  ;;  %v5414_v58 = vsel %vm9655_vm2, %v5409_v51, %v5413_v55  ;;  %v5460_v46 = vrot.slane %v5458_v39, 4  ;;  %v5463_v53 = vrot.slane %v5461_v19, 5  ;;  %v5201_v57 = vld [vmem:[#allocation2 + $0xc0] sm:$0xfe] }
 0x363   : > { %8641 = vmatpush3.bf16.msra.mxu0 %v9299_v20  ;;  %v5469_v10 = vrot.slane %v5467_v45, 5  ;;  %v7735_v11 = vcombine.low %v5386_v47, %v5414_v58  ;;  %v5436_v16 = vor.u32 %v5435_v22, %v5432_v24  ;;  %v8094_v25 = vpack.c.bf16 %v5196_v21, %v5195_v49  ;;  %v5202_v8 = vld [vmem:[#allocation2 + $0xa0] sm:$0xfe]  ;;  %v5204_v23 = vld [vmem:[#allocation2 + $0x1d0] sm:$0x1]  ;;  %v9305_v58 = vld [vmem:[%s10920_s4 + $0x628] sm:$0xff]  }
 0x364   : > { %v10467_v38 = vpop.f32.mrf.mxu0  ;;  %8642 = vmatprep.subr.bf16.mxu0 %v9301_v6  ;;  %v8312_v55 = vadd.f32 %v10441_v15, %v10436_v44  ;;  %v5464_v20 = vor.u32 %v5463_v53, %v5460_v46  ;;  %v5205_v40 = vld [vmem:[#allocation2 + $0x100] sm:$0x1]  ;;  %v8096_v51 = vpack.c.bf16 %v5199_v9, %v5198_v50  ;;  %v10488_v39 = vadd.f32 %v2247_v54, %v10439_v4  ;;  %v8819_v54 = vpop.f32.mrf.mxu1 }
 0x365   : > { %v8315_v19 = vadd.f32 %v10453_v48, %v10450_v63  ;;  %8936 = vmatprep.mubr.bf16.mxu1 %v7735_v11  ;;  %v5437_v6 = vrot.slane %v5436_v16, 4  ;;  %v8098_v47 = vpack.c.bf16 %v5202_v8, %v5201_v57  ;;  %v8100_v24 = vpack.c.bf16 %v5205_v40, %v5204_v23  ;;  %v10501_v48 = vld [vmem:[%s10920_s4 + $0x6b0] sm:$0xff]   ;;  %v9307_v11 = vld [vmem:[%s10920_s4 + $0x660] sm:$0xff]  }
 0x366   : > { %v10471_v43 = vpop.f32.mrf.mxu0  ;;  %v5416_v22 = vshrl.u32 %v8094_v25, 16  ;;  %v5465_v49 = vrot.slane %v5464_v20, 4  ;;  %v5419_v44 = vshll.u32 %v8094_v25, 16  ;;  %v5425_v15 = vshll.u32 %v8096_v51, 16 }
 0x367   : > { %8643 = vmatpush3.bf16.msra.mxu0 %v9302_v56  ;;  %v2188_v4 = vadd.f32 %v8312_v55, %v10351_v17  ;;  %v5442_v63 = vsel %vm9655_vm2, %v5437_v6, %v5441_v5  ;;  %v5444_v56 = vshrl.u32 %v8098_v47, 16  ;;  %v5447_v21 = vshll.u32 %v8098_v47, 16  ;;  %v9308_v5 = vld [vmem:[%s10920_s4 + $0x620] sm:$0xff]   ;;  %v2845_v6 = vpop.f32.mrf.mxu1 }
 0x368   : > { %v8348_v59 = vpop.f32.mrf.mxu0  ;;  %v5418_v53 = vrot.slane %v5416_v22, 4  ;;  %8644 = vmatprep.subr.bf16.mxu0 %v9304_v60  ;;  %v5470_v17 = vsel %vm9655_vm2, %v5465_v49, %v5469_v10  ;;  %v5421_v16 = vrot.slane %v5419_v44, 5  ;;  %v5427_v50 = vrot.slane %v5425_v15, 5  ;;  %v9310_v10 = vld [vmem:[%s10920_s4 + $0x658] sm:$0xff]   ;;  %v9306_v44 = vld [vmem:[%s10920_s4 + $0x6a8] sm:$0xff]  }
 0x369   : > { %v5453_v9 = vshll.u32 %v8100_v24, 16  ;;  %v7738_v25 = vcombine.low %v5442_v63, %v5470_v17  ;;  %v5446_v55 = vrot.slane %v5444_v56, 4  ;;  %v5449_v20 = vrot.slane %v5447_v21, 5  ;;  %v5207_v15 = vld [vmem:[#allocation2 + $0x40] sm:$0xfe] }
 0x36a   : > { %v8350_v45 = vpop.f32.mrf.mxu0  ;;  %v10512_v60 = vadd.f32 %v10409_v1, %v2188_v4  ;;  %v5422_v8 = vor.u32 %v5421_v16, %v5418_v53  ;;  %v2191_v40 = vadd.f32 %v8315_v19, %v10362_v13  ;;  %v8346_v51 = vadd.f32 %v10467_v38, %v10460_v3  ;;  %v5208_v13 = vld [vmem:[#allocation2 + $0xa8] sm:$0xfe]  ;;  %v5213_v63 = vld [vmem:[#allocation2 + $0x38] sm:$0xfe]  ;;  %v5214_v53 = vld [vmem:[#allocation2 + $0x20] sm:$0xfe] }
 0x36b   : > { %v5455_v23 = vrot.slane %v5453_v9, 5  ;;  %8645 = vmatpush3.bf16.msra.mxu0 %v9305_v58  ;;  %8937 = vmatmul.mubr.bf16.vlgmr.msra.gmra.mxu1 %v7738_v25  ;;  %v5450_v24 = vor.u32 %v5449_v20, %v5446_v55  ;;  %v8349_v1 = vadd.f32 %v8348_v59, %v10471_v43  ;;  %v5210_v43 = vld [vmem:[#allocation2 + $0x1a0] sm:$0x1]  ;;  %v5211_v59 = vld [vmem:[#allocation2 + $0xb8] sm:$0x1] }
 0x36c   : > { %v8351_v46 = vpop.f32.mrf.mxu0  ;;  %8646 = vmatprep.subr.bf16.mxu0 %v9307_v11  ;;  %8945 = vmatpush3.bf16.msra.mxu1 %v10446_v52  ;;  %v5423_v49 = vrot.slane %v5422_v8, 4  ;;  %v10526_v19 = vadd.f32 %v10448_v18, %v2191_v40  ;;  %v2843_v3 = vadd.f32 %v8346_v51, %v10483_v0  ;;  %v9311_v52 = vld [vmem:[%s10920_s4 + $0x618] sm:$0xff]   ;;  %v8104_v21 = vpack.c.bf16 %v5211_v59, %v5210_v43  ;;  %v5217_v9 = vld [vmem:[#allocation2 + $0x88] sm:$0x1]  ;;  %v5209_v8 = vld [vmem:[#allocation2 + $0x190] sm:$0xfe] }
 0x36d   : > { %v8352_v22 = vadd.f32 %v8351_v46, %v8350_v45  ;;  %8946 = vmatprep.subr.bf16.mxu1 %v10501_v48  ;;  %v5451_v58 = vrot.slane %v5450_v24, 4  ;;  %v8102_v45 = vpack.c.bf16 %v5208_v13, %v5207_v15  ;;  %v10533_v4 = vadd.f32 %v8349_v1, %v2845_v6  ;;  %v5216_v56 = vld [vmem:[#allocation2 + $0x58] sm:$0x1]  ;;  %v5212_v24 = vld [vmem:[#allocation2] sm:$0x1] }
 0x36e   : > { %v8353_v57 = vpop.f32.mrf.mxu0  ;;  %v5428_v0 = vsel %vm9655_vm2, %v5423_v49, %v5427_v50  ;;  %v10543_v11 = vadd.f32 %v2843_v3, %v10379_v42  ;;  %v8108_v42 = vpack.c.bf16 %v5217_v9, %v5216_v56  ;;  %v5215_v49 = vld [vmem:[#allocation2 + $0x10] sm:$0xfe]  ;;  %v8103_v15 = vpack.c.bf16 %v5209_v8, %v5209_v8 }
 0x36f   : > { %v10536_v46 = vadd.f32 %v10469_v14, %v8352_v22  ;;  %8647 = vmatpush3.bf16.msra.mxu0 %v9308_v5  ;;  %v5456_v16 = vsel %vm9655_vm2, %v5451_v58, %v5455_v23  ;;  %v9309_v14 = vld [vmem:[%s10920_s4 + $0x6a0] sm:$0xff]   ;;  %v5472_v50 = vshrl.u32 %v8102_v45, 16  ;;  %v5475_v5 = vshll.u32 %v8102_v45, 16  ;;  %v9313_v23 = vld [vmem:[%s10920_s4 + $0x650] sm:$0xff]  }
 0x370   : > { %v8354_v47 = vpop.f32.mrf.mxu0  ;;  %8648 = vmatprep.subr.bf16.mxu0 %v9310_v10  ;;  %v7736_v55 = vcombine.low %v5428_v0, %v5456_v16  ;;  %v7737_v20 = vcombine.high %v5428_v0, %v5456_v16  ;;  %8947 = vmatpush3.bf16.msra.mxu1 %v10501_v48  ;;  %v5509_v22 = vshll.u32 %v8108_v42, 16  ;;  %v5218_v48 = vld [vmem:[#allocation2 + $0xd0] sm:$0x1]  ;;  %v8105_v13 = vpack.c.bf16 %v5212_v24, %v5212_v24  ;;  %v9316_v24 = vld [vmem:[%s10920_s4 + $0x648] sm:$0xff]  }
 0x371   : > { %v8355_v38 = vadd.f32 %v8354_v47, %v8353_v57  ;;  %v8106_v57 = vpack.c.bf16 %v5214_v53, %v5213_v63  ;;  %8948 = vmatprep.subr.bf16.mxu1 %v9306_v44  ;;  %v5474_v40 = vrot.slane %v5472_v50, 4  ;;  %v5477_v51 = vrot.slane %v5475_v5, 5  ;;  %v5221_v53 = vld [vmem:[#allocation2 + $0x198] sm:$0xfe]  ;;  %v9314_v56 = vld [vmem:[%s10920_s4 + $0x610] sm:$0xff]  }
 0x372   : > { %v10538_v18 = vpop.f32.mrf.mxu0  ;;  %5864 = vmatprep.mubr.bf16.mxu0 %v7737_v20  ;;  %v8107_v43 = vpack.c.bf16 %v5215_v49, %v5215_v49  ;;  %v5511_v59 = vrot.slane %v5509_v22, 5  ;;  %v8109_v45 = vpack.c.bf16 %v5218_v48, %v5218_v48  ;;  %v5486_v0 = vshrl.u32 %v8103_v15, 16  ;;  %v9312_v50 = vld [vmem:[%s10920_s4 + $0x698] sm:$0xff]  }
 0x373   : > { %v10545_v17 = vadd.f32 %v8819_v54, %v8355_v38  ;;  %v5481_v54 = vshll.u32 %v8104_v21, 16  ;;  %v5500_v6 = vshrl.u32 %v8106_v57, 16  ;;  %v5503_v47 = vshll.u32 %v8106_v57, 16  ;;  %8649 = vmatpush3.bf16.msra.mxu0 %v9311_v52  ;;  %v5224_v57 = vld [vmem:[#allocation2 + $0x70] sm:$0x1] }
 0x374   : > { %v10552_v25 = vpop.f32.mrf.mxu0  ;;  %5865 = vmatmul.mubr.bf16.gmra.mxu0 %v7736_v55  ;;  %v5478_v3 = vor.u32 %v5477_v51, %v5474_v40  ;;  %8650 = vmatprep.subr.bf16.mxu0 %v9313_v23  ;;  %v5489_v63 = vshll.u32 %v8103_v15, 16  ;;  %v5495_v52 = vshll.u32 %v8105_v13, 16  ;;  %v5514_v9 = vshrl.u32 %v8107_v43, 16 }
 0x375   : > { %v5483_v1 = vrot.slane %v5481_v54, 5  ;;  %v5502_v38 = vrot.slane %v5500_v6, 4  ;;  %v5505_v58 = vrot.slane %v5503_v47, 5  ;;  %8949 = vmatpush3.bf16.msra.mxu1 %v9306_v44  ;;  %v5488_v5 = vrot.slane %v5486_v0, 4  ;;  %v5227_v54 = vld [vmem:[#allocation2 + $0x160] sm:$0xfe] }
 0x376   : > { %v10558_v10 = vpop.f32.mrf.mxu0  ;;  %8950 = vmatprep.subr.bf16.mxu1 %v9309_v14  ;;  %v5479_v21 = vrot.slane %v5478_v3, 4  ;;  %v5491_v55 = vrot.slane %v5489_v63, 5  ;;  %v5517_v20 = vshll.u32 %v8107_v43, 16  ;;  %v5523_v42 = vshll.u32 %v8109_v45, 16  ;;  %v5230_v6 = vld [vmem:[#allocation2 + $0x1c0] sm:$0x1] }
 0x377   : > { %v5506_v16 = vor.u32 %v5505_v58, %v5502_v38  ;;  %8651 = vmatpush3.bf16.msra.mxu0 %v9314_v56  ;;  %v5497_v40 = vrot.slane %v5495_v52, 5  ;;  %v5516_v51 = vrot.slane %v5514_v9, 4  ;;  %v9315_v47 = vld [vmem:[%s10920_s4 + $0x690] sm:$0xff]   ;;  %v8111_v15 = vpack.c.bf16 %v5221_v53, %v5221_v53  ;;  %v10578_v58 = vpop.f32.mrf.mxu1 }
 0x378   : > { %v10566_v44 = vpop.f32.mrf.mxu0  ;;  %v5484_v8 = vsel %vm9655_vm2, %v5479_v21, %v5483_v1  ;;  %v5492_v22 = vor.u32 %v5491_v55, %v5488_v5  ;;  %v5519_v49 = vrot.slane %v5517_v20, 5  ;;  %v5525_v48 = vrot.slane %v5523_v42, 5  ;;  %8652 = vmatprep.subr.bf16.mxu0 %v9316_v24  ;;  %v5219_v20 = vld [vmem:[#allocation2 + $0x68] sm:$0xfe] }
 0x379   : > { %v5507_v23 = vrot.slane %v5506_v16, 4  ;;  %8951 = vmatpush3.bf16.msra.mxu1 %v9309_v14  ;;  %v8113_v13 = vpack.c.bf16 %v5224_v57, %v5224_v57  ;;  %v8115_v3 = vpack.c.bf16 %v5227_v54, %v5227_v54  ;;  %v8117_v38 = vpack.c.bf16 %v5230_v6, %v5230_v6  ;;  %v9317_v14 = vld [vmem:[%s10920_s4 + $0x608] sm:$0xff]   ;;  %v10592_v24 = vpop.f32.mrf.mxu1 }
 0x37a   : > { %8952 = vmatprep.subr.bf16.mxu1 %v9312_v50  ;;  %v5493_v63 = vrot.slane %v5492_v22, 4  ;;  %v5520_v56 = vor.u32 %v5519_v49, %v5516_v51  ;;  %v5542_v53 = vshrl.u32 %v8111_v15, 16  ;;  %v5545_v21 = vshll.u32 %v8111_v15, 16  ;;  %v9318_v42 = vld [vmem:[%s10920_s4 + $0x688] sm:$0xff]  }
 0x37b   : > { %v5512_v1 = vsel %vm9655_vm2, %v5507_v23, %v5511_v59  ;;  %v5551_v59 = vshll.u32 %v8113_v13, 16  ;;  %v5570_v16 = vshrl.u32 %v8115_v3, 16  ;;  %v5573_v5 = vshll.u32 %v8115_v3, 16  ;;  %v5220_v6 = vld [vmem:[#allocation2 + $0xc8] sm:$0xfe]  ;;  %8653 = vmatpush3.bf16.msra.mxu0 %v9317_v14 }
 0x37c   : > { %v10580_v43 = vpop.f32.mrf.mxu0  ;;  %v7739_v45 = vcombine.low %v5484_v8, %v5512_v1  ;;  %v7740_v0 = vcombine.high %v5484_v8, %v5512_v1  ;;  %v5498_v9 = vsel %vm9655_vm2, %v5493_v63, %v5497_v40  ;;  %v5521_v57 = vrot.slane %v5520_v56, 4  ;;  %v5222_v15 = vld [vmem:[#allocation2 + $0xe8] sm:$0x1]  ;;  %v5223_v1 = vld [vmem:[#allocation2 + $0x178] sm:$0x1] }
 0x37d   : > { %v5579_v55 = vshll.u32 %v8117_v38, 16  ;;  %8953 = vmatpush3.bf16.msra.mxu1 %v9312_v50  ;;  %v5544_v54 = vrot.slane %v5542_v53, 4  ;;  %v5547_v8 = vrot.slane %v5545_v21, 5  ;;  %v5553_v23 = vrot.slane %v5551_v59, 5  ;;  %v5228_v63 = vld [vmem:[#allocation2 + $0x30] sm:$0x1] }
 0x37e   : > { %v10585_v52 = vpop.f32.mrf.mxu0  ;;  %5872 = vmatprep.mubr.bf16.mxu0 %v7740_v0  ;;  %v5572_v51 = vrot.slane %v5570_v16, 4  ;;  %8954 = vmatprep.subr.bf16.mxu1 %v9315_v47  ;;  %v5526_v40 = vsel %vm9655_vm2, %v5521_v57, %v5525_v48  ;;  %v5575_v49 = vrot.slane %v5573_v5, 5  ;;  %v8110_v13 = vpack.c.bf16 %v5220_v6, %v5219_v20  ;;  %v5226_v0 = vld [vmem:[#allocation2 + $0x90] sm:$0xfe]  ;;  %v5229_v16 = vld [vmem:[#allocation2 + $0x78] sm:$0x1] }
 0x37f   : > { %5873 = vmatmul.mubr.bf16.gmra.mxu0 %v7739_v45  ;;  %v5581_v50 = vrot.slane %v5579_v55, 5  ;;  %v7741_v3 = vcombine.low %v5498_v9, %v5526_v40  ;;  %v5548_v38 = vor.u32 %v5547_v8, %v5544_v54  ;;  %v5225_v45 = vld [vmem:[#allocation2 + $0x1c8] sm:$0xfe]  ;;  %v8112_v56 = vpack.c.bf16 %v5223_v1, %v5222_v15  ;;  %v8823_v54 = vpop.f32.mrf.mxu1  ;;  %v9319_v1 = vld [vmem:[%s10920_s4 + $0x640] sm:$0xff]  }
 0x380   : > { %v8365_v22 = vpop.f32.mrf.mxu0  ;;  %v10598_v53 = vadd.f32 %v10533_v4, %v10391_v7  ;;  %v5576_v59 = vor.u32 %v5575_v49, %v5572_v51  ;;  %v8114_v48 = vpack.c.bf16 %v5226_v0, %v5225_v45  ;;  %v5528_v57 = vshrl.u32 %v8110_v13, 16  ;;  %8654 = vmatprep.subr.bf16.mxu0 %v9319_v1 }
 0x381   : > { %v5531_v5 = vshll.u32 %v8110_v13, 16  ;;  %8955 = vmatpush3.bf16.msra.mxu1 %v9315_v47  ;;  %8940 = vmatprep.mubr.bf16.mxu1 %v7741_v3  ;;  %v5549_v55 = vrot.slane %v5548_v38, 4  ;;  %v8116_v14 = vpack.c.bf16 %v5229_v16, %v5228_v63  ;;  %v5537_v9 = vshll.u32 %v8112_v56, 16  ;;  %v9320_v38 = vld [vmem:[%s10920_s4 + $0x600] sm:$0xff]  }
 0x382   : > { %v8366_v21 = vpop.f32.mrf.mxu0  ;;  %8956 = vmatprep.subr.bf16.mxu1 %v9318_v42  ;;  %v10602_v20 = vadd.f32 %v10536_v46, %v10404_v2  ;;  %v5577_v7 = vrot.slane %v5576_v59, 4  ;;  %v5530_v4 = vrot.slane %v5528_v57, 4  ;;  %v5556_v51 = vshrl.u32 %v8114_v48, 16  ;;  %v2861_v59 = vpop.f32.mrf.mxu1  ;;  %8655 = vmatpush3.bf16.msra.mxu0 %v9320_v38  ;;  %v5967_v38 = vld [vmem:[#allocation2 + $0x188] sm:$0x3] }
 0x383   : > { %v5533_v6 = vrot.slane %v5531_v5, 5  ;;  %v5554_v40 = vsel %vm9655_vm2, %v5549_v55, %v5553_v23  ;;  %v5539_v49 = vrot.slane %v5537_v9, 5  ;;  %v5559_v47 = vshll.u32 %v8114_v48, 16  ;;  %v5962_v5 = vld [vmem:[#allocation2 + $0x120] sm:$0xfc] }
 0x384   : > { %v8396_v8 = vpop.f32.mrf.mxu0  ;;  %v5565_v15 = vshll.u32 %v8116_v14, 16  ;;  %v5582_v2 = vsel %vm9655_vm2, %v5577_v7, %v5581_v50  ;;  %v5558_v3 = vrot.slane %v5556_v51, 4  ;;  %v10616_v23 = vadd.f32 %v10545_v17, %v10422_v61  ;;  %v5965_v7 = vld [vmem:[#allocation2 + $0x60] sm:$0x3] }
 0x385   : > { %v5534_v46 = vor.u32 %v5533_v6, %v5530_v4  ;;  %8957 = vmatpush3.bf16.msra.mxu1 %v9318_v42  ;;  %v7744_v45 = vcombine.low %v5554_v40, %v5582_v2  ;;  %v5561_v0 = vrot.slane %v5559_v47, 5  ;;  %v8358_v56 = vadd.f32 %v10552_v25, %v10538_v18  ;;  %v9321_v42 = vld [vmem:[%s10920_s4 + $0x680] sm:$0xff]   ;;  %v5963_v18 = vld [vmem:[#allocation2 + $0x150] sm:$0xfc]  ;;  %v5972_v47 = vld [vmem:[#allocation2 + $0x1b8] sm:$0x3] }
 0x386   : > { %v8397_v13 = vpop.f32.mrf.mxu0  ;;  %v5567_v63 = vrot.slane %v5565_v15, 5  ;;  %v8361_v61 = vadd.f32 %v10566_v44, %v10558_v10  ;;  %v8364_v17 = vadd.f32 %v10585_v52, %v10580_v43  ;;  %v8367_v48 = vadd.f32 %v8366_v21, %v8365_v22  ;;  %8958 = vmatprep.subr.bf16.mxu1 %v9321_v42  ;;  %v5966_v10 = vld [vmem:[#allocation2 + $0xe0] sm:$0x3]  ;;  %v5968_v44 = vld [vmem:[#allocation2 + $0x138] sm:$0xfc]  ;;  %v10637_v22 = vpop.f32.mrf.mxu1 }
 0x387   : > { %v5535_v16 = vrot.slane %v5534_v46, 4  ;;  %8941 = vmatmul.mubr.bf16.gmra.mxu1 %v7744_v45  ;;  %v5562_v57 = vor.u32 %v5561_v0, %v5558_v3  ;;  %v2859_v25 = vadd.f32 %v8358_v56, %v10592_v24  ;;  %v10630_v55 = vadd.f32 %v8397_v13, %v8396_v8  ;;  %v5969_v6 = vld [vmem:[#allocation2 + $0x140] sm:$0xfc]  ;;  %v5971_v24 = vld [vmem:[#allocation2 + $0x1a8] sm:$0x3] }
 0x388   : > { %v10620_v50 = vpop.f32.mrf.mxu0  ;;  %v8118_v4 = vpack.c.bf16 %v5963_v18, %v5962_v5  ;;  %v2862_v43 = vadd.f32 %v8361_v61, %v2861_v59  ;;  %v2867_v52 = vadd.f32 %v10578_v58, %v8364_v17  ;;  %v8120_v8 = vpack.c.bf16 %v5966_v10, %v5965_v7  ;;  %v5964_v13 = vld [vmem:[#allocation2 + $0x108] sm:$0xfc]  ;;  %v10656_v17 = vpop.f32.mrf.mxu1  ;;  %v5985_v7 = vld [vmem:[#allocation2 + $0xf8] sm:$0x3] }
 0x389   : > { %v5540_v9 = vsel %vm9655_vm2, %v5535_v16, %v5539_v49  ;;  %v5563_v21 = vrot.slane %v5562_v57, 4  ;;  %8959 = vmatpush3.bf16.msra.mxu1 %v9321_v42  ;;  %v10640_v51 = vadd.f32 %v2859_v25, %v10431_v12  ;;  %v10642_v40 = vadd.f32 %v8823_v54, %v8367_v48  ;;  %v5970_v54 = vld [vmem:[#allocation2 + $0x80] sm:$0xfc]  ;;  %v5973_v42 = vld [vmem:[#allocation2 + $0x28] sm:$0x3] }
 0x38a   : > { %v10632_v14 = vpop.f32.mrf.mxu0  ;;  %v8122_v15 = vpack.c.bf16 %v5969_v6, %v5968_v44  ;;  %v7801_v1 = vrot.slane %v8118_v4, 9  ;;  %v10647_v58 = vadd.f32 %v2862_v43, %v10488_v39  ;;  %v10650_v2 = vadd.f32 %v2867_v52, %v10512_v60  ;;  %v5976_v39 = vld [vmem:[#allocation2 + $0x128] sm:$0xfc]  ;;  %v5979_v57 = vld [vmem:[#allocation2 + $0x170] sm:$0x3] }
 0x38b   : > { %v5568_v46 = vsel %vm9655_vm2, %v5563_v21, %v5567_v63  ;;  %v8124_v3 = vpack.c.bf16 %v5972_v47, %v5971_v24  ;;  %v6140_v12 = vrot.slane %v8120_v8, 5  ;;  %v8119_v45 = vpack.c.bf16 %v5964_v13, %v5964_v13  ;;  %v5982_v5 = vld [vmem:[#allocation2 + $0x148] sm:$0xfc]  ;;  %v5974_v4 = vld [vmem:[#allocation2 + $0xf0] sm:$0xfc] }
 0x38c   : > { %v10644_v49 = vpop.f32.mrf.mxu0  ;;  %v7742_v56 = vcombine.low %v5540_v9, %v5568_v46  ;;  %v7743_v59 = vcombine.high %v5540_v9, %v5568_v46  ;;  %v7803_v16 = vrot.slane %v8122_v15, 9  ;;  %v8121_v61 = vpack.c.bf16 %v5967_v38, %v5967_v38  ;;  %v5975_v24 = vld [vmem:[#allocation2 + $0x158] sm:$0xfc]  ;;  %v5977_v8 = vld [vmem:[#allocation2 + $0x1d8] sm:$0x3] }
 0x38d   : > { %v10660_v60 = vsel %vm9858_vm5, %v7801_v1, %v6140_v12  ;;  %v6148_v41 = vrot.slane %v8124_v3, 5  ;;  %v8123_v63 = vpack.c.bf16 %v5970_v54, %v5970_v54  ;;  %v8125_v48 = vpack.c.bf16 %v5973_v42, %v5973_v42  ;;  %v5978_v3 = vld [vmem:[#allocation2 + $0x8] sm:$0x3]  ;;  %v5980_v12 = vld [vmem:[#allocation2 + $0xc0] sm:$0xfc]  ;;  %v10672_v54 = vpop.f32.mrf.mxu1 }
 0x38e   : > { %v10654_v0 = vpop.f32.mrf.mxu0  ;;  %5880 = vmatprep.mubr.bf16.mxu0 %v7743_v59  ;;  %v7802_v25 = vrot.slane %v8119_v45, 9  ;;  %v6144_v9 = vrot.slane %v8121_v61, 5  ;;  %v8127_v10 = vpack.c.bf16 %v5976_v39, %v5976_v39  ;;  %v8129_v44 = vpack.c.bf16 %v5979_v57, %v5979_v57  ;;  %v5981_v38 = vld [vmem:[#allocation2 + $0xa0] sm:$0xfc]  ;;  %v5983_v42 = vld [vmem:[#allocation2 + $0x1d0] sm:$0x3] }
 0x38f   : > { %5881 = vmatmul.mubr.bf16.gmra.mxu0 %v7742_v56  ;;  %v6149_v43 = vsel %vm9858_vm5, %v7803_v16, %v6148_v41  ;;  %v7804_v52 = vrot.slane %v8123_v63, 9  ;;  %v6152_v21 = vrot.slane %v8125_v48, 5  ;;  %v8131_v6 = vpack.c.bf16 %v5982_v5, %v5982_v5  ;;  %v5984_v41 = vld [vmem:[#allocation2 + $0x100] sm:$0x3]  ;;  %v5986_v57 = vld [vmem:[#allocation2 + $0x40] sm:$0xfc] }
 0x390   : > { %v10662_v18 = vpop.f32.mrf.mxu0  ;;  %v7865_v15 = vcombine.low %v10660_v60, %v6149_v43  ;;  %v7866_v1 = vcombine.high %v10660_v60, %v6149_v43  ;;  %v6145_v13 = vsel %vm9858_vm5, %v7802_v25, %v6144_v9  ;;  %v8133_v46 = vpack.c.bf16 %v5985_v7, %v5985_v7  ;;  %v5987_v7 = vld [vmem:[#allocation2 + $0xa8] sm:$0xfc]  ;;  %v5989_v43 = vld [vmem:[#allocation2 + $0x1a0] sm:$0x3] }
 0x391   : > { %v6153_v45 = vsel %vm9858_vm5, %v7804_v52, %v6152_v21  ;;  %v7806_v56 = vrot.slane %v8127_v10, 9  ;;  %v6160_v59 = vrot.slane %v8129_v44, 5  ;;  %v7808_v16 = vrot.slane %v8131_v6, 9  ;;  %v5990_v10 = vld [vmem:[#allocation2 + $0xb8] sm:$0x3] }
 0x392   : > { %v10666_v47 = vpop.f32.mrf.mxu0  ;;  %6475 = vmatprep.mubr.bf16.mxu0 %v7866_v1  ;;  %v7867_v39 = vcombine.low %v6145_v13, %v6153_v45  ;;  %v6168_v60 = vrot.slane %v8133_v46, 5  ;;  %v8126_v63 = vpack.c.bf16 %v5975_v24, %v5974_v4  ;;  %v8128_v48 = vpack.c.bf16 %v5978_v3, %v5977_v8  ;;  %v5992_v24 = vld [vmem:[#allocation2 + $0x38] sm:$0xfc]  ;;  %v5993_v8 = vld [vmem:[#allocation2 + $0x20] sm:$0xfc]  ;;  %v10688_v13 = vpop.f32.mrf.mxu1 }
 0x393   : > { %v6161_v5 = vsel %vm9858_vm5, %v7806_v56, %v6160_v59  ;;  %v8130_v25 = vpack.c.bf16 %v5981_v38, %v5980_v12  ;;  %v8132_v9 = vpack.c.bf16 %v5984_v41, %v5983_v42  ;;  %v10682_v44 = vadd.f32 %v10642_v40, %v10526_v19  ;;  %v5995_v38 = vld [vmem:[#allocation2 + $0x58] sm:$0x3]  ;;  %v5996_v45 = vld [vmem:[#allocation2 + $0x88] sm:$0x3] }
 0x394   : > { %v10676_v61 = vpop.f32.mrf.mxu0  ;;  %8960 = vmatprep.mubr.bf16.mxu1 %v7867_v39  ;;  %v6169_v4 = vsel %vm9858_vm5, %v7808_v16, %v6168_v60  ;;  %v7805_v21 = vrot.slane %v8126_v63, 9  ;;  %v6156_v6 = vrot.slane %v8128_v48, 5  ;;  %v8134_v1 = vpack.c.bf16 %v5987_v7, %v5986_v57  ;;  %v5988_v39 = vld [vmem:[#allocation2 + $0x190] sm:$0xfc]  ;;  %v5991_v60 = vld [vmem:[#allocation2] sm:$0x3]  ;;  %v10694_v41 = vpop.f32.mrf.mxu1 }
 0x395   : > { %v7870_v46 = vcombine.low %v6161_v5, %v6169_v4  ;;  %v7807_v3 = vrot.slane %v8130_v25, 9  ;;  %v6164_v12 = vrot.slane %v8132_v9, 5  ;;  %v8136_v19 = vpack.c.bf16 %v5990_v10, %v5989_v43  ;;  %v5994_v57 = vld [vmem:[#allocation2 + $0x10] sm:$0xfc]  ;;  %v5997_v5 = vld [vmem:[#allocation2 + $0xd0] sm:$0x3] }
 0x396   : > { %v10684_v52 = vpop.f32.mrf.mxu0  ;;  %v6157_v56 = vsel %vm9858_vm5, %v7805_v21, %v6156_v6  ;;  %v8138_v59 = vpack.c.bf16 %v5993_v8, %v5992_v24  ;;  %v8140_v16 = vpack.c.bf16 %v5996_v45, %v5995_v38  ;;  %v7809_v42 = vrot.slane %v8134_v1, 9  ;;  %v6000_v6 = vld [vmem:[#allocation2 + $0x198] sm:$0xfc]  ;;  %v6003_v24 = vld [vmem:[#allocation2 + $0x70] sm:$0x3] }
 0x397   : > { %6476 = vmatmul.mubr.bf16.vlgmr.msra.gmra.mxu0 %v7865_v15  ;;  %8961 = vmatmul.mubr.bf16.vlgmr.msra.gmra.mxu1 %v7870_v46  ;;  %v6165_v63 = vsel %vm9858_vm5, %v7807_v3, %v6164_v12  ;;  %v6172_v48 = vrot.slane %v8136_v19, 5  ;;  %v8135_v25 = vpack.c.bf16 %v5988_v39, %v5988_v39  ;;  %v8137_v9 = vpack.c.bf16 %v5991_v60, %v5991_v60  ;;  %v6006_v3 = vld [vmem:[#allocation2 + $0x160] sm:$0xfc]  ;;  %v6009_v12 = vld [vmem:[#allocation2 + $0x1c0] sm:$0x3]  ;;  %v3310_v60 = vpop.f32.mrf.mxu1 }
 0x398   : > { %v10690_v40 = vpop.f32.mrf.mxu0  ;;  %v7868_v43 = vcombine.low %v6157_v56, %v6165_v63  ;;  %v7869_v10 = vcombine.high %v6157_v56, %v6165_v63  ;;  %v7811_v4 = vrot.slane %v8138_v59, 9  ;;  %v6180_v21 = vrot.slane %v8140_v16, 5  ;;  %v5998_v16 = vld [vmem:[#allocation2 + $0x68] sm:$0xfc] }
 0x399   : > { %v10702_v15 = vsel %vm9858_vm5, %v7809_v42, %v6172_v48  ;;  %v8139_v8 = vpack.c.bf16 %v5994_v57, %v5994_v57  ;;  %v8141_v1 = vpack.c.bf16 %v5997_v5, %v5997_v5  ;;  %v7810_v46 = vrot.slane %v8135_v25, 9  ;;  %v5999_v39 = vld [vmem:[#allocation2 + $0xc8] sm:$0xfc]  ;;  %v6001_v5 = vld [vmem:[#allocation2 + $0xe8] sm:$0x3]  ;;  %v8847_v33 = vpop.f32.mrf.mxu1 }
 0x39a   : > { %v10698_v7 = vpop.f32.mrf.mxu0  ;;  %6483 = vmatprep.mubr.bf16.mxu0 %v7869_v10  ;;  %v10706_v45 = vsel %vm9858_vm5, %v7811_v4, %v6180_v21  ;;  %v6176_v19 = vrot.slane %v8137_v9, 5  ;;  %v8143_v56 = vpack.c.bf16 %v6000_v6, %v6000_v6  ;;  %v8145_v59 = vpack.c.bf16 %v6003_v24, %v6003_v24  ;;  %v6002_v25 = vld [vmem:[#allocation2 + $0x178] sm:$0x3]  ;;  %v6004_v24 = vld [vmem:[#allocation2 + $0x1c8] sm:$0xfc] }
 0x39b   : > { %v7872_v63 = vcombine.high %v10702_v15, %v10706_v45  ;;  %v7812_v48 = vrot.slane %v8139_v8, 9  ;;  %v6184_v57 = vrot.slane %v8141_v1, 5  ;;  %v8147_v9 = vpack.c.bf16 %v6006_v3, %v6006_v3 }
 0x39c   : > { %v8414_v38 = vpop.f32.mrf.mxu0  ;;  %v6177_v4 = vsel %vm9858_vm5, %v7810_v46, %v6176_v19  ;;  %v8149_v21 = vpack.c.bf16 %v6009_v12, %v6009_v12  ;;  %v7814_v6 = vrot.slane %v8143_v56, 9  ;;  %v6192_v34 = vrot.slane %v8145_v59, 5 }
 0x39d   : > { %v6185_v37 = vsel %vm9858_vm5, %v7812_v48, %v6184_v57  ;;  %v8142_v32 = vpack.c.bf16 %v5999_v39, %v5998_v16  ;;  %v8144_v8 = vpack.c.bf16 %v6002_v25, %v6001_v5  ;;  %v7816_v31 = vrot.slane %v8147_v9, 9 }
 0x39e   : > { %v8415_v10 = vpop.f32.mrf.mxu0  ;;  %v7873_v29 = vcombine.low %v6177_v4, %v6185_v37  ;;  %v6200_v42 = vrot.slane %v8149_v21, 5  ;;  %v8146_v28 = vpack.c.bf16 %v6005_v35, %v6004_v24  ;;  %v6193_v46 = vsel %vm9858_vm5, %v7814_v6, %v6192_v34 }
 0x39f   : > { %6484 = vmatmul.mubr.bf16.gmra.mxu0 %v7868_v43  ;;  %v8148_v3 = vpack.c.bf16 %v6008_v30, %v6007_v36  ;;  %v7813_v12 = vrot.slane %v8142_v32, 9  ;;  %v6188_v19 = vrot.slane %v8144_v8, 5  ;;  %v3295_v37 = vadd.f32 %v10630_v55, %v10656_v17 }
 0x3a0   : > { %v8417_v1 = vpop.f32.mrf.mxu0  ;;  %6491 = vmatprep.mubr.bf16.mxu0 %v7872_v63  ;;  %8964 = vmatprep.mubr.bf16.mxu1 %v7873_v29  ;;  %v6201_v59 = vsel %vm9858_vm5, %v7816_v31, %v6200_v42  ;;  %v7815_v16 = vrot.slane %v8146_v28, 9  ;;  %v8401_v35 = vadd.f32 %v10632_v14, %v10620_v50  ;;  %v8404_v32 = vadd.f32 %v10654_v0, %v10644_v49  ;;  %v3313_v50 = vpop.f32.mrf.mxu1 }
 0x3a1   : > { %v7876_v43 = vcombine.low %v6193_v46, %v6201_v59  ;;  %v6189_v34 = vsel %vm9858_vm5, %v7813_v12, %v6188_v19  ;;  %v6196_v30 = vrot.slane %v8148_v3, 5  ;;  %v3325_v29 = vadd.f32 %v3295_v37, %v10543_v11 }
 0x3a2   : > { %v8418_v56 = vpop.f32.mrf.mxu0  ;;  %v3298_v31 = vadd.f32 %v8401_v35, %v10688_v13  ;;  %v8407_v28 = vadd.f32 %v10666_v47, %v10662_v18  ;;  %v8410_v55 = vadd.f32 %v10684_v52, %v10676_v61  ;;  %v3303_v17 = vadd.f32 %v10637_v22, %v8404_v32 }
 0x3a3   : > { %8965 = vmatmul.mubr.bf16.gmra.mxu1 %v7876_v43  ;;  %v6197_v14 = vsel %vm9858_vm5, %v7815_v16, %v6196_v30  ;;  %v8413_v49 = vadd.f32 %v10698_v7, %v10690_v40  ;;  %v8416_v0 = vadd.f32 %v8415_v10, %v8414_v38  ;;  %v8419_v22 = vadd.f32 %v8418_v56, %v8417_v1 }
 0x3a4   : > { %v8448_v36 = vpop.f32.mrf.mxu0  ;;  %v7875_v39 = vcombine.high %v6189_v34, %v6197_v14  ;;  %v3326_v13 = vadd.f32 %v3298_v31, %v10598_v53  ;;  %v3306_v18 = vadd.f32 %v10672_v54, %v8407_v28  ;;  %v3327_v47 = vadd.f32 %v3303_v17, %v10602_v20  ;;  %v9322_v28 = vld [vmem:[%s10922_s6 + $0x38] sm:$0xff]  }
 0x3a5   : > { %v3311_v61 = vadd.f32 %v8410_v55, %v3310_v60  ;;  %v3314_v52 = vadd.f32 %v8413_v49, %v3313_v50  ;;  %v3319_v42 = vadd.f32 %v10694_v41, %v8416_v0  ;;  %v10941_v40 = vcombine.low %v10702_v15, %v10706_v45  ;;  %8968 = vmatprep.subr.bf16.mxu0 %v9322_v28  ;;  %v9323_v49 = vld [vmem:[%s10922_s6 + $0x30] sm:$0xff]  }
 0x3a6   : > { %v8449_v11 = vpop.f32.mrf.mxu0  ;;  %v3328_v63 = vadd.f32 %v3306_v18, %v10616_v23  ;;  %v3322_v38 = vadd.f32 %v8847_v33, %v8419_v22  ;;  %v7874_v23 = vcombine.low %v6189_v34, %v6197_v14  ;;  %9024 = vmatprep.subr.bf16.mxu1 %v9322_v28  ;;  %8969 = vmatpush3.bf16.msra.mxu0 %v9322_v28 }
 0x3a7   : > { %v8450_v48 = vadd.f32 %v8449_v11, %v8448_v36  ;;  %6492 = vmatmul.mubr.bf16.gmra.mxu0 %v10941_v40  ;;  %v3329_v7 = vadd.f32 %v3311_v61, %v10640_v51  ;;  %v3330_v53 = vadd.f32 %v3314_v52, %v10647_v58  ;;  %v3331_v54 = vadd.f32 %v3319_v42, %v10650_v2  ;;  %v8866_v57 = vpop.f32.mrf.mxu1  ;;  %v9324_v61 = vld [vmem:[%s10922_s6 + $0x28] sm:$0xff]  }
 0x3a8   : > { %v8451_v62 = vpop.f32.mrf.mxu0  ;;  %6499 = vmatprep.mubr.bf16.mxu0 %v7875_v39  ;;  %v3332_v41 = vadd.f32 %v3322_v38, %v10682_v44  ;;  %9032 = vmatpush3.bf16.msra.mxu1 %v9322_v28 }
 0x3a9   : > { %v4073_v5 = vpop.f32.mrf.mxu1  ;;  %8970 = vmatprep.subr.bf16.mxu0 %v9323_v49  ;;  %9025 = vmatprep.subr.bf16.mxu1 %v9323_v49 }
 0x3aa   : > { %v8452_v20 = vpop.f32.mrf.mxu0  ;;  %v4074_v25 = vadd.f32 %v8450_v48, %v4073_v5  ;;  %8971 = vmatpush3.bf16.msra.mxu0 %v9323_v49 }
 0x3ab   : > { %v8453_v60 = vadd.f32 %v8452_v20, %v8451_v62  ;;  %v8867_v10 = vpop.f32.mrf.mxu1  ;;  %8972 = vmatprep.subr.bf16.mxu0 %v9324_v61 }
 0x3ac   : > { %v10751_v15 = vadd.f32 %v4074_v25, %v3325_v29  ;;  %9033 = vmatpush3.bf16.msra.mxu1 %v9323_v49 }
 0x3ad   : > { %v4076_v45 = vpop.f32.mrf.mxu1  ;;  %9026 = vmatprep.subr.bf16.mxu1 %v9324_v61 }
 0x3ae   : > { %v4077_v51 = vadd.f32 %v8453_v60, %v4076_v45  ;;  %8973 = vmatpush3.bf16.msra.mxu0 %v9324_v61  ;;  %v9327_v45 = vld [vmem:[%s10922_s6 + $0x10] sm:$0xff]  }
 0x3af   : > { %6500 = vmatmul.mubr.bf16.gmra.mxu0 %v7874_v23 }
 0x3b0   : > { %v8454_v4 = vpop.f32.mrf.mxu0  ;;  %v10753_v58 = vadd.f32 %v4077_v51, %v3326_v13  ;;  %9034 = vmatpush3.bf16.msra.mxu1 %v9324_v61 }
 0x3b2   : > { %v8455_v2 = vpop.f32.mrf.mxu0 }
 0x3b3   : > { %v8456_v9 = vadd.f32 %v8455_v2, %v8454_v4 }
 0x3b4   : > { %v8457_v21 = vpop.f32.mrf.mxu0 }
 0x3b5   : > { %v4082_v33 = vadd.f32 %v8866_v57, %v8456_v9  ;;  %v9326_v57 = vld [vmem:[%s10922_s6 + $0x18] sm:$0xff]  }
 0x3b6   : > { %v8458_v6 = vpop.f32.mrf.mxu0 }
 0x3b7   : > { %v10755_v24 = vadd.f32 %v4082_v33, %v3327_v47  ;;  %v8459_v44 = vadd.f32 %v8458_v6, %v8457_v21  ;;  %v9328_v21 = vld [vmem:[%s10922_s6 + $0x8] sm:$0xff]  }
 0x3b8   : > { %v8460_v1 = vpop.f32.mrf.mxu0 }
 0x3b9   : > { %v4085_v8 = vadd.f32 %v8867_v10, %v8459_v44 }
 0x3ba   : > { %v8461_v3 = vpop.f32.mrf.mxu0 }
 0x3bb   : > { %v10757_v46 = vadd.f32 %v4085_v8, %v3328_v63  ;;  %v8462_v12 = vadd.f32 %v8461_v3, %v8460_v1  ;;  %v9329_v1 = vld [vmem:[%s10922_s6] sm:$0xff]  }
 0x3bc   : > { %v8463_v19 = vpop.f32.mrf.mxu0 }
 0x3be   : > { %v8464_v56 = vpop.f32.mrf.mxu0 }
 0x3bf   : > { %v8465_v59 = vadd.f32 %v8464_v56, %v8463_v19  ;;  %v8870_v16 = vpop.f32.mrf.mxu1 }
 0x3c1   : > { %v4089_v37 = vpop.f32.mrf.mxu1 }
 0x3c2   : > { %v4090_v35 = vadd.f32 %v8462_v12, %v4089_v37 }
 0x3c3   : > { %v8871_v43 = vpop.f32.mrf.mxu1 }
 0x3c4   : > { %v10759_v34 = vadd.f32 %v4090_v35, %v3329_v7  ;;  %v9325_v7 = vld [vmem:[%s10922_s6 + $0x20] sm:$0xff]  }
 0x3c5   : > { %v4092_v30 = vpop.f32.mrf.mxu1  ;;  %8974 = vmatprep.subr.bf16.mxu0 %v9325_v7  ;;  %9027 = vmatprep.subr.bf16.mxu1 %v9325_v7 }
 0x3c6   : > { %v4093_v32 = vadd.f32 %v8465_v59, %v4092_v30  ;;  %8975 = vmatpush3.bf16.msra.mxu0 %v9325_v7  ;;  %9035 = vmatpush3.bf16.msra.mxu1 %v9325_v7 }
 0x3c7   : > { %v8466_v36 = vpop.f32.mrf.mxu0  ;;  %8976 = vmatprep.subr.bf16.mxu0 %v9326_v57  ;;  %9028 = vmatprep.subr.bf16.mxu1 %v9326_v57 }
 0x3c8   : > { %v10761_v29 = vadd.f32 %v4093_v32, %v3330_v53 }
 0x3c9   : > { %v8467_v31 = vpop.f32.mrf.mxu0 }
 0x3ca   : > { %v8468_v55 = vadd.f32 %v8467_v31, %v8466_v36  ;;  %8977 = vmatpush3.bf16.msra.mxu0 %v9326_v57  ;;  %9036 = vmatpush3.bf16.msra.mxu1 %v9326_v57 }
 0x3cb   : > { %v8469_v50 = vpop.f32.mrf.mxu0  ;;  %8978 = vmatprep.subr.bf16.mxu0 %v9327_v45  ;;  %9029 = vmatprep.subr.bf16.mxu1 %v9327_v45 }
 0x3cc   : > { %v4098_v14 = vadd.f32 %v8870_v16, %v8468_v55 }
 0x3cd   : > { %v8470_v17 = vpop.f32.mrf.mxu0 }
 0x3ce   : > { %v10769_v0 = vadd.f32 %v4098_v14, %v3331_v54  ;;  %v8471_v11 = vadd.f32 %v8470_v17, %v8469_v50  ;;  %8979 = vmatpush3.bf16.msra.mxu0 %v9327_v45  ;;  %9037 = vmatpush3.bf16.msra.mxu1 %v9327_v45 }
 0x3cf   : > { %v8500_v39 = vpop.f32.mrf.mxu0  ;;  %8980 = vmatprep.subr.bf16.mxu0 %v9328_v21  ;;  %9030 = vmatprep.subr.bf16.mxu1 %v9328_v21 }
 0x3d0   : > { %v4101_v13 = vadd.f32 %v8871_v43, %v8471_v11 }
 0x3d1   : > { %v8501_v47 = vpop.f32.mrf.mxu0 }
 0x3d2   : > { %v10774_v52 = vadd.f32 %v4101_v13, %v3332_v41  ;;  %v8502_v42 = vadd.f32 %v8501_v47, %v8500_v39  ;;  %8981 = vmatpush3.bf16.msra.mxu0 %v9328_v21  ;;  %9038 = vmatpush3.bf16.msra.mxu1 %v9328_v21 }
 0x3d3   : > { %v8503_v63 = vpop.f32.mrf.mxu0  ;;  %8982 = vmatprep.subr.bf16.mxu0 %v9329_v1  ;;  %9031 = vmatprep.subr.bf16.mxu1 %v9329_v1 }
 0x3d5   : > { %v8504_v40 = vpop.f32.mrf.mxu0 }
 0x3d6   : > { %v8505_v54 = vadd.f32 %v8504_v40, %v8503_v63  ;;  %8983 = vmatpush3.bf16.msra.mxu0 %v9329_v1  ;;  %9039 = vmatpush3.bf16.msra.mxu1 %v9329_v1 }
 0x3db   : > { %v8890_v18 = vpop.f32.mrf.mxu1 }
 0x3dd   : > { %v4692_v62 = vpop.f32.mrf.mxu1  ;;  %v8506_v38 = vpop.f32.mrf.mxu0 }
 0x3de   : > { %v4693_v22 = vadd.f32 %v8502_v42, %v4692_v62 }
 0x3df   : > { %v8891_v48 = vpop.f32.mrf.mxu1  ;;  %v8507_v41 = vpop.f32.mrf.mxu0 }
 0x3e0   : > { %v10780_v53 = vadd.f32 %v4693_v22, %v10751_v15  ;;  %v8508_v5 = vadd.f32 %v8507_v41, %v8506_v38 }
 0x3e1   : > { %v4695_v20 = vpop.f32.mrf.mxu1  ;;  %v8509_v25 = vpop.f32.mrf.mxu0 }
 0x3e2   : > { %v4696_v60 = vadd.f32 %v8505_v54, %v4695_v20  ;;  %v4701_v10 = vadd.f32 %v8890_v18, %v8508_v5 }
 0x3e3   : > { %v8510_v15 = vpop.f32.mrf.mxu0 }
 0x3e4   : > { %v10786_v23 = vadd.f32 %v4696_v60, %v10753_v58  ;;  %v4725_v51 = vadd.f32 %v4701_v10, %v10755_v24  ;;  %v8511_v4 = vadd.f32 %v8510_v15, %v8509_v25 }
 0x3e6   : > { %v4704_v58 = vadd.f32 %v8891_v48, %v8511_v4 }
 0x3e8   : > { %v10796_v33 = vadd.f32 %v4704_v58, %v10757_v46 }
 0x3ea   : > { %v8512_v2 = vpop.f32.mrf.mxu0 }
 0x3ec   : > { %v8513_v9 = vpop.f32.mrf.mxu0 }
 0x3ed   : > { %v8514_v6 = vadd.f32 %v8513_v9, %v8512_v2  ;;  %v8894_v24 = vpop.f32.mrf.mxu1 }
 0x3ee   : > { %v8515_v44 = vpop.f32.mrf.mxu0 }
 0x3ef   : > { %v4708_v12 = vpop.f32.mrf.mxu1 }
 0x3f0   : > { %v8516_v8 = vpop.f32.mrf.mxu0  ;;  %v4709_v19 = vadd.f32 %v8514_v6, %v4708_v12 }
 0x3f1   : > { %v8517_v3 = vadd.f32 %v8516_v8, %v8515_v44  ;;  %v8895_v46 = vpop.f32.mrf.mxu1 }
 0x3f2   : > { %v4727_v56 = vadd.f32 %v4709_v19, %v10759_v34 }
 0x3f3   : > { %v4711_v59 = vpop.f32.mrf.mxu1 }
 0x3f4   : > { %v4712_v37 = vadd.f32 %v8517_v3, %v4711_v59 }
 0x3f5   : > { %v8518_v16 = vpop.f32.mrf.mxu0 }
 0x3f6   : > { %v10803_v35 = vadd.f32 %v4712_v37, %v10761_v29 }
 0x3f7   : > { %v8519_v43 = vpop.f32.mrf.mxu0 }
 0x3f8   : > { %v8520_v30 = vadd.f32 %v8519_v43, %v8518_v16 }
 0x3f9   : > { %v8521_v32 = vpop.f32.mrf.mxu0 }
 0x3fa   : > { %v4717_v36 = vadd.f32 %v8894_v24, %v8520_v30 }
 0x3fb   : > { %v8522_v31 = vpop.f32.mrf.mxu0  ;;  %v8914_v28 = vpop.f32.mrf.mxu1 }
 0x3fc   : > { %v4729_v55 = vadd.f32 %v4717_v36, %v10769_v0  ;;  %v8523_v50 = vadd.f32 %v8522_v31, %v8521_v32 }
 0x3fd   : > { %v8552_v14 = vpop.f32.mrf.mxu0  ;;  %v5144_v11 = vpop.f32.mrf.mxu1 }
 0x3fe   : > { %v4720_v17 = vadd.f32 %v8895_v46, %v8523_v50 }
 0x3ff   : > { %v8553_v49 = vpop.f32.mrf.mxu0  ;;  %v10812_v61 = vpop.f32.mrf.mxu1 }
 0x400   : > { %v10807_v34 = vadd.f32 %v4720_v17, %v10774_v52  ;;  %v8554_v39 = vadd.f32 %v8553_v49, %v8552_v14 }
 0x401   : > { %v8555_v13 = vpop.f32.mrf.mxu0  ;;  %v5147_v63 = vpop.f32.mrf.mxu1 }
 0x402   : > { %v5145_v29 = vadd.f32 %v8554_v39, %v5144_v11 }
 0x403   : > { %v8556_v18 = vpop.f32.mrf.mxu0  ;;  %v8918_v7 = vpop.f32.mrf.mxu1 }
 0x404   : > { %v10810_v47 = vadd.f32 %v5145_v29, %v10780_v53  ;;  %v8557_v11 = vadd.f32 %v8556_v18, %v8555_v13 }
 0x405   : > { %v8558_v42 = vpop.f32.mrf.mxu0  ;;  %v5160_v38 = vpop.f32.mrf.mxu1 }
 0x407   : > { %v8559_v62 = vpop.f32.mrf.mxu0  ;;  %v10828_v24 = vpop.f32.mrf.mxu1 }
 0x408   : > { %v8560_v0 = vadd.f32 %v8559_v62, %v8558_v42 }
 0x409   : > { %v8561_v22 = vpop.f32.mrf.mxu0  ;;  %v10830_v3 = vpop.f32.mrf.mxu1 }
 0x40a   : > { %v5153_v48 = vadd.f32 %v8914_v28, %v8560_v0 }
 0x40b   : > { %v8562_v40 = vpop.f32.mrf.mxu0 }
 0x40c   : > { %v10814_v54 = vadd.f32 %v5153_v48, %v4725_v51 }
 0x40d   : > { %v8564_v52 = vpop.f32.mrf.mxu0 }
 0x40f   : > { %v8565_v20 = vpop.f32.mrf.mxu0 }
 0x410   : > { %v8566_v60 = vadd.f32 %v8565_v20, %v8564_v52 }
 0x411   : > { %v10816_v41 = vpop.f32.mrf.mxu0 }
 0x412   : > { %v5161_v53 = vadd.f32 %v8566_v60, %v5160_v38 }
 0x413   : > { %v10818_v57 = vpop.f32.mrf.mxu0 }
 0x414   : > { %v10820_v5 = vadd.f32 %v5161_v53, %v4727_v56 }
 0x415   : > { %v8570_v25 = vpop.f32.mrf.mxu0 }
 0x417   : > { %v8571_v10 = vpop.f32.mrf.mxu0 }
 0x418   : > { %v8572_v15 = vadd.f32 %v8571_v10, %v8570_v25 }
 0x419   : > { %v10824_v2 = vpop.f32.mrf.mxu0 }
 0x41a   : > { %v5169_v45 = vadd.f32 %v8918_v7, %v8572_v15  ;;  %v5148_v7 = vadd.f32 %v8557_v11, %v5147_v63  ;;  %v8563_v15 = vadd.f32 %v8562_v40, %v8561_v22  ;;  %v10849_v63 = vld [vmem:[%s10921_s5] ss:$0 sm:$0xff] }
 0x41b   : > { %v10826_v51 = vpop.f32.mrf.mxu0 }
 0x41c   : > { %v10822_v4 = vadd.f32 %v5169_v45, %v4729_v55  ;;  %v5176_v13 = vadd.f32 %v5148_v7, %v10786_v23 }
 0x422   : > { %v8604_v58 = vpop.f32.mrf.mxu0 }
 0x424   : > { %v8605_v9 = vpop.f32.mrf.mxu0 }
 0x425   : > { %v8606_v14 = vadd.f32 %v8605_v9, %v8604_v58 }
 0x426   : > { %v8607_v21 = vpop.f32.mrf.mxu0 }
 0x428   : > { %v8608_v6 = vpop.f32.mrf.mxu0 }
 0x429   : > { %v8609_v62 = vadd.f32 %v8608_v6, %v8607_v21 }
 0x42b   : > { %v8938_v12 = vpop.f32.mrf.mxu1 }
 0x42d   : > { %v5923_v46 = vpop.f32.mrf.mxu1 }
 0x42e   : > { %v5924_v42 = vadd.f32 %v8606_v14, %v5923_v46 }
 0x42f   : > { %v8939_v59 = vpop.f32.mrf.mxu1 }
 0x430   : > { %v5954_v53 = vadd.f32 %v5924_v42, %v10810_v47  ;;  %v5156_v47 = vadd.f32 %v10812_v61, %v8563_v15 }
 0x431   : > { %v5926_v37 = vpop.f32.mrf.mxu1 }
 0x432   : > { %v5927_v25 = vadd.f32 %v8609_v62, %v5926_v37 }
 0x434   : > { %v8610_v44 = vpop.f32.mrf.mxu0  ;;  %v5955_v6 = vadd.f32 %v5927_v25, %v5176_v13 }
 0x436   : > { %v8611_v8 = vpop.f32.mrf.mxu0 }
 0x437   : > { %v8612_v20 = vadd.f32 %v8611_v8, %v8610_v44 }
 0x438   : > { %v8613_v1 = vpop.f32.mrf.mxu0 }
 0x439   : > { %v5932_v46 = vadd.f32 %v8938_v12, %v8612_v20 }
 0x43a   : > { %v8614_v19 = vpop.f32.mrf.mxu0 }
 0x43b   : > { %v8615_v44 = vadd.f32 %v8614_v19, %v8613_v1  ;;  %v5956_v23 = vadd.f32 %v5932_v46, %v10814_v54  ;;  %v8569_v1 = vadd.f32 %v10818_v57, %v10816_v41 }
 0x43f   : > { %v8616_v56 = vpop.f32.mrf.mxu0 }
 0x441   : > { %v8617_v16 = vpop.f32.mrf.mxu0 }
 0x442   : > { %v8618_v42 = vadd.f32 %v8617_v16, %v8616_v56  ;;  %v5164_v16 = vadd.f32 %v8569_v1, %v10830_v3  ;;  %v8575_v3 = vadd.f32 %v10826_v51, %v10824_v2 }
 0x443   : > { %v8619_v43 = vpop.f32.mrf.mxu0 }
 0x445   : > { %v8620_v32 = vpop.f32.mrf.mxu0 }
 0x447   : > { %v10832_v30 = vpop.f32.mrf.mxu1 }
 0x449   : > { %v5939_v36 = vpop.f32.mrf.mxu1 }
 0x44b   : > { %v10836_v28 = vpop.f32.mrf.mxu1 }
 0x44d   : > { %v5942_v17 = vpop.f32.mrf.mxu1 }
 0x44f   : > { %v10834_v31 = vpop.f32.mrf.mxu0 }
 0x451   : > { %v10838_v55 = vpop.f32.mrf.mxu0 }
 0x453   : > { %v10840_v50 = vpop.f32.mrf.mxu0 }
 0x455   : > { %v10842_v49 = vpop.f32.mrf.mxu0 }
 0x457   : > { %v8656_v39 = vpop.f32.mrf.mxu0  ;;  %v8962_v29 = vpop.f32.mrf.mxu1 }
 0x459   : > { %v8657_v0 = vpop.f32.mrf.mxu0  ;;  %v6542_v48 = vpop.f32.mrf.mxu1 }
 0x45a   : > { %v8658_v52 = vadd.f32 %v8657_v0, %v8656_v39  ;;  %v5935_v39 = vadd.f32 %v8939_v59, %v8615_v44 }
 0x45b   : > { %v8659_v38 = vpop.f32.mrf.mxu0  ;;  %v8963_v60 = vpop.f32.mrf.mxu1 }
 0x45c   : > { %v6543_v10 = vadd.f32 %v8658_v52, %v6542_v48  ;;  %v5178_v48 = vadd.f32 %v5156_v47, %v10796_v33 }
 0x45d   : > { %v8660_v45 = vpop.f32.mrf.mxu0  ;;  %v6545_v58 = vpop.f32.mrf.mxu1 }
 0x45e   : > { %v6573_v18 = vadd.f32 %v6543_v10, %v5954_v53  ;;  %v8661_v9 = vadd.f32 %v8660_v45, %v8659_v38  ;;  %v8621_v53 = vadd.f32 %v8620_v32, %v8619_v43  ;;  %v5957_v25 = vadd.f32 %v5935_v39, %v5178_v48 }
 0x45f   : > { %v8662_v21 = vpop.f32.mrf.mxu0  ;;  %v5940_v10 = vadd.f32 %v8618_v42, %v5939_v36  ;;  %v8624_v43 = vadd.f32 %v10838_v55, %v10834_v31  ;;  %v8627_v31 = vadd.f32 %v10842_v49, %v10840_v50 }
 0x460   : > { %v6546_v8 = vadd.f32 %v8661_v9, %v6545_v58  ;;  %v6588_v22 = vadd.f32 %v10849_v63, %v6573_v18  ;;  %v5943_v57 = vadd.f32 %v8621_v53, %v5942_v17 }
 0x461   : > { %v8663_v37 = vpop.f32.mrf.mxu0  ;;  %v5958_v13 = vadd.f32 %v5940_v10, %v10820_v5  ;;  %v5948_v5 = vadd.f32 %v10832_v30, %v8624_v43 }
 0x462   : > { %v6574_v40 = vadd.f32 %v6546_v8, %v5955_v6  ;;  %v8664_v14 = vadd.f32 %v8663_v37, %v8662_v21  ;;  %v6596_v7 = vmax.f32 %v6588_v22, 0.0 }
 0x463   : > { %v8665_v11 = vpop.f32.mrf.mxu0  ;;  %v8966_v12 = vpop.f32.mrf.mxu1 }
 0x464   : > { %v6589_v62 = vadd.f32 %v10849_v63, %v6574_v40  ;;  %v6551_v0 = vadd.f32 %v8962_v29, %v8664_v14  ;;  %v5960_v14 = vadd.f32 %v5948_v5, %v10822_v4 }
 0x465   : > { %v8666_v61 = vpop.f32.mrf.mxu0  ;;  %v6558_v19 = vpop.f32.mrf.mxu1 }
 0x466   : > { %v6597_v52 = vmax.f32 %v6589_v62, 0.0  ;;  %v6575_v20 = vadd.f32 %v6551_v0, %v5956_v23  ;;  %v8667_v38 = vadd.f32 %v8666_v61, %v8665_v11  ;;  %v5951_v23 = vadd.f32 %v10836_v28, %v8627_v31 }
 0x467   : > { %v8668_v54 = vpop.f32.mrf.mxu0  ;;  %v8967_v15 = vpop.f32.mrf.mxu1 }
 0x468   : > { %v6554_v59 = vadd.f32 %v8963_v60, %v8667_v38  ;;  %v6604_v56 = vpack.c.bf16 %v6597_v52, %v6596_v7  ;;  %v6590_v33 = vadd.f32 %v10849_v63, %v6575_v20  ;;  %v5180_v60 = vadd.f32 %v5164_v16, %v10803_v35 }
 0x469   : > { %v8669_v29 = vpop.f32.mrf.mxu0  ;;  %v6561_v9 = vpop.f32.mrf.mxu1  ;;  %v5172_v35 = vadd.f32 %v10828_v24, %v8575_v3 }
 0x46a   : > { %v6576_v45 = vadd.f32 %v6554_v59, %v5957_v25  ;;  %v8670_v41 = vadd.f32 %v8669_v29, %v8668_v54  ;;  %8984 = vmatprep.mubr.bf16.mxu0 %v6604_v56  ;;  %v6598_v46 = vmax.f32 %v6590_v33, 0.0  ;;  %v5959_v44 = vadd.f32 %v5943_v57, %v5180_v60 }
 0x46b   : > { %v8671_v58 = vpop.f32.mrf.mxu0  ;;  %v5182_v50 = vadd.f32 %v5172_v35, %v10807_v34  ;;  %v7902_v34 = vld [vmem:[%s10923_s7] ss:$0 sm:$0xff]  ;;  %v10942_v25 = vunpack.c.l.bf16 %v9522_v27  ;;  %v10943_v56 = vunpack.c.l.bf16 %v9520_v26  ;;  %v10944_v29 = vunpack.c.h.bf16 %v9522_v27 }
 0x46c   : > { %v6591_v32 = vadd.f32 %v10849_v63, %v6576_v45  ;;  %v6559_v36 = vadd.f32 %v8670_v41, %v6558_v19  ;;  %v10945_v57 = vunpack.c.h.bf16 %v9520_v26  ;;  %v10948_v26 = vld [vmem:[#allocation8_spill] sm:$0xff] }
 0x46d   : > { %v8672_v18 = vpop.f32.mrf.mxu0  ;;  %v5961_v0 = vadd.f32 %v5951_v23, %v5182_v50 }
 0x46e   : > { %v6599_v21 = vmax.f32 %v6591_v32, 0.0  ;;  %v6577_v6 = vadd.f32 %v6559_v36, %v5958_v13  ;;  %v8673_v17 = vadd.f32 %v8672_v18, %v8671_v58 }
 0x46f   : > { %v8674_v8 = vpop.f32.mrf.mxu0 }
 0x470   : > { %v6605_v55 = vpack.c.bf16 %v6599_v21, %v6598_v46  ;;  %v6562_v47 = vadd.f32 %v8673_v17, %v6561_v9  ;;  %v6592_v2 = vadd.f32 %v10849_v63, %v6577_v6  ;;  %v10946_v46 = vld [vmem:[#allocation9_spill] sm:$0xff] }
 0x471   : > { %v8675_v37 = vpop.f32.mrf.mxu0  ;;  %v10947_v21 = vunpack.c.l.bf16 %v10946_v46  ;;  %v10950_v31 = vunpack.c.h.bf16 %v10946_v46 }
 0x472   : > { %v6578_v51 = vadd.f32 %v6562_v47, %v5959_v44  ;;  %v8676_v22 = vadd.f32 %v8675_v37, %v8674_v8  ;;  %8985 = vmatmul.mubr.bf16.vlgmr.msra.gmra.mxu0 %v6605_v55  ;;  %v6600_v39 = vmax.f32 %v6592_v2, 0.0  ;;  %v10949_v8 = vunpack.c.l.bf16 %v10948_v26 }
 0x473   : > { %v8677_v40 = vpop.f32.mrf.mxu0  ;;  %v10951_v2 = vunpack.c.h.bf16 %v10948_v26 }
 0x474   : > { %v6593_v30 = vadd.f32 %v10849_v63, %v6578_v51  ;;  %v6567_v11 = vadd.f32 %v8966_v12, %v8676_v22 }
 0x475   : > { %v8678_v49 = vpop.f32.mrf.mxu0 }
 0x476   : > { %v6601_v42 = vmax.f32 %v6593_v30, 0.0  ;;  %v6579_v24 = vadd.f32 %v6567_v11, %v5960_v14  ;;  %v8679_v62 = vadd.f32 %v8678_v49, %v8677_v40 }
 0x478   : > { %v6570_v48 = vadd.f32 %v8967_v15, %v8679_v62  ;;  %v6606_v1 = vpack.c.bf16 %v6601_v42, %v6600_v39  ;;  %v6594_v61 = vadd.f32 %v10849_v63, %v6579_v24 }
 0x47a   : > { %v6580_v19 = vadd.f32 %v6570_v48, %v5961_v0  ;;  %8988 = vmatprep.mubr.bf16.mxu1 %v6606_v1  ;;  %v6602_v28 = vmax.f32 %v6594_v61, 0.0 }
 0x47c   : > { %v6595_v4 = vadd.f32 %v10849_v63, %v6580_v19 }
 0x47e   : > { %v6603_v7 = vmax.f32 %v6595_v4, 0.0 }
 0x480   : > { %v6607_v52 = vpack.c.bf16 %v6603_v7, %v6602_v28 }
 0x482   : > { %8989 = vmatmul.mubr.bf16.vlgmr.msra.gmra.mxu1 %v6607_v52 }
 0x532   : > { %v8986_v12 = vpop.f32.mrf.mxu0 }
 0x533   : > { %v6722_v20 = vadd.f32 %v8986_v12, %v7902_v34 }
 0x534   : > { %v6713_v38 = vpop.f32.mrf.mxu0 }
 0x535   : > { %v6714_v53 = vadd.f32 %v7902_v34, %v6713_v38  ;;  %v6746_v10 = vadd.f32 %v10942_v25, %v6722_v20 }
 0x536   : > { %v8987_v54 = vpop.f32.mrf.mxu0 }
 0x537   : > { %v6725_v59 = vadd.f32 %v8987_v54, %v7902_v34  ;;  %v6744_v16 = vadd.f32 %v10943_v56, %v6714_v53  ;;  %v6754_v45 = vmax.f32 %v6746_v10, 0.0 }
 0x538   : > { %v6716_v63 = vpop.f32.mrf.mxu0 }
 0x539   : > { %v6747_v15 = vadd.f32 %v10944_v29, %v6725_v59  ;;  %v6717_v33 = vadd.f32 %v7902_v34, %v6716_v63  ;;  %v6752_v13 = vmax.f32 %v6744_v16, 0.0 }
 0x53b   : > { %v6755_v41 = vmax.f32 %v6747_v15, 0.0  ;;  %v6745_v58 = vadd.f32 %v10945_v57, %v6717_v33 }
 0x53d   : > { %v8182_v43 = vpack.c.bf16 %v6755_v41, %v6754_v45  ;;  %v6753_v32 = vmax.f32 %v6745_v58, 0.0 }
 0x53f   : > { %8197 = vst [vmem:[%s9469_s15 + $0x8] sm:$0xff] %v8182_v43   ;;  %v8177_v36 = vpack.c.bf16 %v6753_v32, %v6752_v13 }
 0x541   : > { %8178 = vst [vmem:[%s9469_s15] sm:$0xff] %v8177_v36  }
 0x542   : > { %v8990_v60 = vpop.f32.mrf.mxu1 }
 0x543   : > { %v6738_v3 = vadd.f32 %v8990_v60, %v7902_v34 }
 0x544   : > { %v6729_v18 = vpop.f32.mrf.mxu1 }
 0x545   : > { %v6730_v9 = vadd.f32 %v7902_v34, %v6729_v18  ;;  %v6750_v6 = vadd.f32 %v10947_v21, %v6738_v3 }
 0x546   : > { %v8991_v27 = vpop.f32.mrf.mxu1 }
 0x547   : > { %v6741_v17 = vadd.f32 %v8991_v27, %v7902_v34  ;;  %v6748_v5 = vadd.f32 %v10949_v8, %v6730_v9  ;;  %v6758_v35 = vmax.f32 %v6750_v6, 0.0 }
 0x548   : > { %v6732_v44 = vpop.f32.mrf.mxu1 }
 0x549   : > { %v6751_v55 = vadd.f32 %v10950_v31, %v6741_v17  ;;  %v6733_v47 = vadd.f32 %v7902_v34, %v6732_v44  ;;  %v6756_v22 = vmax.f32 %v6748_v5, 0.0 }
 0x54b   : > { %v6759_v37 = vmax.f32 %v6751_v55, 0.0  ;;  %v6749_v51 = vadd.f32 %v10951_v2, %v6733_v47 }
 0x54d   : > { %v8192_v40 = vpack.c.bf16 %v6759_v37, %v6758_v35  ;;  %v6757_v14 = vmax.f32 %v6749_v51, 0.0 }
 0x54f   : > { %8199 = vst [vmem:[%s9469_s15 + $0x18] sm:$0xff] %v8192_v40   ;;  %v8187_v23 = vpack.c.bf16 %v6757_v14, %v6756_v22 }
 0x551   : > { %8198 = vst [vmem:[%s9469_s15 + $0x10] sm:$0xff] %v8187_v23  }
 0x552 PF: > { %s18_s9 = sadd.s32 1, %s9368_s9   ;;  %s10952_s27 = sld [smem:[#allocation4_spill]] }
 0x553   : > { %p15_p12 = scmp.ge.s32.totalorder %s18_s9, 18   ;;  %s10953_s28 = sld [smem:[#allocation5_spill]] }
 0x554   : > { %s10954_s29 = sld [smem:[#allocation6_spill]] }
 0x555   : > { %s10955_s30 = sld [smem:[#allocation7_spill]]  ;;  %17 = sbr.rel (!%p15_p12) target bundleno = 3 (0x3), region = 113 }

</bundles_post_ra>
